<compile_context>
chip_gen: v5e
topology: v5e:2x2
jax: 0.10.0
libtpu: 0.0.40
codegen_flags: <defaults>
</compile_context>

<pallas_src>
import functools

import jax
import jax.numpy as jnp
import numpy as np
from jax import lax
from jax.experimental import pallas as pl
from jax.experimental.pallas import tpu as pltpu


# --------------------------------------------------------------------------- #
# Device heuristics / parameter preparation (done once, outside jit).
# --------------------------------------------------------------------------- #
def _supports_bf16_vpu():
    """bf16-native VPU (v6e / v7x). v5e and older keep the h1 stage in f32."""
    try:
        kind = jax.devices()[0].device_kind.lower()
    except Exception:
        return True
    for tag in ("v2", "v3", "v4", "v5"):
        if tag in kind:
            return False
    return True


def fold_gine_params(params, *, bn_eps=1e-5, matmul_dtype=jnp.bfloat16,
                     h1_dtype=None):
    """Fold eval-BatchNorm into the HxH linear and pre-cast weights.

    Fold is done in f32 and only then cast to bf16 (matmul operands), so the
    folded kernel matches BN-after-matmul up to bf16 operand rounding.
    """
    if h1_dtype is None:
        h1_dtype = jnp.bfloat16 if _supports_bf16_vpu() else jnp.float32
    s = params["bn_gamma"] * lax.rsqrt(params["bn_var"] + bn_eps)          # (1, H) f32
    w2f = (params["w2"].astype(jnp.float32) * s).astype(matmul_dtype)      # (H, H)
    b2f = (params["b2"] - params["bn_mean"]) * s + params["bn_beta"]       # (1, H) f32
    return dict(
        we=params["we"], be=params["be"], up_emb=params["up_emb"],
        w1=params["w1"].astype(h1_dtype),
        b1=params["b1"].astype(h1_dtype),
        w2f=w2f,
        b2f=b2f.astype(jnp.float32),
    )


# --------------------------------------------------------------------------- #
# Pallas kernel: fused GIN-MLP (BN pre-folded) + ReLU over one node tile.
# --------------------------------------------------------------------------- #
def _gine_mlp_kernel(z_ref, w1_ref, b1_ref, w2_ref, b2_ref, out_ref):
    w1 = w1_ref[...]                                        # (1, H)  h1 dtype
    z = z_ref[...].astype(w1.dtype)                         # (TN, 1)

    # Linear(1, H) + ReLU: K=1 contraction -> pure VPU broadcast multiply-add.
    h1 = jnp.maximum(z * w1 + b1_ref[...], 0.0)             # (TN, H)

    # Linear(H, H) with eval-BN folded in: the real matmul -> MXU, f32 acc.
    if h1.dtype != w2_ref.dtype:
        h1 = h1.astype(w2_ref.dtype)
    h2 = jnp.dot(h1, w2_ref[...],
                 preferred_element_type=jnp.float32) + b2_ref[...]   # (TN, H) f32

    # Final ReLU; activation written back narrow (bf16) to halve HBM traffic.
    out_ref[...] = jnp.maximum(h2, 0.0).astype(out_ref.dtype)


def _pick_node_tile(n, *, max_tile=1024, align=256):
    """>=2 roughly balanced tiles (v7x has 2 TCs), each big enough to amortize
    the ~0.35us per-grid-step pipeline overhead, capped for VMEM headroom."""
    half = -(-n // 2)                         # cdiv(n, 2)
    half_aligned = -(-half // align) * align
    return int(max(align, min(max_tile, half_aligned)))


def _gine_node_update(fp, z, *, node_tile=None, max_node_tile=1024,
                      out_dtype=jnp.bfloat16):
    """Apply the (BN-folded) GIN MLP + ReLU to every node via a tiled kernel."""
    N = z.shape[0]
    H = fp["w1"].shape[1]
    if H % 128 != 0:
        raise ValueError("edge_embed_dim must be a multiple of 128 "
                         "(lane-dense tiles); pad the weights if needed")
    if node_tile is None:
        node_tile = _pick_node_tile(N, max_tile=max_node_tile)

    num_tiles = -(-N // node_tile)
    n_pad = num_tiles * node_tile
    z_p = jnp.pad(z, ((0, n_pad - N), (0, 0)))

    # Parameter blocks: constant block index -> DMA'd once, stay VMEM-resident.
    def rep(shape):
        return pl.BlockSpec(shape, lambda i: (0, 0))

    out_itemsize = jnp.dtype(out_dtype).itemsize
    flops = 2 * n_pad * H * H + 6 * n_pad * H
    bytes_accessed = (z_p.size * z_p.dtype.itemsize
                      + fp["w2f"].size * fp["w2f"].dtype.itemsize
                      + 3 * H * 4
                      + n_pad * H * out_itemsize)

    h = pl.pallas_call(
        _gine_mlp_kernel,
        out_shape=jax.ShapeDtypeStruct((n_pad, H), out_dtype),
        grid=(num_tiles,),
        in_specs=[
            pl.BlockSpec((node_tile, 1), lambda i: (i, 0)),   # z (per-node scalar)
            rep((1, H)),                                      # w1 (h1 dtype)
            rep((1, H)),                                      # b1 (h1 dtype)
            rep((H, H)),                                      # w2 folded (bf16, resident)
            rep((1, H)),                                      # b2 folded (f32)
        ],
        out_specs=pl.BlockSpec((node_tile, H), lambda i: (i, 0)),
        compiler_params=pltpu.CompilerParams(
            dimension_semantics=("parallel",),                # shard tiles across TCs
            vmem_limit_bytes=32 * 1024 * 1024),               # fits v5e/v6e/v7x
        cost_estimate=pl.CostEstimate(flops=flops, transcendentals=0,
                                      bytes_accessed=bytes_accessed),
    )(z_p, fp["w1"], fp["b1"], fp["w2f"], fp["b2f"])
    return h[:N]


# --------------------------------------------------------------------------- #
# Full edge-graph branch of EdgeGraphsNBFNet.forward (up to edge_embeddings).
# --------------------------------------------------------------------------- #
def edgegraph_edge_embeddings(fp, edgegraph_x, edgegraph_edge_index,
                              edgegraph_edge_attr, edgegraph2ppedge,
                              *, num_pp_edges, num_edge_graphs,
                              gine_eps=0.0, node_tile=None):
    x = edgegraph_x                                              # (N, 1) f32
    src = edgegraph_edge_index[0]
    dst = edgegraph_edge_index[1]
    N = x.shape[0]
    G = num_edge_graphs

    # GINEConv message + aggregation: O(E) scalar work on integer indices.
    # Index-based gather / scatter-add — left to XLA gather / segment_sum
    # (irregular scatter has no efficient vectorized Pallas TPU mapping
    # without sorted-CSR preprocessing).
    e_lin = edgegraph_edge_attr @ fp["we"] + fp["be"]            # (E, 1)
    msg = jnp.maximum(x[src] + e_lin, 0.0)                       # (E, 1)
    aggr = jax.ops.segment_sum(msg, dst, num_segments=N)         # (N, 1)
    z = (1.0 + gine_eps) * x + aggr                              # (N, 1)

    # Fused GIN MLP (eval-BN folded) + ReLU — the Pallas kernel.
    h = _gine_node_update(fp, z, node_tile=node_tile)            # (N, H) bf16

    # global_add_pool (accumulate in f32) + vstack([up_emb.repeat, pooled]).
    pooled = jax.ops.segment_sum(h.astype(jnp.float32),
                                 edgegraph2ppedge, num_segments=G)    # (G, H)
    num_up = num_pp_edges - G
    up = jnp.broadcast_to(fp["up_emb"], (num_up, h.shape[1]))
    return jnp.concatenate([up, pooled], axis=0)                 # (num_pp_edges, H)


# --------------------------------------------------------------------------- #
# Demo / correctness check.
# --------------------------------------------------------------------------- #
if __name__ == "__main__":
    key = jax.random.PRNGKey(0)
    ks = jax.random.split(key, 16)

    # Small shapes consistent with the module (edge_embed_dim = 256, MXU-native).
    N, E = 600, 1600            # batched edge-graph nodes / edges
    G = 64                      # number of edge-graphs (pp-edges with a graph)
    NUM_PP_EDGES = 96           # data.edge_index.size(-1)
    NUM_UP = NUM_PP_EDGES - G   # pp-edges that use the shared up_emb row
    H = 256                     # edge_embed_dim (lane-dense, MXU-native)
    EDGE_DIM = 2                # use_p_value = 1

    x = jax.random.normal(ks[0], (N, 1), jnp.float32)            # edgegraph_x
    edge_attr = jax.random.normal(ks[1], (E, EDGE_DIM), jnp.float32)
    src = jax.random.randint(ks[2], (E,), 0, N)
    dst = jax.random.randint(ks[3], (E,), 0, N)
    edge_index = jnp.stack([src, dst])                           # edgegraph_edge_index
    seg = jnp.sort(jax.random.randint(ks[4], (N,), 0, G))        # edgegraph2ppedge

    params = dict(
        we=jax.random.normal(ks[5], (EDGE_DIM, 1), jnp.float32) * 0.5,   # GINEConv.lin
        be=jax.random.normal(ks[6], (1, 1), jnp.float32) * 0.1,
        w1=jax.random.normal(ks[7], (1, H), jnp.float32) * 0.5,          # nn[0]
        b1=jax.random.normal(ks[8], (1, H), jnp.float32) * 0.1,
        w2=jax.random.normal(ks[9], (H, H), jnp.float32) / jnp.sqrt(H),  # nn[2]
        b2=jax.random.normal(ks[10], (1, H), jnp.float32) * 0.1,
        bn_gamma=1.0 + 0.1 * jax.random.normal(ks[11], (1, H), jnp.float32),
        bn_beta=0.1 * jax.random.normal(ks[12], (1, H), jnp.float32),
        bn_mean=0.1 * jax.random.normal(ks[13], (1, H), jnp.float32),
        bn_var=0.5 + jnp.abs(jax.random.normal(ks[14], (1, H), jnp.float32)),
        up_emb=jax.random.normal(ks[15], (1, H), jnp.float32),           # Embedding(1,H)
    )

    # One-time parameter prep outside jit: fold eval-BN into w2/b2 (f32 fold,
    # then bf16 cast) and pre-cast the h1-stage parameters.
    fparams = fold_gine_params(params, bn_eps=1e-5)

    fwd = jax.jit(lambda fp, xx, ei, ea, sg: edgegraph_edge_embeddings(
        fp, xx, ei, ea, sg, num_pp_edges=NUM_PP_EDGES, num_edge_graphs=G))
    out = jax.block_until_ready(fwd(fparams, x, edge_index, edge_attr, seg))

    # Pure-JAX reference mirroring the kernel's mixed-precision policy on the
    # matmul inputs (bf16 h1 / folded bf16 w2, f32 accumulation), but keeping
    # the post-matmul activation in f32.  The kernel's only extra deviation is
    # its bf16 activation writeback: <= 1 bf16 ULP (2^-9 ~ 0.2%) per element,
    # and since post-ReLU values are non-negative the pooled relative error is
    # bounded by the same 0.2% -> rtol/atol 5e-3 is a strict check.
    e_lin = edge_attr @ params["we"] + params["be"]
    msg = jnp.maximum(x[src] + e_lin, 0.0)
    aggr = jax.ops.segment_sum(msg, dst, num_segments=N)
    z = x + aggr
    h1d = fparams["w1"].dtype
    h1 = jnp.maximum(z.astype(h1d) * fparams["w1"] + fparams["b1"], 0.0)
    h2 = jnp.dot(h1.astype(fparams["w2f"].dtype), fparams["w2f"],
                 preferred_element_type=jnp.float32) + fparams["b2f"]
    h_ref = jnp.maximum(h2, 0.0)                                 # f32
    pooled = jax.ops.segment_sum(h_ref, seg, num_segments=G)
    ref = jnp.concatenate([jnp.tile(params["up_emb"], (NUM_UP, 1)), pooled], axis=0)

    np.testing.assert_allclose(np.asarray(out), np.asarray(ref),
                               rtol=5e-3, atol=5e-3)
    print("KERNEL_OK")
</pallas_src>

<mosaic_0001>
module attributes {stable_mosaic.version = 11 : i64} {
  func.func @_gine_mlp_kernel(%arg0: i32, %arg1: memref<512x1xf32, #tpu.memory_space<vmem>>, %arg2: memref<1x256xbf16, #tpu.memory_space<vmem>>, %arg3: memref<1x256xbf16, #tpu.memory_space<vmem>>, %arg4: memref<256x256xbf16, #tpu.memory_space<vmem>>, %arg5: memref<1x256xf32, #tpu.memory_space<vmem>>, %arg6: memref<512x256xbf16, #tpu.memory_space<vmem>>) attributes {dimension_semantics = [#tpu.dimension_semantics<parallel>], iteration_bounds = array<i64: 2>, scalar_prefetch = 0 : i64, scratch_operands = 0 : i64, tpu.core_type = #tpu.core_type<tc>, window_params = [{transform_indices = @transform_0, window_bounds = array<i64: 512, 1>}, {pipeline_mode = #tpu.pipeline_mode<synchronous>, transform_indices = @transform_1, window_bounds = array<i64: 1, 256>}, {pipeline_mode = #tpu.pipeline_mode<synchronous>, transform_indices = @transform_2, window_bounds = array<i64: 1, 256>}, {pipeline_mode = #tpu.pipeline_mode<synchronous>, transform_indices = @transform_3, window_bounds = array<i64: 256, 256>}, {pipeline_mode = #tpu.pipeline_mode<synchronous>, transform_indices = @transform_4, window_bounds = array<i64: 1, 256>}, {transform_indices = @transform_5, window_bounds = array<i64: 512, 256>}]} {
    %c0 = arith.constant 0 : index
    %c0_0 = arith.constant 0 : index
    %0 = vector.load %arg2[%c0, %c0_0] : memref<1x256xbf16, #tpu.memory_space<vmem>>, vector<1x256xbf16>
    %c0_1 = arith.constant 0 : index
    %c0_2 = arith.constant 0 : index
    %1 = vector.load %arg1[%c0_1, %c0_2] : memref<512x1xf32, #tpu.memory_space<vmem>>, vector<512x1xf32>
    %2 = arith.truncf %1 : vector<512x1xf32> to vector<512x1xbf16>
    %3 = vector.broadcast %2 : vector<512x1xbf16> to vector<512x256xbf16>
    %4 = vector.broadcast %0 : vector<1x256xbf16> to vector<512x256xbf16>
    %5 = arith.mulf %3, %4 : vector<512x256xbf16>
    %c0_3 = arith.constant 0 : index
    %c0_4 = arith.constant 0 : index
    %6 = vector.load %arg3[%c0_3, %c0_4] : memref<1x256xbf16, #tpu.memory_space<vmem>>, vector<1x256xbf16>
    %7 = vector.broadcast %6 : vector<1x256xbf16> to vector<512x256xbf16>
    %8 = arith.addf %5, %7 : vector<512x256xbf16>
    %cst = arith.constant 0.000000e+00 : bf16
    %9 = vector.broadcast %cst : bf16 to vector<512x256xbf16>
    %10 = arith.maximumf %8, %9 : vector<512x256xbf16>
    %c0_5 = arith.constant 0 : index
    %c0_6 = arith.constant 0 : index
    %11 = vector.load %arg4[%c0_5, %c0_6] : memref<256x256xbf16, #tpu.memory_space<vmem>>, vector<256x256xbf16>
    %cst_7 = arith.constant dense<0.000000e+00> : vector<512x256xf32>
    %12 = tpu.matmul %10, %11, %cst_7 {dimension_numbers = #tpu.dot_dimension_numbers<[1], [0], [0], [1], [0, 0, 1, 1], [], []>} : vector<512x256xbf16>, vector<256x256xbf16>, vector<512x256xf32> -> vector<512x256xf32>
    %c0_8 = arith.constant 0 : index
    %c0_9 = arith.constant 0 : index
    %13 = vector.load %arg5[%c0_8, %c0_9] : memref<1x256xf32, #tpu.memory_space<vmem>>, vector<1x256xf32>
    %14 = vector.broadcast %13 : vector<1x256xf32> to vector<512x256xf32>
    %15 = arith.addf %12, %14 : vector<512x256xf32>
    %cst_10 = arith.constant 0.000000e+00 : f32
    %16 = vector.broadcast %cst_10 : f32 to vector<512x256xf32>
    %17 = arith.maximumf %15, %16 : vector<512x256xf32>
    %18 = arith.truncf %17 : vector<512x256xf32> to vector<512x256xbf16>
    %c0_11 = arith.constant 0 : index
    %c0_12 = arith.constant 0 : index
    %19 = vector.load %arg6[%c0_11, %c0_12] : memref<512x256xbf16, #tpu.memory_space<vmem>>, vector<512x256xbf16>
    tpu.vector_store %arg6[%c0_11, %c0_12], %18 {strides = array<i32>} : memref<512x256xbf16, #tpu.memory_space<vmem>>, vector<512x256xbf16>,
    return
  }
  func.func @transform_0(%arg0: i32) -> (i32, i32) {
    %c0_i32 = arith.constant 0 : i32
    %c0_i32_0 = arith.constant 0 : i32
    return %arg0, %c0_i32 : i32, i32
  }
  func.func @transform_1(%arg0: i32) -> (i32, i32) {
    %c0_i32 = arith.constant 0 : i32
    %c0_i32_0 = arith.constant 0 : i32
    %c0_i32_1 = arith.constant 0 : i32
    return %c0_i32, %c0_i32_0 : i32, i32
  }
  func.func @transform_2(%arg0: i32) -> (i32, i32) {
    %c0_i32 = arith.constant 0 : i32
    %c0_i32_0 = arith.constant 0 : i32
    %c0_i32_1 = arith.constant 0 : i32
    return %c0_i32, %c0_i32_0 : i32, i32
  }
  func.func @transform_3(%arg0: i32) -> (i32, i32) {
    %c0_i32 = arith.constant 0 : i32
    %c0_i32_0 = arith.constant 0 : i32
    %c0_i32_1 = arith.constant 0 : i32
    return %c0_i32, %c0_i32_0 : i32, i32
  }
  func.func @transform_4(%arg0: i32) -> (i32, i32) {
    %c0_i32 = arith.constant 0 : i32
    %c0_i32_0 = arith.constant 0 : i32
    %c0_i32_1 = arith.constant 0 : i32
    return %c0_i32, %c0_i32_0 : i32, i32
  }
  func.func @transform_5(%arg0: i32) -> (i32, i32) {
    %c0_i32 = arith.constant 0 : i32
    %c0_i32_0 = arith.constant 0 : i32
    return %arg0, %c0_i32 : i32, i32
  }
}

</mosaic_0001>

<bundles_post_ra>
// kernel: _lambda_.1
= control target key start
LH: loop header
LB: loop body
LE: loop exit
PB: predicated region body
PF: predicated region fallthrough
CT: control target
= control target key end

     0   :  { %s3270_s18 = smov 0   ;;  %s4097_s0 = inlined_call_operand.vmem [shape: f32[1024,1], index: 0, kind: input, shape index: {}]   ;;  %s4098_s1 = inlined_call_operand.vmem [shape: bf16[1,256], index: 1, kind: input, shape index: {}]   ;;  %s4099_s2 = inlined_call_operand.vmem [shape: bf16[1,256], index: 2, kind: input, shape index: {}]   ;;  %s4100_s3 = inlined_call_operand.vmem [shape: bf16[256,256], index: 3, kind: input, shape index: {}]   ;;  %s4101_s4 = inlined_call_operand.vmem [shape: f32[1,256], index: 4, kind: input, shape index: {}]   ;;  %s4102_s5 = inlined_call_operand.vmem [shape: bf16[1024,256], index: 5, kind: output, shape index: {}]  }
   0x1 LB: > { %s3044_s19 = sadd.s32 4294967295, %s3236_s18   ;;  %p3048_p0 = scmp.ge.s32.totalorder %s3236_s18, 1  ;;  %s3236_s18 = sphi %s3270_s18, %s15_s18  }
   0x2   : > { %p188_p1 = scmp.lt.s32.totalorder %s3236_s18, 3 }
   0x4   : > { %p189_p2 = pnand %p3048_p0, %p188_p1 }
   0x5   : > { %s3049_s20 = sshll.u32 (!%p189_p2), %s3044_s19, 6 }
   0x6   : > { %192 = sbr.rel (%p189_p2) target bundleno = 803 (0x323), region = 40  ;;  %p218_p3 = scmp.lt.s32.totalorder (!%p189_p2), %s3049_s20, 127 }
   0xb   : > { %v3238_v0 = vmov 0   ;;  %s4104_s20 = smov (!%p218_p3, %s3049_s20), 127  ;;  %v230_v51 = vld [vmem:[%s4098_s1] sm:$0x3] }
   0xc   : > { %3229 = vset.pattern.permute.xlu2 %v3238_v0  ;;  %3228 = vset.pattern.permute.xlu1 %v3238_v0  ;;  %s3050_s21 = sshll.u32 %s4104_s20, 3  ;;  %936 = vst [vmem:[#allocation1] ss:$9 sm:$0xff] %v230_v51  ;;  %v3152_v51 = vld [vmem:[%s4100_s3 + $0xc0] sm:$0xf] }
   0xd   : > { %3227 = vset.pattern.permute.xlu0 %v3238_v0  ;;  %s3286_s24 = scalar_lea.vmem %s4097_s0, %s3050_s21  ;;  %s3687_s9 = scalar_lea.vmem %s4102_s5, %s3050_s21 }
   0xe   : > { %v235_v1 = vld [vmem:[%s3286_s24 + $0x20] sm:$0xff]  ;;  %v233_v2 = vld [vmem:[%s3286_s24 + $0x10] sm:$0xff]  ;;  %v236_v7 = vld [vmem:[%s3286_s24 + $0x28] sm:$0xff] }
   0xf   : > { %v231_v3 = vld [vmem:[%s3286_s24] sm:$0xff]  ;;  %v299_v4 = vpack.c.bf16 %v235_v1, %v235_v1  ;;  %v297_v5 = vpack.c.bf16 %v233_v2, %v233_v2  ;;  %v234_v8 = vld [vmem:[%s3286_s24 + $0x18] sm:$0xff]  ;;  %v232_v9 = vld [vmem:[%s3286_s24 + $0x8] sm:$0xff]  ;;  %v300_v10 = vpack.c.bf16 %v236_v7, %v236_v7 }
  0x10   : > { %v295_v6 = vpack.c.bf16 %v231_v3, %v231_v3  ;;  %v298_v11 = vpack.c.bf16 %v234_v8, %v234_v8  ;;  %v296_v12 = vpack.c.bf16 %v232_v9, %v232_v9  ;;  %v239_v13 = vld [vmem:[%s3286_s24 + $0x40] sm:$0xff]  ;;  %v238_v14 = vld [vmem:[%s3286_s24 + $0x38] sm:$0xff]  ;;  %v237_v15 = vld [vmem:[%s3286_s24 + $0x30] sm:$0xff] }
  0x11   : > { %397 = vperm.xlu2 %3229, %v299_v4   ;;  %379 = vperm.xlu1 %3228, %v297_v5   ;;  %v303_v16 = vpack.c.bf16 %v239_v13, %v239_v13  ;;  %v302_v17 = vpack.c.bf16 %v238_v14, %v238_v14  ;;  %v301_v18 = vpack.c.bf16 %v237_v15, %v237_v15  ;;  %v242_v19 = vld [vmem:[%s3286_s24 + $0x58] sm:$0xff]  ;;  %v241_v20 = vld [vmem:[%s3286_s24 + $0x50] sm:$0xff]  ;;  %v240_v21 = vld [vmem:[%s3286_s24 + $0x48] sm:$0xff] }
  0x12   : > { %361 = vperm.xlu0 %3227, %v295_v6   ;;  %v306_v22 = vpack.c.bf16 %v242_v19, %v242_v19  ;;  %v305_v23 = vpack.c.bf16 %v241_v20, %v241_v20  ;;  %v304_v24 = vpack.c.bf16 %v240_v21, %v240_v21  ;;  %v245_v25 = vld [vmem:[%s3286_s24 + $0x70] sm:$0xff]  ;;  %v244_v26 = vld [vmem:[%s3286_s24 + $0x68] sm:$0xff]  ;;  %v243_v27 = vld [vmem:[%s3286_s24 + $0x60] sm:$0xff] }
  0x13   : > { %v309_v28 = vpack.c.bf16 %v245_v25, %v245_v25  ;;  %v308_v29 = vpack.c.bf16 %v244_v26, %v244_v26  ;;  %v307_v30 = vpack.c.bf16 %v243_v27, %v243_v27  ;;  %v248_v31 = vld [vmem:[%s3286_s24 + $0x88] sm:$0xff]  ;;  %v247_v32 = vld [vmem:[%s3286_s24 + $0x80] sm:$0xff]  ;;  %v246_v33 = vld [vmem:[%s3286_s24 + $0x78] sm:$0xff] }
  0x14   : > { %v312_v34 = vpack.c.bf16 %v248_v31, %v248_v31  ;;  %v311_v35 = vpack.c.bf16 %v247_v32, %v247_v32  ;;  %v310_v36 = vpack.c.bf16 %v246_v33, %v246_v33  ;;  %v251_v37 = vld [vmem:[%s3286_s24 + $0xa0] sm:$0xff]  ;;  %v250_v38 = vld [vmem:[%s3286_s24 + $0x98] sm:$0xff]  ;;  %v249_v39 = vld [vmem:[%s3286_s24 + $0x90] sm:$0xff] }
  0x15   : > { %v315_v40 = vpack.c.bf16 %v251_v37, %v251_v37  ;;  %v314_v41 = vpack.c.bf16 %v250_v38, %v250_v38  ;;  %v313_v42 = vpack.c.bf16 %v249_v39, %v249_v39  ;;  %v254_v43 = vld [vmem:[%s3286_s24 + $0xb8] sm:$0xff]  ;;  %v253_v44 = vld [vmem:[%s3286_s24 + $0xb0] sm:$0xff]  ;;  %v252_v45 = vld [vmem:[%s3286_s24 + $0xa8] sm:$0xff] }
  0x16   : > { %v318_v46 = vpack.c.bf16 %v254_v43, %v254_v43  ;;  %v317_v47 = vpack.c.bf16 %v253_v44, %v253_v44  ;;  %v316_v48 = vpack.c.bf16 %v252_v45, %v252_v45  ;;  %v257_v49 = vld [vmem:[%s3286_s24 + $0xd0] sm:$0xff]  ;;  %v256_v50 = vld [vmem:[%s3286_s24 + $0xc8] sm:$0xff]  ;;  %v255_v52 = vld [vmem:[%s3286_s24 + $0xc0] sm:$0xff] }
  0x17   : > { %v321_v53 = vpack.c.bf16 %v257_v49, %v257_v49  ;;  %v320_v54 = vpack.c.bf16 %v256_v50, %v256_v50  ;;  %v319_v55 = vpack.c.bf16 %v255_v52, %v255_v52  ;;  %v260_v56 = vld [vmem:[%s3286_s24 + $0xe8] sm:$0xff]  ;;  %v259_v57 = vld [vmem:[%s3286_s24 + $0xe0] sm:$0xff]  ;;  %v258_v58 = vld [vmem:[%s3286_s24 + $0xd8] sm:$0xff] }
  0x18   : > { %v324_v59 = vpack.c.bf16 %v260_v56, %v260_v56  ;;  %v323_v60 = vpack.c.bf16 %v259_v57, %v259_v57  ;;  %v322_v61 = vpack.c.bf16 %v258_v58, %v258_v58  ;;  %v263_v62 = vld [vmem:[%s3286_s24 + $0x100] sm:$0xff]  ;;  %v262_v63 = vld [vmem:[%s3286_s24 + $0xf8] sm:$0xff]  ;;  %v261_v0 = vld [vmem:[%s3286_s24 + $0xf0] sm:$0xff] }
  0x19   : > { %406 = vperm.xlu2 %3229, %v300_v10   ;;  %388 = vperm.xlu1 %3228, %v298_v11   ;;  %v3112_v1 = vld [vmem:[%s4100_s3 + $0x70] sm:$0xf]  ;;  %v3200_v2 = vld [vmem:[%s4100_s3 + $0x74] sm:$0xf0]  ;;  %v3199_v6 = vld [vmem:[%s4100_s3 + $0x74] sm:$0xf]  ;;  %v327_v8 = vpack.c.bf16 %v263_v62, %v263_v62  ;;  %v326_v9 = vpack.c.bf16 %v262_v63, %v262_v63  ;;  %v325_v14 = vpack.c.bf16 %v261_v0, %v261_v0 }
  0x1a   : > { %370 = vperm.xlu0 %3227, %v296_v12   ;;  %v3176_v3 = vld [vmem:[%s4100_s3 + $0xf0] sm:$0xf]  ;;  %v3113_v4 = vor.u32 %v3200_v2, %v3112_v1  ;;  %v3216_v5 = vld [vmem:[%s4100_s3 + $0xf4] sm:$0xf0]  ;;  %v3114_v7 = vld [vmem:[%s4100_s3 + $0x78] sm:$0xf0] }
  0x1b   : > { %v3177_v10 = vor.u32 %v3216_v5, %v3176_v3  ;;  %v3117_v11 = vor.u32 %v3199_v6, %v3114_v7  ;;  %v3215_v12 = vld [vmem:[%s4100_s3 + $0xf4] sm:$0xf]  ;;  %v3178_v13 = vld [vmem:[%s4100_s3 + $0xf8] sm:$0xf0]  ;;  %v264_v25 = vld [vmem:[%s3286_s24 + $0x108] sm:$0xff] }
  0x1c   : > { %2054 = vmatpush.bf16.msra.mxu0 %v3113_v4  ;;  %v3181_v15 = vor.u32 %v3215_v12, %v3178_v13  ;;  %v266_v19 = vld [vmem:[%s3286_s24 + $0x118] sm:$0xff]  ;;  %v265_v20 = vld [vmem:[%s3286_s24 + $0x110] sm:$0xff]  ;;  %v1203_v33 = vld [vmem:[%s4099_s2] sm:$0x3] }
  0x1d   : > { %2223 = vmatpush.bf16.msra.mxu1 %v3177_v10  ;;  %2392 = vmatpush.bf16.msra.mxu2 %v3117_v11  ;;  %v3377_v31 = vld [vmem:[#allocation1 + $0x9] sm:$0xff]  ;;  %v3212_v38 = vld [vmem:[%s4100_s3 + $0xd4] sm:$0xf0]  ;;  %v3195_v39 = vld [vmem:[%s4100_s3 + $0x54] sm:$0xf] }
  0x1e   : > { %2561 = vmatpush.bf16.msra.mxu3 %v3181_v15  ;;  %v3211_v45 = vld [vmem:[%s4100_s3 + $0xd4] sm:$0xf]  ;;  %v3088_v49 = vld [vmem:[%s4100_s3 + $0x40] sm:$0xf]  ;;  %v3194_v50 = vld [vmem:[%s4100_s3 + $0x44] sm:$0xf0] }
  0x1f   : > { %v3089_v52 = vor.u32 %v3194_v50, %v3088_v49  ;;  %v3209_v58 = vld [vmem:[%s4100_s3 + $0xc4] sm:$0xf]  ;;  %v3080_v0 = vld [vmem:[%s4100_s3 + $0x30] sm:$0xf]  ;;  %v3192_v1 = vld [vmem:[%s4100_s3 + $0x34] sm:$0xf0] }
  0x20   : > { %v267_v62 = vld [vmem:[%s3286_s24 + $0x120] sm:$0xff]  ;;  %v3144_v2 = vld [vmem:[%s4100_s3 + $0xb0] sm:$0xf]  ;;  %v3081_v3 = vor.u32 %v3192_v1, %v3080_v0  ;;  %v3208_v4 = vld [vmem:[%s4100_s3 + $0xb4] sm:$0xf0]  ;;  %v942_v1 = vpack.i.b16 %v3377_v31, %v3377_v31 }
  0x21   : > { %433 = vperm.xlu2 %3229, %v303_v16   ;;  %424 = vperm.xlu1 %3228, %v302_v17   ;;  %v3104_v16 = vld [vmem:[%s4100_s3 + $0x60] sm:$0xf]  ;;  %v3198_v17 = vld [vmem:[%s4100_s3 + $0x64] sm:$0xf0]  ;;  %v3191_v5 = vld [vmem:[%s4100_s3 + $0x34] sm:$0xf]  ;;  %v331_v13 = vpack.c.bf16 %v267_v62, %v267_v62 }
  0x22   : > { %415 = vperm.xlu0 %3227, %v301_v18   ;;  %v3168_v18 = vld [vmem:[%s4100_s3 + $0xe0] sm:$0xf]  ;;  %v3105_v21 = vor.u32 %v3198_v17, %v3104_v16  ;;  %v3082_v6 = vld [vmem:[%s4100_s3 + $0x38] sm:$0xf0]  ;;  %v3207_v11 = vld [vmem:[%s4100_s3 + $0xb4] sm:$0xf] }
  0x23   : > { %v3085_v10 = vor.u32 %v3191_v5, %v3082_v6  ;;  %v3146_v12 = vld [vmem:[%s4100_s3 + $0xb8] sm:$0xf0]  ;;  %v3072_v15 = vld [vmem:[%s4100_s3 + $0x20] sm:$0xf]  ;;  %v3190_v16 = vld [vmem:[%s4100_s3 + $0x24] sm:$0xf0] }
  0x24   : > { %2055 = vmatpush.bf16.msra.mxu0 %v3105_v21  ;;  %v3136_v17 = vld [vmem:[%s4100_s3 + $0xa0] sm:$0xf]  ;;  %v3074_v21 = vld [vmem:[%s4100_s3 + $0x28] sm:$0xf0] }
  0x25   : > { %v3120_v49 = vld [vmem:[%s4100_s3 + $0x80] sm:$0xf] }
  0x29   : > { %460 = vperm.xlu2 %3229, %v306_v22   ;;  %451 = vperm.xlu1 %3228, %v305_v23   ;;  %v3214_v22 = vld [vmem:[%s4100_s3 + $0xe4] sm:$0xf0]  ;;  %v3197_v23 = vld [vmem:[%s4100_s3 + $0x64] sm:$0xf] }
  0x2a   : > { %442 = vperm.xlu0 %3227, %v304_v24   ;;  %v3106_v24 = vld [vmem:[%s4100_s3 + $0x68] sm:$0xf0]  ;;  %v3169_v26 = vor.u32 %v3214_v22, %v3168_v18  ;;  %v3073_v18 = vor.u32 %v3190_v16, %v3072_v15 }
  0x2b   : > { %v3109_v27 = vor.u32 %v3197_v23, %v3106_v24  ;;  %v3205_v24 = vld [vmem:[%s4100_s3 + $0xa4] sm:$0xf] }
  0x2c   : > { %2224 = vmatpush.bf16.msra.mxu1 %v3169_v26  ;;  %v272_v26 = vld [vmem:[%s3286_s24 + $0x148] sm:$0xff] }
  0x2d   : > { %2393 = vmatpush.bf16.msra.mxu2 %v3109_v27  ;;  %v271_v27 = vld [vmem:[%s3286_s24 + $0x140] sm:$0xff] }
  0x31   : > { %487 = vperm.xlu2 %3229, %v309_v28   ;;  %478 = vperm.xlu1 %3228, %v308_v29   ;;  %v3213_v28 = vld [vmem:[%s4100_s3 + $0xe4] sm:$0xf]  ;;  %v3170_v29 = vld [vmem:[%s4100_s3 + $0xe8] sm:$0xf0] }
  0x32   : > { %469 = vperm.xlu0 %3227, %v307_v30   ;;  %v3375_v30 = vld [vmem:[#allocation1] sm:$0xff]  ;;  %v3173_v32 = vor.u32 %v3213_v28, %v3170_v29  ;;  %v270_v28 = vld [vmem:[%s3286_s24 + $0x138] sm:$0xff] }
  0x33   : > { %1205 = vst [vmem:[#allocation1] ss:$9 sm:$0xff] %v1203_v33  ;;  %v3188_v33 = vld [vmem:[%s4100_s3 + $0x14] sm:$0xf0]  ;;  %v939_v62 = vpack.i.b16 %v3375_v30, %v3375_v30  ;;  %v276_v30 = vld [vmem:[%s3286_s24 + $0x168] sm:$0xff] }
  0x34   : > { %2562 = vmatpush.bf16.msra.mxu3 %v3173_v32  ;;  %v3064_v32 = vld [vmem:[%s4100_s3 + $0x10] sm:$0xf] }
  0x35   : > { %v941_v5 = vperm.slane %v939_v62, 0 }
  0x39   : > { %514 = vperm.xlu2 %3229, %v312_v34   ;;  %505 = vperm.xlu1 %3228, %v311_v35   ;;  %v3096_v34 = vld [vmem:[%s4100_s3 + $0x50] sm:$0xf]  ;;  %v3196_v35 = vld [vmem:[%s4100_s3 + $0x54] sm:$0xf0] }
  0x3a   : > { %496 = vperm.xlu0 %3227, %v310_v36   ;;  %v3160_v36 = vld [vmem:[%s4100_s3 + $0xd0] sm:$0xf]  ;;  %v3097_v37 = vor.u32 %v3196_v35, %v3096_v34  ;;  %v3065_v35 = vor.u32 %v3188_v33, %v3064_v32  ;;  %v1206_v16 = vld [vmem:[#allocation1] sm:$0xff] }
  0x3b   : > { %v3161_v43 = vor.u32 %v3212_v38, %v3160_v36  ;;  %v3128_v34 = vld [vmem:[%s4100_s3 + $0x90] sm:$0xf]  ;;  %v3204_v36 = vld [vmem:[%s4100_s3 + $0x94] sm:$0xf0]  ;;  %v3066_v38 = vld [vmem:[%s4100_s3 + $0x18] sm:$0xf0] }
  0x3c   : > { %2056 = vmatpush.bf16.msra.mxu0 %v3097_v37  ;;  %v3187_v37 = vld [vmem:[%s4100_s3 + $0x14] sm:$0xf] }
  0x3d   : > { %2225 = vmatpush.bf16.msra.mxu1 %v3161_v43  ;;  %v3203_v43 = vld [vmem:[%s4100_s3 + $0x94] sm:$0xf] }
  0x40   : > { %2057 = vmatpush.bf16.msra.mxu0 %v3089_v52  ;;  %v3185_v52 = vld [vmem:[%s4100_s3 + $0x4] sm:$0xf] }
  0x41   : > { %541 = vperm.xlu2 %3229, %v315_v40   ;;  %532 = vperm.xlu1 %3228, %v314_v41   ;;  %v3098_v40 = vld [vmem:[%s4100_s3 + $0x58] sm:$0xf0]  ;;  %v330_v41 = vpack.c.bf16 %v266_v19, %v266_v19  ;;  %v3206_v19 = vld [vmem:[%s4100_s3 + $0xa4] sm:$0xf0] }
  0x42   : > { %523 = vperm.xlu0 %3227, %v313_v42   ;;  %v329_v42 = vpack.c.bf16 %v265_v20, %v265_v20  ;;  %v3101_v44 = vor.u32 %v3195_v39, %v3098_v40  ;;  %v3189_v20 = vld [vmem:[%s4100_s3 + $0x24] sm:$0xf]  ;;  %v3137_v22 = vor.u32 %v3206_v19, %v3136_v17  ;;  %v336_v39 = vpack.c.bf16 %v272_v26, %v272_v26  ;;  %v1207_v17 = vld [vmem:[#allocation1 + $0x9] sm:$0xff] }
  0x43   : > { %v3077_v23 = vor.u32 %v3189_v20, %v3074_v21  ;;  %v335_v40 = vpack.c.bf16 %v271_v27, %v271_v27  ;;  %v1208_v20 = vpack.i.b16 %v1206_v16, %v1206_v16  ;;  %v1211_v21 = vpack.i.b16 %v1207_v17, %v1207_v17  ;;  %v279_v26 = vld [vmem:[%s3286_s24 + $0x180] sm:$0xff] }
  0x44   : > { %2394 = vmatpush.bf16.msra.mxu2 %v3101_v44  ;;  %2058 = vmatpush.bf16.msra.mxu0 %v3081_v3  ;;  %v3130_v44 = vld [vmem:[%s4100_s3 + $0x98] sm:$0xf0] }
  0x48   : > { %2059 = vmatpush.bf16.msra.mxu0 %v3073_v18  ;;  %v340_v18 = vpack.c.bf16 %v276_v30, %v276_v30 }
  0x49   : > { %568 = vperm.xlu2 %3229, %v318_v46   ;;  %559 = vperm.xlu1 %3228, %v317_v47   ;;  %v3162_v46 = vld [vmem:[%s4100_s3 + $0xd8] sm:$0xf0]  ;;  %v328_v47 = vpack.c.bf16 %v264_v25, %v264_v25  ;;  %v3138_v25 = vld [vmem:[%s4100_s3 + $0xa8] sm:$0xf0] }
  0x4a   : > { %550 = vperm.xlu0 %3227, %v316_v48   ;;  %v3165_v48 = vor.u32 %v3211_v45, %v3162_v46  ;;  %v3141_v29 = vor.u32 %v3205_v24, %v3138_v25  ;;  %v334_v45 = vpack.c.bf16 %v270_v28, %v270_v28  ;;  %v3133_v46 = vor.u32 %v3203_v43, %v3130_v44  ;;  %v281_v24 = vld [vmem:[%s3286_s24 + $0x190] sm:$0xff]  ;;  %v280_v25 = vld [vmem:[%s3286_s24 + $0x188] sm:$0xff] }
  0x4b   : > { %v1210_v28 = vperm.slane %v1208_v20, 0 }
  0x4c   : > { %2563 = vmatpush.bf16.msra.mxu3 %v3165_v48  ;;  %2060 = vmatpush.bf16.msra.mxu0 %v3065_v35  ;;  %v3186_v48 = vld [vmem:[%s4100_s3 + $0x4] sm:$0xf0]  ;;  %v344_v35 = vpack.c.bf16 %v280_v25, %v280_v25 }
  0x51   : > { %595 = vperm.xlu2 %3229, %v321_v53   ;;  %586 = vperm.xlu1 %3228, %v320_v54   ;;  %v3210_v53 = vld [vmem:[%s4100_s3 + $0xc4] sm:$0xf0]  ;;  %v3193_v54 = vld [vmem:[%s4100_s3 + $0x44] sm:$0xf] }
  0x52   : > { %577 = vperm.xlu0 %3227, %v319_v55   ;;  %v3090_v55 = vld [vmem:[%s4100_s3 + $0x48] sm:$0xf0]  ;;  %v3153_v56 = vor.u32 %v3210_v53, %v3152_v51  ;;  %v3202_v51 = vld [vmem:[%s4100_s3 + $0x84] sm:$0xf0] }
  0x53   : > { %v3093_v57 = vor.u32 %v3193_v54, %v3090_v55  ;;  %v3058_v53 = vld [vmem:[%s4100_s3 + $0x8] sm:$0xf0]  ;;  %v3121_v54 = vor.u32 %v3202_v51, %v3120_v49 }
  0x54   : > { %2226 = vmatpush.bf16.msra.mxu1 %v3153_v56  ;;  %v3061_v55 = vor.u32 %v3185_v52, %v3058_v53  ;;  %v3201_v56 = vld [vmem:[%s4100_s3 + $0x84] sm:$0xf]  ;;  %v282_v53 = vld [vmem:[%s3286_s24 + $0x198] sm:$0xff] }
  0x55   : > { %2395 = vmatpush.bf16.msra.mxu2 %v3093_v57  ;;  %v3122_v57 = vld [vmem:[%s4100_s3 + $0x88] sm:$0xf0]  ;;  %v346_v62 = vpack.c.bf16 %v282_v53, %v282_v53 }
  0x59   : > { %622 = vperm.xlu2 %3229, %v324_v59   ;;  %613 = vperm.xlu1 %3228, %v323_v60   ;;  %v3154_v59 = vld [vmem:[%s4100_s3 + $0xc8] sm:$0xf0]  ;;  %v269_v60 = vld [vmem:[%s3286_s24 + $0x130] sm:$0xff] }
  0x5a   : > { %604 = vperm.xlu0 %3227, %v322_v61   ;;  %v268_v61 = vld [vmem:[%s3286_s24 + $0x128] sm:$0xff]  ;;  %v3157_v63 = vor.u32 %v3209_v58, %v3154_v59  ;;  %v333_v7 = vpack.c.bf16 %v269_v60, %v269_v60  ;;  %2396 = vmatpush.bf16.msra.mxu2 %v3085_v10  ;;  %v275_v58 = vld [vmem:[%s3286_s24 + $0x160] sm:$0xff]  ;;  %v274_v59 = vld [vmem:[%s3286_s24 + $0x158] sm:$0xff]  ;;  %v3125_v60 = vor.u32 %v3201_v56, %v3122_v57  ;;  %v3544_v10 = vunpack.c.l.bf16 %v941_v5 }
  0x5b   : > { %v338_v3 = vpack.c.bf16 %v274_v59, %v274_v59 }
  0x5c   : > { %2564 = vmatpush.bf16.msra.mxu3 %v3157_v63  ;;  %v3239_v63 = vmov 839922192  }
  0x5d   : > { %v365_v0 = vunpack.c.l.s4 %v3239_v63 }
  0x5e   : > { %2397 = vmatpush.bf16.msra.mxu2 %v3077_v23 }
  0x5f   : > { %v3539_v6 = vunpack.c.0.s8 %v365_v0 }
  0x61   : > { %649 = vperm.xlu2 %3229, %v327_v8   ;;  %640 = vperm.xlu1 %3228, %v326_v9   ;;  %v332_v8 = vpack.c.bf16 %v268_v61, %v268_v61  ;;  %v3145_v9 = vor.u32 %v3208_v4, %v3144_v2  ;;  %v273_v61 = vld [vmem:[%s3286_s24 + $0x150] sm:$0xff]  ;;  %v339_v2 = vpack.c.bf16 %v275_v58, %v275_v58 }
  0x62   : > { %631 = vperm.xlu0 %3227, %v325_v14   ;;  %v3149_v14 = vor.u32 %v3207_v11, %v3146_v12  ;;  %v337_v4 = vpack.c.bf16 %v273_v61, %v273_v61 }
  0x63   : > { %2227 = vmatpush.bf16.msra.mxu1 %v3145_v9  ;;  %v277_v9 = vld [vmem:[%s3286_s24 + $0x170] sm:$0xff] }
  0x64   : > { %2565 = vmatpush.bf16.msra.mxu3 %v3149_v14  ;;  %v341_v15 = vpack.c.bf16 %v277_v9, %v277_v9  ;;  %v286_v9 = vld [vmem:[%s3286_s24 + $0x1b8] sm:$0xff] }
  0x67   : > { %2228 = vmatpush.bf16.msra.mxu1 %v3137_v22 }
  0x68   : > { %2566 = vmatpush.bf16.msra.mxu3 %v3141_v29  ;;  %v1213_v29 = vperm.slane %v1211_v21, 0 }
  0x69   : > { %676 = vperm.xlu2 %3229, %v330_v41   ;;  %667 = vperm.xlu1 %3228, %v329_v42   ;;  %v3129_v41 = vor.u32 %v3204_v36, %v3128_v34  ;;  %v3069_v42 = vor.u32 %v3187_v37, %v3066_v38  ;;  %v345_v34 = vpack.c.bf16 %v281_v24, %v281_v24 }
  0x6a   : > { %658 = vperm.xlu0 %3227, %v328_v47   ;;  %v3056_v47 = vld [vmem:[%s4100_s3] sm:$0xf]  ;;  %v343_v38 = vpack.c.bf16 %v279_v26, %v279_v26 }
  0x6b   : > { %2229 = vmatpush.bf16.msra.mxu1 %v3129_v41  ;;  %2398 = vmatpush.bf16.msra.mxu2 %v3069_v42  ;;  %v3057_v50 = vor.u32 %v3186_v48, %v3056_v47  ;;  %v3557_v41 = vunpack.c.l.bf16 %v1210_v28  ;;  %v3559_v42 = vunpack.c.l.bf16 %v1213_v29  ;;  %v289_v28 = vld [vmem:[%s3286_s24 + $0x1d0] sm:$0xff]  ;;  %v288_v29 = vld [vmem:[%s3286_s24 + $0x1c8] sm:$0xff] }
  0x6c   : > { %2567 = vmatpush.bf16.msra.mxu3 %v3133_v46  ;;  %v283_v46 = vld [vmem:[%s3286_s24 + $0x1a0] sm:$0xff] }
  0x6d   : > { %2061 = vmatpush.bf16.msra.mxu0 %v3057_v50  ;;  %v398_v50 = vpop.permute.xlu2 %397 }
  0x6f   : > { %2230 = vmatpush.bf16.msra.mxu1 %v3121_v54  ;;  %2399 = vmatpush.bf16.msra.mxu2 %v3061_v55  ;;  %v347_v55 = vpack.c.bf16 %v283_v46, %v283_v46 }
  0x70   : > { %2568 = vmatpush.bf16.msra.mxu3 %v3125_v60 }
  0x71   : > { %703 = vperm.xlu2 %3229, %v333_v7   ;;  %694 = vperm.xlu1 %3228, %v332_v8   ;;  %v944_v7 = vperm.slane %v942_v1, 0  ;;  %v278_v8 = vld [vmem:[%s3286_s24 + $0x178] sm:$0xff] }
  0x72   : > { %685 = vperm.xlu0 %3227, %v331_v13   ;;  %v342_v14 = vpack.c.bf16 %v278_v8, %v278_v8  ;;  %v287_v8 = vld [vmem:[%s3286_s24 + $0x1c0] sm:$0xff] }
  0x73   : > { %v3546_v13 = vunpack.c.l.bf16 %v944_v7  ;;  %v351_v17 = vpack.c.bf16 %v287_v8, %v287_v8 }
  0x75   : > { %v407_v16 = vpop.permute.xlu2 %406 }
  0x79   : > { %730 = vperm.xlu2 %3229, %v336_v39   ;;  %721 = vperm.xlu1 %3228, %v335_v40  }
  0x7a   : > { %712 = vperm.xlu0 %3227, %v334_v45   ;;  %v284_v45 = vld [vmem:[%s3286_s24 + $0x1a8] sm:$0xff] }
  0x7b   : > { %v348_v54 = vpack.c.bf16 %v284_v45, %v284_v45 }
  0x81   : > { %757 = vperm.xlu2 %3229, %v339_v2   ;;  %748 = vperm.xlu1 %3228, %v338_v3  }
  0x82   : > { %739 = vperm.xlu0 %3227, %v337_v4  }
  0x83   : > { %v380_v11 = vpop.permute.xlu1 %379 }
  0x84   : > { %v362_v12 = vpop.permute.xlu0 %361  ;;  %v385_v36 = vperm.slane %v380_v11, %v3539_v6 }
  0x85   : > { %v367_v31 = vperm.slane %v362_v12, %v3539_v6 }
  0x86   : > { %v947_v49 = vunpack.c.l.bf16 %v385_v36 }
  0x87   : > { %v945_v19 = vunpack.c.l.bf16 %v367_v31 }
  0x88   : > { %v1015_v60 = vmul.f32 %v3544_v10, %v947_v49  ;;  %v1016_v61 = vmul.f32 %v3546_v13, %v947_v49 }
  0x89   : > { %v1011_v22 = vmul.f32 %v3544_v10, %v945_v19  ;;  %v1012_v23 = vmul.f32 %v3546_v13, %v945_v19  ;;  %784 = vperm.xlu2 %3229, %v342_v14   ;;  %775 = vperm.xlu1 %3228, %v341_v15   ;;  %v285_v14 = vld [vmem:[%s3286_s24 + $0x1b0] sm:$0xff]  ;;  %v403_v15 = vperm.slane %v398_v50, %v3539_v6 }
  0x8a   : > { %766 = vperm.xlu0 %3227, %v340_v18   ;;  %v1141_v30 = vpack.c.bf16 %v1016_v61, %v1015_v60  ;;  %v350_v18 = vpack.c.bf16 %v286_v9, %v286_v9  ;;  %v412_v19 = vperm.slane %v407_v16, %v3539_v6  ;;  %v349_v20 = vpack.c.bf16 %v285_v14, %v285_v14  ;;  %v293_v50 = vld [vmem:[%s3286_s24 + $0x1f0] sm:$0xff] }
  0x8b   : > { %v1139_v32 = vpack.c.bf16 %v1012_v23, %v1011_v22  ;;  %v389_v37 = vpop.permute.xlu1 %388  ;;  %v949_v25 = vunpack.c.l.bf16 %v403_v15 }
  0x8c   : > { %v371_v27 = vpop.permute.xlu0 %370  ;;  %v394_v39 = vperm.slane %v389_v37, %v3539_v6  ;;  %v1218_v21 = vunpack.c.l.bf16 %v1141_v30  ;;  %v1219_v23 = vunpack.c.h.bf16 %v1141_v30  ;;  %v950_v26 = vunpack.c.l.bf16 %v412_v19 }
  0x8d   : > { %v376_v33 = vperm.slane %v371_v27, %v3539_v6  ;;  %v1214_v47 = vunpack.c.l.bf16 %v1139_v32  ;;  %v1215_v48 = vunpack.c.h.bf16 %v1139_v32  ;;  %v290_v27 = vld [vmem:[%s3286_s24 + $0x1d8] sm:$0xff]  ;;  %v1019_v36 = vmul.f32 %v3544_v10, %v949_v25 }
  0x8e   : > { %v948_v51 = vunpack.c.l.bf16 %v394_v39  ;;  %v1348_v32 = vadd.f32 %v3557_v41, %v1218_v21  ;;  %v354_v37 = vpack.c.bf16 %v290_v27, %v290_v27  ;;  %v1020_v39 = vmul.f32 %v3546_v13, %v949_v25  ;;  %v434_v25 = vpop.permute.xlu2 %433 }
  0x8f   : > { %v946_v40 = vunpack.c.l.bf16 %v376_v33  ;;  %v1344_v57 = vadd.f32 %v3557_v41, %v1214_v47  ;;  %v1345_v59 = vadd.f32 %v3559_v42, %v1215_v48 }
  0x90   : > { %v1017_v63 = vmul.f32 %v3544_v10, %v948_v51  ;;  %v1018_v0 = vmul.f32 %v3546_v13, %v948_v51  ;;  %v1668_v45 = vmax.f32 %v1348_v32, 0.0  ;;  %v292_v51 = vld [vmem:[%s3286_s24 + $0x1e8] sm:$0xff] }
  0x91   : > { %v1013_v43 = vmul.f32 %v3544_v10, %v946_v40  ;;  %v1014_v44 = vmul.f32 %v3546_v13, %v946_v40  ;;  %811 = vperm.xlu2 %3229, %v345_v34   ;;  %802 = vperm.xlu1 %3228, %v344_v35   ;;  %v1664_v3 = vmax.f32 %v1344_v57, 0.0  ;;  %v1665_v5 = vmax.f32 %v1345_v59, 0.0  ;;  %v291_v57 = vld [vmem:[%s3286_s24 + $0x1e0] sm:$0xff] }
  0x92   : > { %793 = vperm.xlu0 %3227, %v343_v38   ;;  %v1142_v11 = vpack.c.bf16 %v1018_v0, %v1017_v63  ;;  %v1349_v34 = vadd.f32 %v3559_v42, %v1219_v23  ;;  %v353_v38 = vpack.c.bf16 %v289_v28, %v289_v28  ;;  %v1021_v40 = vmul.f32 %v3544_v10, %v950_v26 }
  0x93   : > { %v1140_v52 = vpack.c.bf16 %v1014_v44, %v1013_v43  ;;  %v1022_v43 = vmul.f32 %v3546_v13, %v950_v26  ;;  %v352_v44 = vpack.c.bf16 %v288_v29, %v288_v29  ;;  %v425_v49 = vpop.permute.xlu1 %424  ;;  %v357_v59 = vpack.c.bf16 %v293_v50, %v293_v50 }
  0x94   : > { %v1220_v22 = vunpack.c.l.bf16 %v1142_v11  ;;  %v1221_v24 = vunpack.c.h.bf16 %v1142_v11  ;;  %v1669_v47 = vmax.f32 %v1349_v34, 0.0  ;;  %v356_v60 = vpack.c.bf16 %v292_v51, %v292_v51 }
  0x95   : > { %v1216_v56 = vunpack.c.l.bf16 %v1140_v52  ;;  %v1217_v58 = vunpack.c.h.bf16 %v1140_v52  ;;  %v1143_v52 = vpack.c.bf16 %v1020_v39, %v1019_v36  ;;  %v1144_v53 = vpack.c.bf16 %v1022_v43, %v1021_v40 }
  0x96   : > { %v1350_v33 = vadd.f32 %v3557_v41, %v1220_v22  ;;  %v1351_v35 = vadd.f32 %v3559_v42, %v1221_v24  ;;  %v439_v26 = vperm.slane %v434_v25, %v3539_v6 }
  0x97   : > { %v1346_v1 = vadd.f32 %v3557_v41, %v1216_v56  ;;  %v1347_v2 = vadd.f32 %v3559_v42, %v1217_v58  ;;  %v430_v58 = vperm.slane %v425_v49, %v3539_v6  ;;  %v1222_v63 = vunpack.c.l.bf16 %v1143_v52 }
  0x98   : > { %v1670_v46 = vmax.f32 %v1350_v33, 0.0  ;;  %v1671_v48 = vmax.f32 %v1351_v35, 0.0  ;;  %v1224_v0 = vunpack.c.l.bf16 %v1144_v53  ;;  %v953_v34 = vunpack.c.l.bf16 %v439_v26 }
  0x99   : > { %838 = vperm.xlu2 %3229, %v348_v54   ;;  %829 = vperm.xlu1 %3228, %v347_v55   ;;  %v1666_v4 = vmax.f32 %v1346_v1, 0.0  ;;  %v1667_v7 = vmax.f32 %v1347_v2, 0.0  ;;  %v416_v54 = vpop.permute.xlu0 %415  ;;  %v1223_v1 = vunpack.c.h.bf16 %v1143_v52  ;;  %v1225_v2 = vunpack.c.h.bf16 %v1144_v53 }
  0x9a   : > { %820 = vperm.xlu0 %3227, %v346_v62   ;;  %v1794_v55 = vpack.c.bf16 %v1670_v46, %v1668_v45  ;;  %v1795_v56 = vpack.c.bf16 %v1671_v48, %v1669_v47  ;;  %v421_v61 = vperm.slane %v416_v54, %v3539_v6  ;;  %v355_v62 = vpack.c.bf16 %v291_v57, %v291_v57 }
  0x9b   : > { %v1792_v12 = vpack.c.bf16 %v1666_v4, %v1664_v3  ;;  %v1793_v31 = vpack.c.bf16 %v1667_v7, %v1665_v5  ;;  %v952_v3 = vunpack.c.l.bf16 %v430_v58  ;;  %v294_v5 = vld [vmem:[%s3286_s24 + $0x1f8] sm:$0xff]  ;;  %v1352_v7 = vadd.f32 %v3557_v41, %v1222_v63  ;;  %v452_v54 = vpop.permute.xlu1 %451 }
  0x9c   : > { %v951_v4 = vunpack.c.l.bf16 %v421_v61  ;;  %v1354_v8 = vadd.f32 %v3557_v41, %v1224_v0  ;;  %v1353_v9 = vadd.f32 %v3559_v42, %v1223_v1  ;;  %v1355_v30 = vadd.f32 %v3559_v42, %v1225_v2 }
  0x9d   : > { %2062 = vmatmul.bf16.vlgmr.msra.gmra.mxu0 %v1792_v12  ;;  %2231 = vmatmul.bf16.vlgmr.msra.gmra.mxu1 %v1793_v31  ;;  %v1025_v11 = vmul.f32 %v3544_v10, %v952_v3  ;;  %v358_v15 = vpack.c.bf16 %v294_v5, %v294_v5  ;;  %v1672_v16 = vmax.f32 %v1352_v7, 0.0  ;;  %v1027_v40 = vmul.f32 %v3544_v10, %v953_v34 }
  0x9e   : > { %2400 = vmatmul.bf16.vlgmr.msra.gmra.mxu2 %v1792_v12  ;;  %2569 = vmatmul.bf16.vlgmr.msra.gmra.mxu3 %v1793_v31  ;;  %v1026_v12 = vmul.f32 %v3546_v13, %v952_v3  ;;  %v1023_v31 = vmul.f32 %v3544_v10, %v951_v4  ;;  %v1024_v14 = vmul.f32 %v3546_v13, %v951_v4  ;;  %v1675_v19 = vmax.f32 %v1355_v30, 0.0 }
  0x9f   : > { %v1028_v43 = vmul.f32 %v3546_v13, %v953_v34  ;;  %v457_v57 = vperm.slane %v452_v54, %v3539_v6 }
  0xa0   : > { %v1145_v21 = vpack.c.bf16 %v1024_v14, %v1023_v31 }
  0xa1   : > { %865 = vperm.xlu2 %3229, %v351_v17   ;;  %856 = vperm.xlu1 %3228, %v350_v18   ;;  %v1674_v17 = vmax.f32 %v1354_v8, 0.0  ;;  %v1673_v18 = vmax.f32 %v1353_v9, 0.0  ;;  %v443_v22 = vpop.permute.xlu0 %442  ;;  %v1147_v50 = vpack.c.bf16 %v1028_v43, %v1027_v40  ;;  %v955_v63 = vunpack.c.l.bf16 %v457_v57 }
  0xa2   : > { %847 = vperm.xlu0 %3227, %v349_v20   ;;  %v1146_v20 = vpack.c.bf16 %v1026_v12, %v1025_v11  ;;  %v448_v27 = vperm.slane %v443_v22, %v3539_v6  ;;  %v1226_v28 = vunpack.c.l.bf16 %v1145_v21  ;;  %v1227_v32 = vunpack.c.h.bf16 %v1145_v21 }
  0xa3   : > { %v1796_v23 = vpack.c.bf16 %v1674_v17, %v1672_v16  ;;  %v1797_v24 = vpack.c.bf16 %v1675_v19, %v1673_v18  ;;  %v1230_v58 = vunpack.c.l.bf16 %v1147_v50  ;;  %v1031_v7 = vmul.f32 %v3544_v10, %v955_v63 }
  0xa4   : > { %v1228_v29 = vunpack.c.l.bf16 %v1146_v20  ;;  %v1229_v33 = vunpack.c.h.bf16 %v1146_v20  ;;  %v954_v35 = vunpack.c.l.bf16 %v448_v27  ;;  %v1356_v36 = vadd.f32 %v3557_v41, %v1226_v28 }
  0xa5   : > { %v1360_v0 = vadd.f32 %v3557_v41, %v1230_v58  ;;  %v1032_v8 = vmul.f32 %v3546_v13, %v955_v63 }
  0xa6   : > { %v1359_v39 = vadd.f32 %v3559_v42, %v1229_v33  ;;  %v1030_v45 = vmul.f32 %v3546_v13, %v954_v35  ;;  %v1676_v46 = vmax.f32 %v1356_v36, 0.0 }
  0xa7   : > { %v1680_v9 = vmax.f32 %v1360_v0, 0.0  ;;  %v1149_v14 = vpack.c.bf16 %v1032_v8, %v1031_v7 }
  0xa8   : > { %v1679_v49 = vmax.f32 %v1359_v39, 0.0 }
  0xa9   : > { %892 = vperm.xlu2 %3229, %v354_v37   ;;  %883 = vperm.xlu1 %3228, %v353_v38   ;;  %v1358_v37 = vadd.f32 %v3557_v41, %v1228_v29  ;;  %v1357_v38 = vadd.f32 %v3559_v42, %v1227_v32  ;;  %v470_v17 = vpop.permute.xlu0 %469  ;;  %v1234_v21 = vunpack.c.l.bf16 %v1149_v14 }
  0xaa   : > { %874 = vperm.xlu0 %3227, %v352_v44   ;;  %v1029_v44 = vmul.f32 %v3544_v10, %v954_v35  ;;  %v475_v20 = vperm.slane %v470_v17, %v3539_v6 }
  0xab   : > { %v1678_v47 = vmax.f32 %v1358_v37, 0.0  ;;  %v1677_v48 = vmax.f32 %v1357_v38, 0.0  ;;  %v1364_v27 = vadd.f32 %v3557_v41, %v1234_v21 }
  0xac   : > { %v1148_v51 = vpack.c.bf16 %v1030_v45, %v1029_v44  ;;  %v957_v26 = vunpack.c.l.bf16 %v475_v20 }
  0xad   : > { %2067 = vmatmul.bf16.gmra.mxu0 %v1794_v55  ;;  %2236 = vmatmul.bf16.gmra.mxu1 %v1795_v56  ;;  %v1798_v52 = vpack.c.bf16 %v1678_v47, %v1676_v46  ;;  %v1799_v53 = vpack.c.bf16 %v1679_v49, %v1677_v48  ;;  %v1684_v37 = vmax.f32 %v1364_v27, 0.0 }
  0xae   : > { %2405 = vmatmul.bf16.gmra.mxu2 %v1794_v55  ;;  %2574 = vmatmul.bf16.gmra.mxu3 %v1795_v56  ;;  %v461_v55 = vpop.permute.xlu2 %460  ;;  %v1233_v61 = vunpack.c.h.bf16 %v1148_v51  ;;  %v1035_v35 = vmul.f32 %v3544_v10, %v957_v26  ;;  %v1036_v36 = vmul.f32 %v3546_v13, %v957_v26 }
  0xaf   : > { %v466_v56 = vperm.slane %v461_v55, %v3539_v6 }
  0xb0   : > { %v1363_v3 = vadd.f32 %v3559_v42, %v1233_v61  ;;  %v1151_v44 = vpack.c.bf16 %v1036_v36, %v1035_v35 }
  0xb1   : > { %919 = vperm.xlu2 %3229, %v357_v59   ;;  %910 = vperm.xlu1 %3228, %v356_v60   ;;  %v1232_v59 = vunpack.c.l.bf16 %v1148_v51  ;;  %v1231_v60 = vunpack.c.h.bf16 %v1147_v50  ;;  %v497_v46 = vpop.permute.xlu0 %496 }
  0xb2   : > { %901 = vperm.xlu0 %3227, %v355_v62   ;;  %v956_v62 = vunpack.c.l.bf16 %v466_v56  ;;  %v1683_v12 = vmax.f32 %v1363_v3, 0.0  ;;  %v502_v48 = vperm.slane %v497_v46, %v3539_v6  ;;  %v1238_v49 = vunpack.c.l.bf16 %v1151_v44 }
  0xb3   : > { %v1362_v1 = vadd.f32 %v3557_v41, %v1232_v59  ;;  %v1361_v2 = vadd.f32 %v3559_v42, %v1231_v60 }
  0xb4   : > { %v1033_v4 = vmul.f32 %v3544_v10, %v956_v62  ;;  %v1034_v5 = vmul.f32 %v3546_v13, %v956_v62  ;;  %v960_v55 = vunpack.c.l.bf16 %v502_v48  ;;  %v1368_v56 = vadd.f32 %v3557_v41, %v1238_v49 }
  0xb5   : > { %v1682_v30 = vmax.f32 %v1362_v1, 0.0  ;;  %v1681_v11 = vmax.f32 %v1361_v2, 0.0 }
  0xb6   : > { %v1150_v31 = vpack.c.bf16 %v1034_v5, %v1033_v4  ;;  %v488_v51 = vpop.permute.xlu2 %487  ;;  %v1041_v61 = vmul.f32 %v3544_v10, %v960_v55  ;;  %v1042_v62 = vmul.f32 %v3546_v13, %v960_v55  ;;  %v1688_v63 = vmax.f32 %v1368_v56, 0.0 }
  0xb7   : > { %v1800_v16 = vpack.c.bf16 %v1682_v30, %v1680_v9  ;;  %v1801_v18 = vpack.c.bf16 %v1683_v12, %v1681_v11  ;;  %v493_v54 = vperm.slane %v488_v51, %v3539_v6 }
  0xb8   : > { %v1236_v22 = vunpack.c.l.bf16 %v1150_v31  ;;  %v1154_v5 = vpack.c.bf16 %v1042_v62, %v1041_v61 }
  0xb9   : > { %v959_v60 = vunpack.c.l.bf16 %v493_v54 }
  0xba   : > { %928 = vperm.xlu0 %3227, %v358_v15   ;;  %v479_v15 = vpop.permute.xlu1 %478  ;;  %v1366_v28 = vadd.f32 %v3557_v41, %v1236_v22  ;;  %v1244_v12 = vunpack.c.l.bf16 %v1154_v5 }
  0xbb   : > { %v484_v19 = vperm.slane %v479_v15, %v3539_v6  ;;  %v1039_v3 = vmul.f32 %v3544_v10, %v959_v60  ;;  %v1040_v4 = vmul.f32 %v3546_v13, %v959_v60 }
  0xbc   : > { %v1686_v38 = vmax.f32 %v1366_v28, 0.0 }
  0xbd   : > { %2072 = vmatmul.bf16.gmra.mxu0 %v1796_v23  ;;  %2241 = vmatmul.bf16.gmra.mxu1 %v1797_v24  ;;  %v958_v25 = vunpack.c.l.bf16 %v484_v19  ;;  %v1153_v30 = vpack.c.bf16 %v1040_v4, %v1039_v3  ;;  %v1374_v19 = vadd.f32 %v3557_v41, %v1244_v12 }
  0xbe   : > { %2410 = vmatmul.bf16.gmra.mxu2 %v1796_v23  ;;  %2579 = vmatmul.bf16.gmra.mxu3 %v1797_v24  ;;  %v1235_v23 = vunpack.c.h.bf16 %v1149_v14  ;;  %v1237_v24 = vunpack.c.h.bf16 %v1150_v31  ;;  %v1802_v45 = vpack.c.bf16 %v1686_v38, %v1684_v37  ;;  %v515_v31 = vpop.permute.xlu2 %514  ;;  %v1245_v14 = vunpack.c.h.bf16 %v1154_v5  ;;  %v524_v37 = vpop.permute.xlu0 %523 }
  0xbf   : > { %v1037_v33 = vmul.f32 %v3544_v10, %v958_v25  ;;  %v1038_v34 = vmul.f32 %v3546_v13, %v958_v25  ;;  %v520_v15 = vperm.slane %v515_v31, %v3539_v6  ;;  %v1243_v17 = vunpack.c.h.bf16 %v1153_v30 }
  0xc0   : > { %v1365_v29 = vadd.f32 %v3559_v42, %v1235_v23  ;;  %v1367_v32 = vadd.f32 %v3559_v42, %v1237_v24  ;;  %v1375_v20 = vadd.f32 %v3559_v42, %v1245_v14  ;;  %v1694_v26 = vmax.f32 %v1374_v19, 0.0 }
  0xc1   : > { %v1152_v43 = vpack.c.bf16 %v1038_v34, %v1037_v33  ;;  %v962_v21 = vunpack.c.l.bf16 %v520_v15  ;;  %v1373_v23 = vadd.f32 %v3559_v42, %v1243_v17 }
  0xc2   : > { %v1685_v39 = vmax.f32 %v1365_v29, 0.0  ;;  %v1687_v40 = vmax.f32 %v1367_v32, 0.0  ;;  %v506_v8 = vpop.permute.xlu1 %505  ;;  %v1695_v27 = vmax.f32 %v1375_v20, 0.0 }
  0xc3   : > { %v1240_v50 = vunpack.c.l.bf16 %v1152_v43  ;;  %v511_v11 = vperm.slane %v506_v8, %v3539_v6  ;;  %v1045_v28 = vmul.f32 %v3544_v10, %v962_v21  ;;  %v1046_v29 = vmul.f32 %v3546_v13, %v962_v21 }
  0xc4   : > { %v1803_v47 = vpack.c.bf16 %v1687_v40, %v1685_v39  ;;  %v1693_v33 = vmax.f32 %v1373_v23, 0.0 }
  0xc5   : > { %v1370_v57 = vadd.f32 %v3557_v41, %v1240_v50  ;;  %v1156_v39 = vpack.c.bf16 %v1046_v29, %v1045_v28 }
  0xc6   : > { %v1807_v38 = vpack.c.bf16 %v1695_v27, %v1693_v33  ;;  %v551_v5 = vpop.permute.xlu0 %550  ;;  %v542_v31 = vpop.permute.xlu2 %541 }
  0xc7   : > { %v1690_v0 = vmax.f32 %v1370_v57, 0.0  ;;  %v1248_v46 = vunpack.c.l.bf16 %v1156_v39  ;;  %v1249_v48 = vunpack.c.h.bf16 %v1156_v39 }
  0xc9   : > { %v1804_v7 = vpack.c.bf16 %v1690_v0, %v1688_v63  ;;  %v1379_v54 = vadd.f32 %v3559_v42, %v1249_v48 }
  0xca   : > { %v533_v35 = vpop.permute.xlu1 %532 }
  0xcb   : > { %v538_v40 = vperm.slane %v533_v35, %v3539_v6 }
  0xcd   : > { %2077 = vmatmul.bf16.gmra.mxu0 %v1798_v52  ;;  %2246 = vmatmul.bf16.gmra.mxu1 %v1799_v53 }
  0xce   : > { %2415 = vmatmul.bf16.gmra.mxu2 %v1798_v52  ;;  %2584 = vmatmul.bf16.gmra.mxu3 %v1799_v53  ;;  %v1239_v52 = vunpack.c.h.bf16 %v1151_v44  ;;  %v1241_v53 = vunpack.c.h.bf16 %v1152_v43  ;;  %v529_v43 = vperm.slane %v524_v37, %v3539_v6 }
  0xd0   : > { %v1369_v58 = vadd.f32 %v3559_v42, %v1239_v52  ;;  %v1371_v59 = vadd.f32 %v3559_v42, %v1241_v53  ;;  %v963_v49 = vunpack.c.l.bf16 %v529_v43  ;;  %v1378_v52 = vadd.f32 %v3557_v41, %v1248_v46 }
  0xd2   : > { %v1689_v1 = vmax.f32 %v1369_v58, 0.0  ;;  %v1691_v2 = vmax.f32 %v1371_v59, 0.0  ;;  %v1047_v56 = vmul.f32 %v3544_v10, %v963_v49  ;;  %v1048_v57 = vmul.f32 %v3546_v13, %v963_v49  ;;  %v1888_v58 = vld [vmem:[%s4101_s4] sm:$0x3] }
  0xd3   : > { %v1698_v61 = vmax.f32 %v1378_v52, 0.0  ;;  %v3667_v62 = vperm.slane %v1888_v58, 0 }
  0xd4   : > { %v1805_v9 = vpack.c.bf16 %v1691_v2, %v1689_v1  ;;  %v1699_v1 = vmax.f32 %v1379_v54, 0.0  ;;  %v1157_v3 = vpack.c.bf16 %v1048_v57, %v1047_v56  ;;  %v560_v54 = vpop.permute.xlu1 %559 }
  0xd6   : > { %v1251_v14 = vunpack.c.h.bf16 %v1157_v3 }
  0xd8   : > { %v1381_v27 = vadd.f32 %v3559_v42, %v1251_v14 }
  0xdd   : > { %2082 = vmatmul.bf16.gmra.mxu0 %v1800_v16  ;;  %2251 = vmatmul.bf16.gmra.mxu1 %v1801_v18 }
  0xde   : > { %2420 = vmatmul.bf16.gmra.mxu2 %v1800_v16  ;;  %2589 = vmatmul.bf16.gmra.mxu3 %v1801_v18  ;;  %v1242_v16 = vunpack.c.l.bf16 %v1153_v30  ;;  %v961_v18 = vunpack.c.l.bf16 %v511_v11  ;;  %v556_v30 = vperm.slane %v551_v5, %v3539_v6  ;;  %v1250_v11 = vunpack.c.l.bf16 %v1157_v3 }
  0xe0   : > { %v1372_v22 = vadd.f32 %v3557_v41, %v1242_v16  ;;  %v1043_v24 = vmul.f32 %v3544_v10, %v961_v18  ;;  %v1044_v25 = vmul.f32 %v3546_v13, %v961_v18  ;;  %v547_v16 = vperm.slane %v542_v31, %v3539_v6 }
  0xe1   : > { %v966_v23 = vunpack.c.l.bf16 %v556_v30 }
  0xe2   : > { %v1692_v32 = vmax.f32 %v1372_v22, 0.0  ;;  %v1155_v34 = vpack.c.bf16 %v1044_v25, %v1043_v24  ;;  %v1380_v24 = vadd.f32 %v3557_v41, %v1250_v11  ;;  %v965_v29 = vunpack.c.l.bf16 %v547_v16 }
  0xe3   : > { %v1053_v35 = vmul.f32 %v3544_v10, %v966_v23 }
  0xe4   : > { %v1806_v36 = vpack.c.bf16 %v1694_v26, %v1692_v32  ;;  %v1246_v44 = vunpack.c.l.bf16 %v1155_v34  ;;  %v1700_v37 = vmax.f32 %v1380_v24, 0.0 }
  0xe6   : > { %v1376_v50 = vadd.f32 %v3557_v41, %v1246_v44  ;;  %v1051_v44 = vmul.f32 %v3544_v10, %v965_v29 }
  0xe8   : > { %v1696_v59 = vmax.f32 %v1376_v50, 0.0 }
  0xea   : > { %v1808_v4 = vpack.c.bf16 %v1698_v61, %v1696_v59 }
  0xed   : > { %2087 = vmatmul.bf16.gmra.mxu0 %v1802_v45  ;;  %2256 = vmatmul.bf16.gmra.mxu1 %v1803_v47 }
  0xee   : > { %2425 = vmatmul.bf16.gmra.mxu2 %v1802_v45  ;;  %2594 = vmatmul.bf16.gmra.mxu3 %v1803_v47  ;;  %v1247_v45 = vunpack.c.h.bf16 %v1155_v34  ;;  %v964_v47 = vunpack.c.l.bf16 %v538_v40  ;;  %v1701_v40 = vmax.f32 %v1381_v27, 0.0  ;;  %v587_v27 = vpop.permute.xlu1 %586 }
  0xf0   : > { %v1377_v51 = vadd.f32 %v3559_v42, %v1247_v45  ;;  %v1049_v53 = vmul.f32 %v3544_v10, %v964_v47  ;;  %v1050_v55 = vmul.f32 %v3546_v13, %v964_v47  ;;  %v1052_v45 = vmul.f32 %v3546_v13, %v965_v29 }
  0xf2   : > { %v1697_v60 = vmax.f32 %v1377_v51, 0.0  ;;  %v1158_v2 = vpack.c.bf16 %v1050_v55, %v1049_v53  ;;  %v1159_v57 = vpack.c.bf16 %v1052_v45, %v1051_v44 }
  0xf4   : > { %v1252_v12 = vunpack.c.l.bf16 %v1158_v2  ;;  %v1253_v15 = vunpack.c.h.bf16 %v1158_v2  ;;  %v1255_v31 = vunpack.c.h.bf16 %v1159_v57 }
  0xf6   : > { %v1382_v25 = vadd.f32 %v3557_v41, %v1252_v12  ;;  %v1383_v28 = vadd.f32 %v3559_v42, %v1253_v15 }
  0xf8   : > { %v1703_v43 = vmax.f32 %v1383_v28, 0.0 }
  0xfa   : > { %v1811_v56 = vpack.c.bf16 %v1703_v43, %v1701_v40 }
  0xfd   : > { %2092 = vmatmul.bf16.gmra.mxu0 %v1804_v7  ;;  %2261 = vmatmul.bf16.gmra.mxu1 %v1805_v9 }
  0xfe   : > { %2430 = vmatmul.bf16.gmra.mxu2 %v1804_v7  ;;  %2599 = vmatmul.bf16.gmra.mxu3 %v1805_v9  ;;  %v1809_v7 = vpack.c.bf16 %v1699_v1, %v1697_v60  ;;  %v3670_v9 = vperm.slane %v1888_v58, 1  ;;  %v569_v58 = vpop.permute.xlu2 %568 }
  0xff   : > { %v574_v3 = vperm.slane %v569_v58, %v3539_v6 }
 0x10d   : > { %2097 = vmatmul.bf16.gmra.mxu0 %v1806_v36  ;;  %2266 = vmatmul.bf16.gmra.mxu1 %v1807_v38 }
 0x10e   : > { %2435 = vmatmul.bf16.gmra.mxu2 %v1806_v36  ;;  %2604 = vmatmul.bf16.gmra.mxu3 %v1807_v38  ;;  %v1054_v36 = vmul.f32 %v3546_v13, %v966_v23  ;;  %v1702_v38 = vmax.f32 %v1382_v25, 0.0  ;;  %v1385_v23 = vadd.f32 %v3559_v42, %v1255_v31 }
 0x110   : > { %v1160_v52 = vpack.c.bf16 %v1054_v36, %v1053_v35  ;;  %v1810_v53 = vpack.c.bf16 %v1702_v38, %v1700_v37  ;;  %v1705_v43 = vmax.f32 %v1385_v23, 0.0 }
 0x112   : > { %v1257_v2 = vunpack.c.h.bf16 %v1160_v52 }
 0x11a   : > { %v2063_v63 = vpop.f32.mrf.mxu0  ;;  %v2232_v0 = vpop.f32.mrf.mxu1 }
 0x11b   : > { %v2064_v8 = vadd.f32 %v2063_v63, %v3667_v62  ;;  %v565_v63 = vperm.slane %v560_v54, %v3539_v6 }
 0x11d   : > { %2102 = vmatmul.bf16.gmra.mxu0 %v1808_v4  ;;  %2271 = vmatmul.bf16.gmra.mxu1 %v1809_v7  ;;  %v2233_v19 = vadd.f32 %v2232_v0, %v2064_v8  ;;  %v1256_v0 = vunpack.c.l.bf16 %v1160_v52  ;;  %v967_v14 = vunpack.c.l.bf16 %v565_v63 }
 0x11e   : > { %2440 = vmatmul.bf16.gmra.mxu2 %v1808_v4  ;;  %2609 = vmatmul.bf16.gmra.mxu3 %v1809_v7  ;;  %v1254_v7 = vunpack.c.l.bf16 %v1159_v57 }
 0x11f   : > { %v2730_v32 = vmax.f32 %v2233_v19, 0.0  ;;  %v1386_v15 = vadd.f32 %v3557_v41, %v1256_v0  ;;  %v1055_v24 = vmul.f32 %v3544_v10, %v967_v14  ;;  %v1056_v25 = vmul.f32 %v3546_v13, %v967_v14 }
 0x120   : > { %v1384_v19 = vadd.f32 %v3557_v41, %v1254_v7 }
 0x121   : > { %v2401_v17 = vpop.f32.mrf.mxu2  ;;  %v2570_v18 = vpop.f32.mrf.mxu3  ;;  %v1161_v44 = vpack.c.bf16 %v1056_v25, %v1055_v24 }
 0x122   : > { %v2402_v20 = vadd.f32 %v2401_v17, %v3670_v9  ;;  %v2065_v21 = vpop.f32.mrf.mxu0  ;;  %v2234_v22 = vpop.f32.mrf.mxu1  ;;  %v1387_v17 = vadd.f32 %v3559_v42, %v1257_v2  ;;  %v1704_v36 = vmax.f32 %v1384_v19, 0.0 }
 0x123   : > { %v2066_v34 = vadd.f32 %v2065_v21, %v3667_v62  ;;  %v1259_v57 = vunpack.c.h.bf16 %v1161_v44 }
 0x124   : > { %v2571_v26 = vadd.f32 %v2570_v18, %v2402_v20  ;;  %v968_v18 = vunpack.c.l.bf16 %v574_v3  ;;  %v1707_v29 = vmax.f32 %v1387_v17, 0.0 }
 0x125   : > { %v2235_v48 = vadd.f32 %v2234_v22, %v2066_v34 }
 0x126   : > { %v2731_v33 = vmax.f32 %v2571_v26, 0.0  ;;  %v1706_v26 = vmax.f32 %v1386_v15, 0.0 }
 0x127   : > { %v2732_v59 = vmax.f32 %v2235_v48, 0.0  ;;  %v1813_v48 = vpack.c.bf16 %v1707_v29, %v1705_v43 }
 0x128   : > { %v2858_v39 = vpack.c.bf16 %v2731_v33, %v2730_v32  ;;  %v1057_v32 = vmul.f32 %v3544_v10, %v968_v18  ;;  %v1058_v33 = vmul.f32 %v3546_v13, %v968_v18  ;;  %v1812_v45 = vpack.c.bf16 %v1706_v26, %v1704_v36 }
 0x129   : > { %v2403_v46 = vpop.f32.mrf.mxu2  ;;  %v2572_v47 = vpop.f32.mrf.mxu3 }
 0x12a   : > { %2922 = vst [vmem:[%s3687_s9] sm:$0xff] %v2858_v39  ;;  %v2404_v49 = vadd.f32 %v2403_v46, %v3670_v9  ;;  %v2068_v50 = vpop.f32.mrf.mxu0  ;;  %v2237_v51 = vpop.f32.mrf.mxu1 }
 0x12b   : > { %v2069_v61 = vadd.f32 %v2068_v50, %v3667_v62  ;;  %v578_v46 = vpop.permute.xlu0 %577  ;;  %v592_v50 = vperm.slane %v587_v27, %v3539_v6 }
 0x12c   : > { %v2573_v55 = vadd.f32 %v2572_v47, %v2404_v49  ;;  %v1162_v49 = vpack.c.bf16 %v1058_v33, %v1057_v32  ;;  %v583_v54 = vperm.slane %v578_v46, %v3539_v6 }
 0x12d   : > { %2107 = vmatmul.bf16.gmra.mxu0 %v1810_v53  ;;  %2276 = vmatmul.bf16.gmra.mxu1 %v1811_v56  ;;  %v2238_v8 = vadd.f32 %v2237_v51, %v2069_v61  ;;  %v970_v58 = vunpack.c.l.bf16 %v592_v50 }
 0x12e   : > { %v2733_v60 = vmax.f32 %v2573_v55, 0.0  ;;  %2445 = vmatmul.bf16.gmra.mxu2 %v1810_v53  ;;  %2614 = vmatmul.bf16.gmra.mxu3 %v1811_v56  ;;  %v1258_v55 = vunpack.c.l.bf16 %v1161_v44  ;;  %v1260_v61 = vunpack.c.l.bf16 %v1162_v49  ;;  %v1261_v3 = vunpack.c.h.bf16 %v1162_v49 }
 0x12f   : > { %v2734_v20 = vmax.f32 %v2238_v8, 0.0  ;;  %v1389_v8 = vadd.f32 %v3559_v42, %v1259_v57 }
 0x130   : > { %v2859_v1 = vpack.c.bf16 %v2733_v60, %v2732_v59  ;;  %v1391_v15 = vadd.f32 %v3559_v42, %v1261_v3 }
 0x131   : > { %v2406_v4 = vpop.f32.mrf.mxu2  ;;  %v2575_v5 = vpop.f32.mrf.mxu3 }
 0x132   : > { %2923 = vst [vmem:[%s3687_s9 + $0x8] sm:$0xff] %v2859_v1  ;;  %v2407_v30 = vadd.f32 %v2406_v4, %v3670_v9  ;;  %v2070_v11 = vpop.f32.mrf.mxu0  ;;  %v2239_v12 = vpop.f32.mrf.mxu1  ;;  %v969_v4 = vunpack.c.l.bf16 %v583_v54  ;;  %v1711_v29 = vmax.f32 %v1391_v15, 0.0 }
 0x133   : > { %v2071_v22 = vadd.f32 %v2070_v11, %v3667_v62  ;;  %v1390_v11 = vadd.f32 %v3557_v41, %v1260_v61 }
 0x134   : > { %v2576_v16 = vadd.f32 %v2575_v5, %v2407_v30  ;;  %v1388_v5 = vadd.f32 %v3557_v41, %v1258_v55  ;;  %v1061_v30 = vmul.f32 %v3544_v10, %v970_v58  ;;  %v1059_v17 = vmul.f32 %v3544_v10, %v969_v4 }
 0x135   : > { %v2240_v37 = vadd.f32 %v2239_v12, %v2071_v22  ;;  %v1060_v18 = vmul.f32 %v3546_v13, %v969_v4  ;;  %v1710_v24 = vmax.f32 %v1390_v11, 0.0 }
 0x136   : > { %v2735_v21 = vmax.f32 %v2576_v16, 0.0  ;;  %v1062_v16 = vmul.f32 %v3546_v13, %v970_v58  ;;  %v1708_v19 = vmax.f32 %v1388_v5, 0.0 }
 0x137   : > { %v2736_v51 = vmax.f32 %v2240_v37, 0.0  ;;  %v1163_v33 = vpack.c.bf16 %v1060_v18, %v1059_v17 }
 0x138   : > { %v2860_v28 = vpack.c.bf16 %v2735_v21, %v2734_v20  ;;  %v1709_v21 = vmax.f32 %v1389_v8, 0.0  ;;  %v1164_v32 = vpack.c.bf16 %v1062_v16, %v1061_v30 }
 0x139   : > { %v2408_v34 = vpop.f32.mrf.mxu2  ;;  %v2577_v35 = vpop.f32.mrf.mxu3 }
 0x13a   : > { %2924 = vst [vmem:[%s3687_s9 + $0x10] sm:$0xff] %v2860_v28  ;;  %v2409_v38 = vadd.f32 %v2408_v34, %v3670_v9  ;;  %v2073_v39 = vpop.f32.mrf.mxu0  ;;  %v2242_v40 = vpop.f32.mrf.mxu1  ;;  %v1814_v34 = vpack.c.bf16 %v1710_v24, %v1708_v19  ;;  %v1815_v37 = vpack.c.bf16 %v1711_v29, %v1709_v21  ;;  %v1264_v44 = vunpack.c.l.bf16 %v1164_v32 }
 0x13b   : > { %v2074_v53 = vadd.f32 %v2073_v39, %v3667_v62 }
 0x13c   : > { %v2578_v47 = vadd.f32 %v2577_v35, %v2409_v38  ;;  %v605_v35 = vpop.permute.xlu0 %604  ;;  %v596_v38 = vpop.permute.xlu2 %595 }
 0x13d   : > { %2112 = vmatmul.bf16.gmra.mxu0 %v1812_v45  ;;  %2281 = vmatmul.bf16.gmra.mxu1 %v1813_v48  ;;  %v2243_v63 = vadd.f32 %v2242_v40, %v2074_v53  ;;  %v610_v46 = vperm.slane %v605_v35, %v3539_v6  ;;  %v601_v50 = vperm.slane %v596_v38, %v3539_v6 }
 0x13e   : > { %v2737_v52 = vmax.f32 %v2578_v47, 0.0  ;;  %2450 = vmatmul.bf16.gmra.mxu2 %v1812_v45  ;;  %2619 = vmatmul.bf16.gmra.mxu3 %v1813_v48  ;;  %v1262_v45 = vunpack.c.l.bf16 %v1163_v33  ;;  %v1265_v47 = vunpack.c.h.bf16 %v1164_v32  ;;  %v1263_v48 = vunpack.c.h.bf16 %v1163_v33 }
 0x13f   : > { %v2738_v12 = vmax.f32 %v2243_v63, 0.0  ;;  %v972_v57 = vunpack.c.l.bf16 %v610_v46 }
 0x140   : > { %v2861_v56 = vpack.c.bf16 %v2737_v52, %v2736_v51  ;;  %v1392_v58 = vadd.f32 %v3557_v41, %v1262_v45  ;;  %v1393_v61 = vadd.f32 %v3559_v42, %v1263_v48  ;;  %v1395_v63 = vadd.f32 %v3559_v42, %v1265_v47 }
 0x141   : > { %v2411_v59 = vpop.f32.mrf.mxu2  ;;  %v2580_v60 = vpop.f32.mrf.mxu3  ;;  %v1065_v4 = vmul.f32 %v3544_v10, %v972_v57  ;;  %v1066_v5 = vmul.f32 %v3546_v13, %v972_v57 }
 0x142   : > { %2925 = vst [vmem:[%s3687_s9 + $0x18] sm:$0xff] %v2861_v56  ;;  %v2412_v0 = vadd.f32 %v2411_v59, %v3670_v9  ;;  %v2075_v1 = vpop.f32.mrf.mxu0  ;;  %v2244_v2 = vpop.f32.mrf.mxu1  ;;  %v1394_v59 = vadd.f32 %v3557_v41, %v1264_v44  ;;  %v1713_v11 = vmax.f32 %v1393_v61, 0.0 }
 0x143   : > { %v2076_v14 = vadd.f32 %v2075_v1, %v3667_v62 }
 0x144   : > { %v2581_v7 = vadd.f32 %v2580_v60, %v2412_v0  ;;  %v971_v0 = vunpack.c.l.bf16 %v601_v50  ;;  %v1714_v8 = vmax.f32 %v1394_v59, 0.0 }
 0x145   : > { %v2245_v25 = vadd.f32 %v2244_v2, %v2076_v14 }
 0x146   : > { %v2739_v31 = vmax.f32 %v2581_v7, 0.0  ;;  %v1712_v7 = vmax.f32 %v1392_v58, 0.0  ;;  %v1064_v14 = vmul.f32 %v3546_v13, %v971_v0 }
 0x147   : > { %v2740_v39 = vmax.f32 %v2245_v25, 0.0 }
 0x148   : > { %v2862_v20 = vpack.c.bf16 %v2739_v31, %v2738_v12  ;;  %v1715_v12 = vmax.f32 %v1395_v63, 0.0  ;;  %v1063_v31 = vmul.f32 %v3544_v10, %v971_v0 }
 0x149   : > { %v2413_v22 = vpop.f32.mrf.mxu2  ;;  %v2582_v23 = vpop.f32.mrf.mxu3 }
 0x14a   : > { %2926 = vst [vmem:[%s3687_s9 + $0x20] sm:$0xff] %v2862_v20  ;;  %v2414_v26 = vadd.f32 %v2413_v22, %v3670_v9  ;;  %v2078_v27 = vpop.f32.mrf.mxu0  ;;  %v2247_v28 = vpop.f32.mrf.mxu1  ;;  %v1166_v20 = vpack.c.bf16 %v1066_v5, %v1065_v4  ;;  %v1816_v22 = vpack.c.bf16 %v1714_v8, %v1712_v7  ;;  %v1817_v25 = vpack.c.bf16 %v1715_v12, %v1713_v11 }
 0x14b   : > { %v2079_v43 = vadd.f32 %v2078_v27, %v3667_v62  ;;  %v623_v27 = vpop.permute.xlu2 %622 }
 0x14c   : > { %v2583_v36 = vadd.f32 %v2582_v23, %v2414_v26  ;;  %v614_v23 = vpop.permute.xlu1 %613  ;;  %v1165_v26 = vpack.c.bf16 %v1064_v14, %v1063_v31  ;;  %v1269_v35 = vunpack.c.h.bf16 %v1166_v20  ;;  %v628_v38 = vperm.slane %v623_v27, %v3539_v6 }
 0x14d   : > { %2117 = vmatmul.bf16.gmra.mxu0 %v1814_v34  ;;  %2286 = vmatmul.bf16.gmra.mxu1 %v1815_v37  ;;  %v2248_v53 = vadd.f32 %v2247_v28, %v2079_v43  ;;  %v619_v33 = vperm.slane %v614_v23, %v3539_v6 }
 0x14e   : > { %v2741_v40 = vmax.f32 %v2583_v36, 0.0  ;;  %2455 = vmatmul.bf16.gmra.mxu2 %v1814_v34  ;;  %2624 = vmatmul.bf16.gmra.mxu3 %v1815_v37  ;;  %v1268_v34 = vunpack.c.l.bf16 %v1166_v20  ;;  %v1266_v37 = vunpack.c.l.bf16 %v1165_v26 }
 0x14f   : > { %v2742_v1 = vmax.f32 %v2248_v53, 0.0  ;;  %v973_v47 = vunpack.c.l.bf16 %v619_v33 }
 0x150   : > { %v2863_v49 = vpack.c.bf16 %v2741_v40, %v2740_v39  ;;  %v1267_v40 = vunpack.c.h.bf16 %v1165_v26  ;;  %v1396_v53 = vadd.f32 %v3557_v41, %v1266_v37 }
 0x151   : > { %v2416_v51 = vpop.f32.mrf.mxu2  ;;  %v2585_v52 = vpop.f32.mrf.mxu3  ;;  %v1067_v58 = vmul.f32 %v3544_v10, %v973_v47  ;;  %v1068_v59 = vmul.f32 %v3546_v13, %v973_v47 }
 0x152   : > { %2927 = vst [vmem:[%s3687_s9 + $0x28] sm:$0xff] %v2863_v49  ;;  %v2417_v54 = vadd.f32 %v2416_v51, %v3670_v9  ;;  %v2080_v55 = vpop.f32.mrf.mxu0  ;;  %v2249_v56 = vpop.f32.mrf.mxu1  ;;  %v1398_v49 = vadd.f32 %v3557_v41, %v1268_v34  ;;  %v1399_v51 = vadd.f32 %v3559_v42, %v1269_v35  ;;  %v1397_v57 = vadd.f32 %v3559_v42, %v1267_v40 }
 0x153   : > { %v2081_v3 = vadd.f32 %v2080_v55, %v3667_v62  ;;  %v1716_v4 = vmax.f32 %v1396_v53, 0.0  ;;  %v1167_v12 = vpack.c.bf16 %v1068_v59, %v1067_v58 }
 0x154   : > { %v2586_v60 = vadd.f32 %v2585_v52, %v2417_v54  ;;  %v974_v52 = vunpack.c.l.bf16 %v628_v38  ;;  %v1719_v63 = vmax.f32 %v1399_v51, 0.0  ;;  %v1717_v11 = vmax.f32 %v1397_v57, 0.0 }
 0x155   : > { %v2250_v17 = vadd.f32 %v2249_v56, %v2081_v3  ;;  %v1270_v23 = vunpack.c.l.bf16 %v1167_v12 }
 0x156   : > { %v2743_v2 = vmax.f32 %v2586_v60, 0.0  ;;  %v1718_v60 = vmax.f32 %v1398_v49, 0.0  ;;  %v1069_v0 = vmul.f32 %v3544_v10, %v974_v52 }
 0x157   : > { %v2744_v28 = vmax.f32 %v2250_v17, 0.0  ;;  %v1819_v17 = vpack.c.bf16 %v1719_v63, %v1717_v11 }
 0x158   : > { %v2864_v30 = vpack.c.bf16 %v2743_v2, %v2742_v1  ;;  %v1070_v1 = vmul.f32 %v3546_v13, %v974_v52  ;;  %v641_v2 = vpop.permute.xlu1 %640  ;;  %v1818_v14 = vpack.c.bf16 %v1718_v60, %v1716_v4 }
 0x159   : > { %v2418_v15 = vpop.f32.mrf.mxu2  ;;  %v2587_v16 = vpop.f32.mrf.mxu3 }
 0x15a   : > { %2928 = vst [vmem:[%s3687_s9 + $0x30] sm:$0xff] %v2864_v30  ;;  %v2419_v18 = vadd.f32 %v2418_v15, %v3670_v9  ;;  %v2083_v19 = vpop.f32.mrf.mxu0  ;;  %v2252_v21 = vpop.f32.mrf.mxu1 }
 0x15b   : > { %v2084_v32 = vadd.f32 %v2083_v19, %v3667_v62  ;;  %v632_v15 = vpop.permute.xlu0 %631  ;;  %v646_v19 = vperm.slane %v641_v2, %v3539_v6 }
 0x15c   : > { %v2588_v24 = vadd.f32 %v2587_v16, %v2419_v18  ;;  %v1168_v18 = vpack.c.bf16 %v1070_v1, %v1069_v0 }
 0x15d   : > { %2122 = vmatmul.bf16.gmra.mxu0 %v1816_v22  ;;  %2291 = vmatmul.bf16.gmra.mxu1 %v1817_v25  ;;  %v2253_v43 = vadd.f32 %v2252_v21, %v2084_v32 }
 0x15e   : > { %v2745_v29 = vmax.f32 %v2588_v24, 0.0  ;;  %2460 = vmatmul.bf16.gmra.mxu2 %v1816_v22  ;;  %2629 = vmatmul.bf16.gmra.mxu3 %v1817_v25  ;;  %v637_v24 = vperm.slane %v632_v15, %v3539_v6  ;;  %v1271_v25 = vunpack.c.h.bf16 %v1167_v12  ;;  %v1272_v27 = vunpack.c.l.bf16 %v1168_v18 }
 0x15f   : > { %v2746_v54 = vmax.f32 %v2253_v43, 0.0  ;;  %v1273_v32 = vunpack.c.h.bf16 %v1168_v18 }
 0x160   : > { %v2865_v36 = vpack.c.bf16 %v2745_v29, %v2744_v28  ;;  %v976_v28 = vunpack.c.l.bf16 %v646_v19  ;;  %v975_v37 = vunpack.c.l.bf16 %v637_v24  ;;  %v1401_v43 = vadd.f32 %v3559_v42, %v1271_v25 }
 0x161   : > { %v2421_v39 = vpop.f32.mrf.mxu2  ;;  %v2590_v45 = vpop.f32.mrf.mxu3  ;;  %v1403_v49 = vadd.f32 %v3559_v42, %v1273_v32 }
 0x162   : > { %2929 = vst [vmem:[%s3687_s9 + $0x38] sm:$0xff] %v2865_v36  ;;  %v2422_v44 = vadd.f32 %v2421_v39, %v3670_v9  ;;  %v2085_v46 = vpop.f32.mrf.mxu0  ;;  %v2254_v48 = vpop.f32.mrf.mxu1  ;;  %v1400_v39 = vadd.f32 %v3557_v41, %v1270_v23  ;;  %v1071_v51 = vmul.f32 %v3544_v10, %v975_v37  ;;  %v1072_v52 = vmul.f32 %v3546_v13, %v975_v37 }
 0x163   : > { %v2086_v56 = vadd.f32 %v2085_v46, %v3667_v62  ;;  %v1723_v63 = vmax.f32 %v1403_v49, 0.0  ;;  %v659_v4 = vpop.permute.xlu0 %658 }
 0x164   : > { %v2591_v50 = vadd.f32 %v2590_v45, %v2422_v44  ;;  %v1073_v44 = vmul.f32 %v3544_v10, %v976_v28  ;;  %v1402_v45 = vadd.f32 %v3557_v41, %v1272_v27  ;;  %v1720_v53 = vmax.f32 %v1400_v39, 0.0 }
 0x165   : > { %v2255_v5 = vadd.f32 %v2254_v48, %v2086_v56  ;;  %v1169_v1 = vpack.c.bf16 %v1072_v52, %v1071_v51  ;;  %v664_v15 = vperm.slane %v659_v4, %v3539_v6 }
 0x166   : > { %v2747_v55 = vmax.f32 %v2591_v50, 0.0  ;;  %v1074_v50 = vmul.f32 %v3546_v13, %v976_v28  ;;  %v1722_v57 = vmax.f32 %v1402_v45, 0.0 }
 0x167   : > { %v2748_v20 = vmax.f32 %v2255_v5, 0.0  ;;  %v978_v25 = vunpack.c.l.bf16 %v664_v15 }
 0x168   : > { %v2866_v61 = vpack.c.bf16 %v2747_v55, %v2746_v54  ;;  %v1721_v55 = vmax.f32 %v1401_v43, 0.0  ;;  %v1170_v0 = vpack.c.bf16 %v1074_v50, %v1073_v44 }
 0x169   : > { %v2423_v3 = vpop.f32.mrf.mxu2  ;;  %v2592_v8 = vpop.f32.mrf.mxu3  ;;  %v1078_v39 = vmul.f32 %v3546_v13, %v978_v25 }
 0x16a   : > { %2930 = vst [vmem:[%s3687_s9 + $0x40] sm:$0xff] %v2866_v61  ;;  %v2424_v7 = vadd.f32 %v2423_v3, %v3670_v9  ;;  %v2088_v30 = vpop.f32.mrf.mxu0  ;;  %v2257_v31 = vpop.f32.mrf.mxu1  ;;  %v1820_v3 = vpack.c.bf16 %v1722_v57, %v1720_v53 }
 0x16b   : > { %v2089_v22 = vadd.f32 %v2088_v30, %v3667_v62  ;;  %v668_v57 = vpop.permute.xlu1 %667 }
 0x16c   : > { %v2593_v16 = vadd.f32 %v2592_v8, %v2424_v7  ;;  %v1821_v7 = vpack.c.bf16 %v1723_v63, %v1721_v55  ;;  %v650_v8 = vpop.permute.xlu2 %649 }
 0x16d   : > { %2127 = vmatmul.bf16.gmra.mxu0 %v1818_v14  ;;  %2296 = vmatmul.bf16.gmra.mxu1 %v1819_v17  ;;  %v2258_v33 = vadd.f32 %v2257_v31, %v2089_v22  ;;  %v1276_v31 = vunpack.c.l.bf16 %v1170_v0  ;;  %v655_v19 = vperm.slane %v650_v8, %v3539_v6 }
 0x16e   : > { %v2749_v21 = vmax.f32 %v2593_v16, 0.0  ;;  %2465 = vmatmul.bf16.gmra.mxu2 %v1818_v14  ;;  %2634 = vmatmul.bf16.gmra.mxu3 %v1819_v17  ;;  %v1274_v14 = vunpack.c.l.bf16 %v1169_v1  ;;  %v1277_v16 = vunpack.c.h.bf16 %v1170_v0  ;;  %v1275_v17 = vunpack.c.h.bf16 %v1169_v1 }
 0x16f   : > { %v2750_v46 = vmax.f32 %v2258_v33, 0.0  ;;  %v1406_v28 = vadd.f32 %v3557_v41, %v1276_v31 }
 0x170   : > { %v2867_v26 = vpack.c.bf16 %v2749_v21, %v2748_v20  ;;  %v1404_v27 = vadd.f32 %v3557_v41, %v1274_v14  ;;  %v1405_v32 = vadd.f32 %v3559_v42, %v1275_v17  ;;  %v1407_v33 = vadd.f32 %v3559_v42, %v1277_v16 }
 0x171   : > { %v2426_v29 = vpop.f32.mrf.mxu2  ;;  %v2595_v35 = vpop.f32.mrf.mxu3  ;;  %v1726_v43 = vmax.f32 %v1406_v28, 0.0 }
 0x172   : > { %2931 = vst [vmem:[%s3687_s9 + $0x48] sm:$0xff] %v2867_v26  ;;  %v2427_v34 = vadd.f32 %v2426_v29, %v3670_v9  ;;  %v2090_v36 = vpop.f32.mrf.mxu0  ;;  %v2259_v38 = vpop.f32.mrf.mxu1  ;;  %v1725_v45 = vmax.f32 %v1405_v32, 0.0 }
 0x173   : > { %v2091_v48 = vadd.f32 %v2090_v36, %v3667_v62 }
 0x174   : > { %v2596_v40 = vadd.f32 %v2595_v35, %v2427_v34  ;;  %v977_v34 = vunpack.c.l.bf16 %v655_v19 }
 0x175   : > { %v2260_v58 = vadd.f32 %v2259_v38, %v2091_v48  ;;  %v1077_v38 = vmul.f32 %v3544_v10, %v978_v25 }
 0x176   : > { %v2751_v47 = vmax.f32 %v2596_v40, 0.0  ;;  %v1724_v40 = vmax.f32 %v1404_v27, 0.0  ;;  %v1076_v48 = vmul.f32 %v3546_v13, %v977_v34 }
 0x177   : > { %v2752_v30 = vmax.f32 %v2260_v58, 0.0 }
 0x178   : > { %v2868_v54 = vpack.c.bf16 %v2751_v47, %v2750_v46  ;;  %v1727_v46 = vmax.f32 %v1407_v33, 0.0  ;;  %v1075_v47 = vmul.f32 %v3544_v10, %v977_v34 }
 0x179   : > { %v2428_v56 = vpop.f32.mrf.mxu2  ;;  %v2597_v60 = vpop.f32.mrf.mxu3 }
 0x17a   : > { %2932 = vst [vmem:[%s3687_s9 + $0x50] sm:$0xff] %v2868_v54  ;;  %v2429_v59 = vadd.f32 %v2428_v56, %v3670_v9  ;;  %v2093_v61 = vpop.f32.mrf.mxu0  ;;  %v2262_v2 = vpop.f32.mrf.mxu1  ;;  %v1172_v54 = vpack.c.bf16 %v1078_v39, %v1077_v38  ;;  %v1822_v56 = vpack.c.bf16 %v1726_v43, %v1724_v40 }
 0x17b   : > { %v2094_v12 = vadd.f32 %v2093_v61, %v3667_v62  ;;  %v677_v61 = vpop.permute.xlu2 %676 }
 0x17c   : > { %v2598_v5 = vadd.f32 %v2597_v60, %v2429_v59  ;;  %v1823_v59 = vpack.c.bf16 %v1727_v46, %v1725_v45  ;;  %v1171_v60 = vpack.c.bf16 %v1076_v48, %v1075_v47  ;;  %v1281_v4 = vunpack.c.h.bf16 %v1172_v54 }
 0x17d   : > { %2132 = vmatmul.bf16.gmra.mxu0 %v1820_v3  ;;  %2301 = vmatmul.bf16.gmra.mxu1 %v1821_v7  ;;  %v2263_v21 = vadd.f32 %v2262_v2, %v2094_v12  ;;  %v673_v2 = vperm.slane %v668_v57, %v3539_v6  ;;  %v682_v8 = vperm.slane %v677_v61, %v3539_v6 }
 0x17e   : > { %v2753_v11 = vmax.f32 %v2598_v5, 0.0  ;;  %2470 = vmatmul.bf16.gmra.mxu2 %v1820_v3  ;;  %2639 = vmatmul.bf16.gmra.mxu3 %v1821_v7  ;;  %v1280_v3 = vunpack.c.l.bf16 %v1172_v54  ;;  %v1278_v7 = vunpack.c.l.bf16 %v1171_v60 }
 0x17f   : > { %v2754_v35 = vmax.f32 %v2263_v21, 0.0  ;;  %v979_v16 = vunpack.c.l.bf16 %v673_v2  ;;  %v980_v21 = vunpack.c.l.bf16 %v682_v8 }
 0x180   : > { %v2869_v18 = vpack.c.bf16 %v2753_v11, %v2752_v30  ;;  %v1279_v11 = vunpack.c.h.bf16 %v1171_v60 }
 0x181   : > { %v2431_v20 = vpop.f32.mrf.mxu2  ;;  %v2600_v23 = vpop.f32.mrf.mxu3  ;;  %v1079_v27 = vmul.f32 %v3544_v10, %v979_v16  ;;  %v1080_v28 = vmul.f32 %v3546_v13, %v979_v16  ;;  %v1081_v34 = vmul.f32 %v3544_v10, %v980_v21 }
 0x182   : > { %2933 = vst [vmem:[%s3687_s9 + $0x58] sm:$0xff] %v2869_v18  ;;  %v2432_v22 = vadd.f32 %v2431_v20, %v3670_v9  ;;  %v2095_v24 = vpop.f32.mrf.mxu0  ;;  %v2264_v26 = vpop.f32.mrf.mxu1  ;;  %v1410_v18 = vadd.f32 %v3557_v41, %v1280_v3  ;;  %v1411_v20 = vadd.f32 %v3559_v42, %v1281_v4 }
 0x183   : > { %v2096_v37 = vadd.f32 %v2095_v24, %v3667_v62  ;;  %v1173_v46 = vpack.c.bf16 %v1080_v28, %v1079_v27 }
 0x184   : > { %v2601_v29 = vadd.f32 %v2600_v23, %v2432_v22  ;;  %v1408_v22 = vadd.f32 %v3557_v41, %v1278_v7  ;;  %v1731_v33 = vmax.f32 %v1411_v20, 0.0 }
 0x185   : > { %v2265_v50 = vadd.f32 %v2264_v26, %v2096_v37  ;;  %v1409_v26 = vadd.f32 %v3559_v42, %v1279_v11  ;;  %v1282_v57 = vunpack.c.l.bf16 %v1173_v46 }
 0x186   : > { %v2755_v36 = vmax.f32 %v2601_v29, 0.0  ;;  %v1730_v29 = vmax.f32 %v1410_v18, 0.0  ;;  %v1728_v38 = vmax.f32 %v1408_v22, 0.0 }
 0x187   : > { %v2756_v63 = vmax.f32 %v2265_v50, 0.0  ;;  %v1729_v45 = vmax.f32 %v1409_v26, 0.0 }
 0x188   : > { %v2870_v44 = vpack.c.bf16 %v2755_v36, %v2754_v35  ;;  %v1082_v35 = vmul.f32 %v3546_v13, %v980_v21  ;;  %v695_v36 = vpop.permute.xlu1 %694  ;;  %v1824_v48 = vpack.c.bf16 %v1730_v29, %v1728_v38 }
 0x189   : > { %v2433_v49 = vpop.f32.mrf.mxu2  ;;  %v2602_v52 = vpop.f32.mrf.mxu3 }
 0x18a   : > { %2934 = vst [vmem:[%s3687_s9 + $0x60] sm:$0xff] %v2870_v44  ;;  %v2434_v51 = vadd.f32 %v2433_v49, %v3670_v9  ;;  %v2098_v53 = vpop.f32.mrf.mxu0  ;;  %v2267_v55 = vpop.f32.mrf.mxu1 }
 0x18b   : > { %v2099_v1 = vadd.f32 %v2098_v53, %v3667_v62  ;;  %v686_v49 = vpop.permute.xlu0 %685  ;;  %v700_v53 = vperm.slane %v695_v36, %v3539_v6 }
 0x18c   : > { %v2603_v58 = vadd.f32 %v2602_v52, %v2434_v51  ;;  %v1825_v51 = vpack.c.bf16 %v1731_v33, %v1729_v45  ;;  %v1174_v52 = vpack.c.bf16 %v1082_v35, %v1081_v34 }
 0x18d   : > { %2137 = vmatmul.bf16.gmra.mxu0 %v1822_v56  ;;  %2306 = vmatmul.bf16.gmra.mxu1 %v1823_v59  ;;  %v2268_v12 = vadd.f32 %v2267_v55, %v2099_v1 }
 0x18e   : > { %v2757_v0 = vmax.f32 %v2603_v58, 0.0  ;;  %2475 = vmatmul.bf16.gmra.mxu2 %v1822_v56  ;;  %2644 = vmatmul.bf16.gmra.mxu3 %v1823_v59  ;;  %v691_v58 = vperm.slane %v686_v49, %v3539_v6  ;;  %v1283_v59 = vunpack.c.h.bf16 %v1173_v46  ;;  %v1284_v61 = vunpack.c.l.bf16 %v1174_v52 }
 0x18f   : > { %v2758_v23 = vmax.f32 %v2268_v12, 0.0  ;;  %v1285_v1 = vunpack.c.h.bf16 %v1174_v52 }
 0x190   : > { %v2871_v5 = vpack.c.bf16 %v2757_v0, %v2756_v63  ;;  %v982_v63 = vunpack.c.l.bf16 %v700_v53  ;;  %v981_v7 = vunpack.c.l.bf16 %v691_v58  ;;  %v1413_v12 = vadd.f32 %v3559_v42, %v1283_v59 }
 0x191   : > { %v2436_v30 = vpop.f32.mrf.mxu2  ;;  %v2605_v14 = vpop.f32.mrf.mxu3  ;;  %v1415_v18 = vadd.f32 %v3559_v42, %v1285_v1 }
 0x192   : > { %2935 = vst [vmem:[%s3687_s9 + $0x68] sm:$0xff] %v2871_v5  ;;  %v2437_v31 = vadd.f32 %v2436_v30, %v3670_v9  ;;  %v2100_v15 = vpop.f32.mrf.mxu0  ;;  %v2269_v17 = vpop.f32.mrf.mxu1  ;;  %v1412_v30 = vadd.f32 %v3557_v41, %v1282_v57  ;;  %v1083_v20 = vmul.f32 %v3544_v10, %v981_v7  ;;  %v1084_v21 = vmul.f32 %v3546_v13, %v981_v7 }
 0x193   : > { %v2101_v25 = vadd.f32 %v2100_v15, %v3667_v62  ;;  %v1735_v33 = vmax.f32 %v1415_v18, 0.0  ;;  %v713_v38 = vpop.permute.xlu0 %712 }
 0x194   : > { %v2606_v19 = vadd.f32 %v2605_v14, %v2437_v31  ;;  %v1085_v31 = vmul.f32 %v3544_v10, %v982_v63  ;;  %v1414_v14 = vadd.f32 %v3557_v41, %v1284_v61  ;;  %v1732_v22 = vmax.f32 %v1412_v30, 0.0 }
 0x195   : > { %v2270_v39 = vadd.f32 %v2269_v17, %v2101_v25  ;;  %v1175_v35 = vpack.c.bf16 %v1084_v21, %v1083_v20  ;;  %v718_v49 = vperm.slane %v713_v38, %v3539_v6 }
 0x196   : > { %v2759_v24 = vmax.f32 %v2606_v19, 0.0  ;;  %v1086_v19 = vmul.f32 %v3546_v13, %v982_v63  ;;  %v1734_v26 = vmax.f32 %v1414_v14, 0.0 }
 0x197   : > { %v2760_v54 = vmax.f32 %v2270_v39, 0.0  ;;  %v984_v59 = vunpack.c.l.bf16 %v718_v49 }
 0x198   : > { %v2872_v32 = vpack.c.bf16 %v2759_v24, %v2758_v23  ;;  %v1733_v24 = vmax.f32 %v1413_v12, 0.0  ;;  %v1176_v34 = vpack.c.bf16 %v1086_v19, %v1085_v31 }
 0x199   : > { %v2438_v37 = vpop.f32.mrf.mxu2  ;;  %v2607_v43 = vpop.f32.mrf.mxu3  ;;  %v1090_v30 = vmul.f32 %v3546_v13, %v984_v59 }
 0x19a   : > { %2936 = vst [vmem:[%s3687_s9 + $0x70] sm:$0xff] %v2872_v32  ;;  %v2439_v40 = vadd.f32 %v2438_v37, %v3670_v9  ;;  %v2103_v44 = vpop.f32.mrf.mxu0  ;;  %v2272_v47 = vpop.f32.mrf.mxu1  ;;  %v1826_v37 = vpack.c.bf16 %v1734_v26, %v1732_v22 }
 0x19b   : > { %v2104_v56 = vadd.f32 %v2103_v44, %v3667_v62  ;;  %v722_v26 = vpop.permute.xlu1 %721 }
 0x19c   : > { %v2608_v50 = vadd.f32 %v2607_v43, %v2439_v40  ;;  %v1827_v40 = vpack.c.bf16 %v1735_v33, %v1733_v24  ;;  %v704_v43 = vpop.permute.xlu2 %703 }
 0x19d   : > { %2142 = vmatmul.bf16.gmra.mxu0 %v1824_v48  ;;  %2311 = vmatmul.bf16.gmra.mxu1 %v1825_v51  ;;  %v2273_v2 = vadd.f32 %v2272_v47, %v2104_v56  ;;  %v1288_v47 = vunpack.c.l.bf16 %v1176_v34  ;;  %v709_v53 = vperm.slane %v704_v43, %v3539_v6 }
 0x19e   : > { %v2761_v55 = vmax.f32 %v2608_v50, 0.0  ;;  %2480 = vmatmul.bf16.gmra.mxu2 %v1824_v48  ;;  %2649 = vmatmul.bf16.gmra.mxu3 %v1825_v51  ;;  %v1286_v48 = vunpack.c.l.bf16 %v1175_v35  ;;  %v1289_v50 = vunpack.c.h.bf16 %v1176_v34  ;;  %v1287_v51 = vunpack.c.h.bf16 %v1175_v35 }
 0x19f   : > { %v2762_v15 = vmax.f32 %v2273_v2, 0.0  ;;  %v1418_v63 = vadd.f32 %v3557_v41, %v1288_v47 }
 0x1a0   : > { %v2873_v60 = vpack.c.bf16 %v2761_v55, %v2760_v54  ;;  %v1416_v61 = vadd.f32 %v3557_v41, %v1286_v48  ;;  %v1417_v1 = vadd.f32 %v3559_v42, %v1287_v51  ;;  %v1419_v2 = vadd.f32 %v3559_v42, %v1289_v50 }
 0x1a1   : > { %v2441_v0 = vpop.f32.mrf.mxu2  ;;  %v2610_v4 = vpop.f32.mrf.mxu3  ;;  %v1738_v12 = vmax.f32 %v1418_v63, 0.0 }
 0x1a2   : > { %2937 = vst [vmem:[%s3687_s9 + $0x78] sm:$0xff] %v2873_v60  ;;  %v2442_v3 = vadd.f32 %v2441_v0, %v3670_v9  ;;  %v2105_v5 = vpop.f32.mrf.mxu0  ;;  %v2274_v8 = vpop.f32.mrf.mxu1  ;;  %v1737_v14 = vmax.f32 %v1417_v1, 0.0 }
 0x1a3   : > { %v2106_v17 = vadd.f32 %v2105_v5, %v3667_v62 }
 0x1a4   : > { %v2611_v11 = vadd.f32 %v2610_v4, %v2442_v3  ;;  %v983_v3 = vunpack.c.l.bf16 %v709_v53 }
 0x1a5   : > { %v2275_v27 = vadd.f32 %v2274_v8, %v2106_v17  ;;  %v1089_v8 = vmul.f32 %v3544_v10, %v984_v59 }
 0x1a6   : > { %v2763_v16 = vmax.f32 %v2611_v11, 0.0  ;;  %v1736_v11 = vmax.f32 %v1416_v61, 0.0  ;;  %v1088_v17 = vmul.f32 %v3546_v13, %v983_v3 }
 0x1a7   : > { %v2764_v44 = vmax.f32 %v2275_v27, 0.0 }
 0x1a8   : > { %v2874_v23 = vpack.c.bf16 %v2763_v16, %v2762_v15  ;;  %v1739_v15 = vmax.f32 %v1419_v2, 0.0  ;;  %v1087_v16 = vmul.f32 %v3544_v10, %v983_v3 }
 0x1a9   : > { %v2443_v25 = vpop.f32.mrf.mxu2  ;;  %v2612_v29 = vpop.f32.mrf.mxu3 }
 0x1aa   : > { %2938 = vst [vmem:[%s3687_s9 + $0x80] sm:$0xff] %v2874_v23  ;;  %v2444_v28 = vadd.f32 %v2443_v25, %v3670_v9  ;;  %v2108_v32 = vpop.f32.mrf.mxu0  ;;  %v2277_v36 = vpop.f32.mrf.mxu1  ;;  %v1178_v23 = vpack.c.bf16 %v1090_v30, %v1089_v8  ;;  %v1828_v25 = vpack.c.bf16 %v1738_v12, %v1736_v11 }
 0x1ab   : > { %v2109_v46 = vadd.f32 %v2108_v32, %v3667_v62  ;;  %v731_v32 = vpop.permute.xlu2 %730 }
 0x1ac   : > { %v2613_v39 = vadd.f32 %v2612_v29, %v2444_v28  ;;  %v1829_v28 = vpack.c.bf16 %v1739_v15, %v1737_v14  ;;  %v1177_v29 = vpack.c.bf16 %v1088_v17, %v1087_v16  ;;  %v1293_v38 = vunpack.c.h.bf16 %v1178_v23 }
 0x1ad   : > { %2147 = vmatmul.bf16.gmra.mxu0 %v1826_v37  ;;  %2316 = vmatmul.bf16.gmra.mxu1 %v1827_v40  ;;  %v2278_v55 = vadd.f32 %v2277_v36, %v2109_v46  ;;  %v727_v36 = vperm.slane %v722_v26, %v3539_v6  ;;  %v736_v43 = vperm.slane %v731_v32, %v3539_v6 }
 0x1ae   : > { %v2765_v45 = vmax.f32 %v2613_v39, 0.0  ;;  %2485 = vmatmul.bf16.gmra.mxu2 %v1826_v37  ;;  %2654 = vmatmul.bf16.gmra.mxu3 %v1827_v40  ;;  %v1292_v37 = vunpack.c.l.bf16 %v1178_v23  ;;  %v1290_v40 = vunpack.c.l.bf16 %v1177_v29 }
 0x1af   : > { %v2766_v4 = vmax.f32 %v2278_v55, 0.0  ;;  %v985_v50 = vunpack.c.l.bf16 %v727_v36  ;;  %v986_v55 = vunpack.c.l.bf16 %v736_v43 }
 0x1b0   : > { %v2875_v52 = vpack.c.bf16 %v2765_v45, %v2764_v44  ;;  %v1291_v45 = vunpack.c.h.bf16 %v1177_v29 }
 0x1b1   : > { %v2446_v54 = vpop.f32.mrf.mxu2  ;;  %v2615_v57 = vpop.f32.mrf.mxu3  ;;  %v1091_v61 = vmul.f32 %v3544_v10, %v985_v50  ;;  %v1092_v63 = vmul.f32 %v3546_v13, %v985_v50  ;;  %v1093_v3 = vmul.f32 %v3544_v10, %v986_v55 }
 0x1b2   : > { %2939 = vst [vmem:[%s3687_s9 + $0x88] sm:$0xff] %v2875_v52  ;;  %v2447_v56 = vadd.f32 %v2446_v54, %v3670_v9  ;;  %v2110_v58 = vpop.f32.mrf.mxu0  ;;  %v2279_v60 = vpop.f32.mrf.mxu1  ;;  %v1422_v52 = vadd.f32 %v3557_v41, %v1292_v37  ;;  %v1423_v54 = vadd.f32 %v3559_v42, %v1293_v38 }
 0x1b3   : > { %v2111_v7 = vadd.f32 %v2110_v58, %v3667_v62  ;;  %v1179_v15 = vpack.c.bf16 %v1092_v63, %v1091_v61 }
 0x1b4   : > { %v2616_v0 = vadd.f32 %v2615_v57, %v2447_v56  ;;  %v1420_v56 = vadd.f32 %v3557_v41, %v1290_v40  ;;  %v1743_v2 = vmax.f32 %v1423_v54, 0.0 }
 0x1b5   : > { %v2280_v19 = vadd.f32 %v2279_v60, %v2111_v7  ;;  %v1421_v60 = vadd.f32 %v3559_v42, %v1291_v45  ;;  %v1294_v26 = vunpack.c.l.bf16 %v1179_v15 }
 0x1b6   : > { %v2767_v5 = vmax.f32 %v2616_v0, 0.0  ;;  %v1742_v0 = vmax.f32 %v1422_v52, 0.0  ;;  %v1740_v8 = vmax.f32 %v1420_v56, 0.0 }
 0x1b7   : > { %v2768_v33 = vmax.f32 %v2280_v19, 0.0  ;;  %v1741_v14 = vmax.f32 %v1421_v60, 0.0 }
 0x1b8   : > { %v2876_v31 = vpack.c.bf16 %v2767_v5, %v2766_v4  ;;  %v1094_v4 = vmul.f32 %v3546_v13, %v986_v55  ;;  %v749_v5 = vpop.permute.xlu1 %748  ;;  %v1830_v17 = vpack.c.bf16 %v1742_v0, %v1740_v8 }
 0x1b9   : > { %v2448_v18 = vpop.f32.mrf.mxu2  ;;  %v2617_v21 = vpop.f32.mrf.mxu3 }
 0x1ba   : > { %2940 = vst [vmem:[%s3687_s9 + $0x90] sm:$0xff] %v2876_v31  ;;  %v2449_v20 = vadd.f32 %v2448_v18, %v3670_v9  ;;  %v2113_v22 = vpop.f32.mrf.mxu0  ;;  %v2282_v24 = vpop.f32.mrf.mxu1 }
 0x1bb   : > { %v2114_v35 = vadd.f32 %v2113_v22, %v3667_v62  ;;  %v740_v18 = vpop.permute.xlu0 %739  ;;  %v754_v22 = vperm.slane %v749_v5, %v3539_v6 }
 0x1bc   : > { %v2618_v27 = vadd.f32 %v2617_v21, %v2449_v20  ;;  %v1831_v20 = vpack.c.bf16 %v1743_v2, %v1741_v14  ;;  %v1180_v21 = vpack.c.bf16 %v1094_v4, %v1093_v3 }
 0x1bd   : > { %2152 = vmatmul.bf16.gmra.mxu0 %v1828_v25  ;;  %2321 = vmatmul.bf16.gmra.mxu1 %v1829_v28  ;;  %v2283_v46 = vadd.f32 %v2282_v24, %v2114_v35 }
 0x1be   : > { %v2769_v34 = vmax.f32 %v2618_v27, 0.0  ;;  %2490 = vmatmul.bf16.gmra.mxu2 %v1828_v25  ;;  %2659 = vmatmul.bf16.gmra.mxu3 %v1829_v28  ;;  %v745_v27 = vperm.slane %v740_v18, %v3539_v6  ;;  %v1295_v28 = vunpack.c.h.bf16 %v1179_v15  ;;  %v1296_v32 = vunpack.c.l.bf16 %v1180_v21 }
 0x1bf   : > { %v2770_v57 = vmax.f32 %v2283_v46, 0.0  ;;  %v1297_v35 = vunpack.c.h.bf16 %v1180_v21 }
 0x1c0   : > { %v2877_v39 = vpack.c.bf16 %v2769_v34, %v2768_v33  ;;  %v988_v33 = vunpack.c.l.bf16 %v754_v22  ;;  %v987_v40 = vunpack.c.l.bf16 %v745_v27  ;;  %v1425_v46 = vadd.f32 %v3559_v42, %v1295_v28 }
 0x1c1   : > { %v2451_v44 = vpop.f32.mrf.mxu2  ;;  %v2620_v48 = vpop.f32.mrf.mxu3  ;;  %v1427_v52 = vadd.f32 %v3559_v42, %v1297_v35 }
 0x1c2   : > { %2941 = vst [vmem:[%s3687_s9 + $0x98] sm:$0xff] %v2877_v39  ;;  %v2452_v47 = vadd.f32 %v2451_v44, %v3670_v9  ;;  %v2115_v49 = vpop.f32.mrf.mxu0  ;;  %v2284_v51 = vpop.f32.mrf.mxu1  ;;  %v1424_v44 = vadd.f32 %v3557_v41, %v1294_v26  ;;  %v1095_v54 = vmul.f32 %v3544_v10, %v987_v40  ;;  %v1096_v55 = vmul.f32 %v3546_v13, %v987_v40 }
 0x1c3   : > { %v2116_v59 = vadd.f32 %v2115_v49, %v3667_v62  ;;  %v1747_v2 = vmax.f32 %v1427_v52, 0.0  ;;  %v767_v8 = vpop.permute.xlu0 %766 }
 0x1c4   : > { %v2621_v53 = vadd.f32 %v2620_v48, %v2452_v47  ;;  %v1097_v47 = vmul.f32 %v3544_v10, %v988_v33  ;;  %v1426_v48 = vadd.f32 %v3557_v41, %v1296_v32  ;;  %v1744_v56 = vmax.f32 %v1424_v44, 0.0 }
 0x1c5   : > { %v2285_v30 = vadd.f32 %v2284_v51, %v2116_v59  ;;  %v1181_v4 = vpack.c.bf16 %v1096_v55, %v1095_v54  ;;  %v772_v18 = vperm.slane %v767_v8, %v3539_v6 }
 0x1c6   : > { %v2771_v58 = vmax.f32 %v2621_v53, 0.0  ;;  %v1098_v53 = vmul.f32 %v3546_v13, %v988_v33  ;;  %v1746_v60 = vmax.f32 %v1426_v48, 0.0 }
 0x1c7   : > { %v2772_v23 = vmax.f32 %v2285_v30, 0.0  ;;  %v990_v28 = vunpack.c.l.bf16 %v772_v18 }
 0x1c8   : > { %v2878_v1 = vpack.c.bf16 %v2771_v58, %v2770_v57  ;;  %v1745_v58 = vmax.f32 %v1425_v46, 0.0  ;;  %v1182_v3 = vpack.c.bf16 %v1098_v53, %v1097_v47 }
 0x1c9   : > { %v2453_v7 = vpop.f32.mrf.mxu2  ;;  %v2622_v12 = vpop.f32.mrf.mxu3  ;;  %v1102_v44 = vmul.f32 %v3546_v13, %v990_v28 }
 0x1ca   : > { %2942 = vst [vmem:[%s3687_s9 + $0xa0] sm:$0xff] %v2878_v1  ;;  %v2454_v11 = vadd.f32 %v2453_v7, %v3670_v9  ;;  %v2118_v31 = vpop.f32.mrf.mxu0  ;;  %v2287_v16 = vpop.f32.mrf.mxu1  ;;  %v1832_v7 = vpack.c.bf16 %v1746_v60, %v1744_v56 }
 0x1cb   : > { %v2119_v25 = vadd.f32 %v2118_v31, %v3667_v62  ;;  %v776_v60 = vpop.permute.xlu1 %775 }
 0x1cc   : > { %v2623_v19 = vadd.f32 %v2622_v12, %v2454_v11  ;;  %v1833_v11 = vpack.c.bf16 %v1747_v2, %v1745_v58  ;;  %v758_v12 = vpop.permute.xlu2 %757 }
 0x1cd   : > { %2157 = vmatmul.bf16.gmra.mxu0 %v1830_v17  ;;  %2326 = vmatmul.bf16.gmra.mxu1 %v1831_v20  ;;  %v2288_v36 = vadd.f32 %v2287_v16, %v2119_v25  ;;  %v1300_v16 = vunpack.c.l.bf16 %v1182_v3  ;;  %v763_v22 = vperm.slane %v758_v12, %v3539_v6 }
 0x1ce   : > { %v2773_v24 = vmax.f32 %v2623_v19, 0.0  ;;  %2495 = vmatmul.bf16.gmra.mxu2 %v1830_v17  ;;  %2664 = vmatmul.bf16.gmra.mxu3 %v1831_v20  ;;  %v1298_v17 = vunpack.c.l.bf16 %v1181_v4  ;;  %v1301_v19 = vunpack.c.h.bf16 %v1182_v3  ;;  %v1299_v20 = vunpack.c.h.bf16 %v1181_v4 }
 0x1cf   : > { %v2774_v49 = vmax.f32 %v2288_v36, 0.0  ;;  %v1430_v33 = vadd.f32 %v3557_v41, %v1300_v16 }
 0x1d0   : > { %v2879_v29 = vpack.c.bf16 %v2773_v24, %v2772_v23  ;;  %v1428_v32 = vadd.f32 %v3557_v41, %v1298_v17  ;;  %v1429_v35 = vadd.f32 %v3559_v42, %v1299_v20  ;;  %v1431_v36 = vadd.f32 %v3559_v42, %v1301_v19 }
 0x1d1   : > { %v2456_v34 = vpop.f32.mrf.mxu2  ;;  %v2625_v38 = vpop.f32.mrf.mxu3  ;;  %v1750_v46 = vmax.f32 %v1430_v33, 0.0 }
 0x1d2   : > { %2943 = vst [vmem:[%s3687_s9 + $0xa8] sm:$0xff] %v2879_v29  ;;  %v2457_v37 = vadd.f32 %v2456_v34, %v3670_v9  ;;  %v2120_v39 = vpop.f32.mrf.mxu0  ;;  %v2289_v43 = vpop.f32.mrf.mxu1  ;;  %v1749_v48 = vmax.f32 %v1429_v35, 0.0 }
 0x1d3   : > { %v2121_v51 = vadd.f32 %v2120_v39, %v3667_v62 }
 0x1d4   : > { %v2626_v45 = vadd.f32 %v2625_v38, %v2457_v37  ;;  %v989_v37 = vunpack.c.l.bf16 %v763_v22 }
 0x1d5   : > { %v2290_v61 = vadd.f32 %v2289_v43, %v2121_v51  ;;  %v1101_v43 = vmul.f32 %v3544_v10, %v990_v28 }
 0x1d6   : > { %v2775_v50 = vmax.f32 %v2626_v45, 0.0  ;;  %v1748_v45 = vmax.f32 %v1428_v32, 0.0  ;;  %v1100_v51 = vmul.f32 %v3546_v13, %v989_v37 }
 0x1d7   : > { %v2776_v31 = vmax.f32 %v2290_v61, 0.0 }
 0x1d8   : > { %v2880_v57 = vpack.c.bf16 %v2775_v50, %v2774_v49  ;;  %v1751_v49 = vmax.f32 %v1431_v36, 0.0  ;;  %v1099_v50 = vmul.f32 %v3544_v10, %v989_v37 }
 0x1d9   : > { %v2458_v59 = vpop.f32.mrf.mxu2  ;;  %v2627_v0 = vpop.f32.mrf.mxu3 }
 0x1da   : > { %2944 = vst [vmem:[%s3687_s9 + $0xb0] sm:$0xff] %v2880_v57  ;;  %v2459_v63 = vadd.f32 %v2458_v59, %v3670_v9  ;;  %v2123_v1 = vpop.f32.mrf.mxu0  ;;  %v2292_v5 = vpop.f32.mrf.mxu1  ;;  %v1184_v57 = vpack.c.bf16 %v1102_v44, %v1101_v43  ;;  %v1834_v59 = vpack.c.bf16 %v1750_v46, %v1748_v45 }
 0x1db   : > { %v2124_v15 = vadd.f32 %v2123_v1, %v3667_v62  ;;  %v785_v1 = vpop.permute.xlu2 %784 }
 0x1dc   : > { %v2628_v30 = vadd.f32 %v2627_v0, %v2459_v63  ;;  %v1835_v63 = vpack.c.bf16 %v1751_v49, %v1749_v48  ;;  %v1183_v0 = vpack.c.bf16 %v1100_v51, %v1099_v50  ;;  %v1305_v8 = vunpack.c.h.bf16 %v1184_v57 }
 0x1dd   : > { %2162 = vmatmul.bf16.gmra.mxu0 %v1832_v7  ;;  %2331 = vmatmul.bf16.gmra.mxu1 %v1833_v11  ;;  %v2293_v24 = vadd.f32 %v2292_v5, %v2124_v15  ;;  %v781_v5 = vperm.slane %v776_v60, %v3539_v6  ;;  %v790_v12 = vperm.slane %v785_v1, %v3539_v6 }
 0x1de   : > { %v2777_v14 = vmax.f32 %v2628_v30, 0.0  ;;  %2500 = vmatmul.bf16.gmra.mxu2 %v1832_v7  ;;  %2669 = vmatmul.bf16.gmra.mxu3 %v1833_v11  ;;  %v1304_v7 = vunpack.c.l.bf16 %v1184_v57  ;;  %v1302_v11 = vunpack.c.l.bf16 %v1183_v0 }
 0x1df   : > { %v2778_v38 = vmax.f32 %v2293_v24, 0.0  ;;  %v991_v19 = vunpack.c.l.bf16 %v781_v5  ;;  %v992_v24 = vunpack.c.l.bf16 %v790_v12 }
 0x1e0   : > { %v2881_v21 = vpack.c.bf16 %v2777_v14, %v2776_v31  ;;  %v1303_v14 = vunpack.c.h.bf16 %v1183_v0 }
 0x1e1   : > { %v2461_v23 = vpop.f32.mrf.mxu2  ;;  %v2630_v26 = vpop.f32.mrf.mxu3  ;;  %v1103_v32 = vmul.f32 %v3544_v10, %v991_v19  ;;  %v1104_v33 = vmul.f32 %v3546_v13, %v991_v19  ;;  %v1105_v37 = vmul.f32 %v3544_v10, %v992_v24 }
 0x1e2   : > { %2945 = vst [vmem:[%s3687_s9 + $0xb8] sm:$0xff] %v2881_v21  ;;  %v2462_v25 = vadd.f32 %v2461_v23, %v3670_v9  ;;  %v2125_v27 = vpop.f32.mrf.mxu0  ;;  %v2294_v29 = vpop.f32.mrf.mxu1  ;;  %v1434_v21 = vadd.f32 %v3557_v41, %v1304_v7  ;;  %v1435_v23 = vadd.f32 %v3559_v42, %v1305_v8 }
 0x1e3   : > { %v2126_v40 = vadd.f32 %v2125_v27, %v3667_v62  ;;  %v1185_v49 = vpack.c.bf16 %v1104_v33, %v1103_v32 }
 0x1e4   : > { %v2631_v34 = vadd.f32 %v2630_v26, %v2462_v25  ;;  %v1432_v25 = vadd.f32 %v3557_v41, %v1302_v11  ;;  %v1755_v36 = vmax.f32 %v1435_v23, 0.0 }
 0x1e5   : > { %v2295_v53 = vadd.f32 %v2294_v29, %v2126_v40  ;;  %v1433_v29 = vadd.f32 %v3559_v42, %v1303_v14  ;;  %v1306_v60 = vunpack.c.l.bf16 %v1185_v49 }
 0x1e6   : > { %v2779_v39 = vmax.f32 %v2631_v34, 0.0  ;;  %v1754_v34 = vmax.f32 %v1434_v21, 0.0  ;;  %v1752_v43 = vmax.f32 %v1432_v25, 0.0 }
 0x1e7   : > { %v2780_v2 = vmax.f32 %v2295_v53, 0.0  ;;  %v1753_v48 = vmax.f32 %v1433_v29, 0.0 }
 0x1e8   : > { %v2882_v47 = vpack.c.bf16 %v2779_v39, %v2778_v38  ;;  %v1106_v38 = vmul.f32 %v3546_v13, %v992_v24  ;;  %v803_v39 = vpop.permute.xlu1 %802  ;;  %v1836_v51 = vpack.c.bf16 %v1754_v34, %v1752_v43 }
 0x1e9   : > { %v2463_v52 = vpop.f32.mrf.mxu2  ;;  %v2632_v55 = vpop.f32.mrf.mxu3 }
 0x1ea   : > { %2946 = vst [vmem:[%s3687_s9 + $0xc0] sm:$0xff] %v2882_v47  ;;  %v2464_v54 = vadd.f32 %v2463_v52, %v3670_v9  ;;  %v2128_v56 = vpop.f32.mrf.mxu0  ;;  %v2297_v58 = vpop.f32.mrf.mxu1 }
 0x1eb   : > { %v2129_v4 = vadd.f32 %v2128_v56, %v3667_v62  ;;  %v794_v52 = vpop.permute.xlu0 %793  ;;  %v808_v56 = vperm.slane %v803_v39, %v3539_v6 }
 0x1ec   : > { %v2633_v61 = vadd.f32 %v2632_v55, %v2464_v54  ;;  %v1837_v54 = vpack.c.bf16 %v1755_v36, %v1753_v48  ;;  %v1186_v55 = vpack.c.bf16 %v1106_v38, %v1105_v37 }
 0x1ed   : > { %2167 = vmatmul.bf16.gmra.mxu0 %v1834_v59  ;;  %2336 = vmatmul.bf16.gmra.mxu1 %v1835_v63  ;;  %v2298_v15 = vadd.f32 %v2297_v58, %v2129_v4 }
 0x1ee   : > { %v2781_v3 = vmax.f32 %v2633_v61, 0.0  ;;  %2505 = vmatmul.bf16.gmra.mxu2 %v1834_v59  ;;  %2674 = vmatmul.bf16.gmra.mxu3 %v1835_v63  ;;  %v799_v61 = vperm.slane %v794_v52, %v3539_v6  ;;  %v1307_v63 = vunpack.c.h.bf16 %v1185_v49  ;;  %v1308_v1 = vunpack.c.l.bf16 %v1186_v55 }
 0x1ef   : > { %v2782_v26 = vmax.f32 %v2298_v15, 0.0  ;;  %v1309_v4 = vunpack.c.h.bf16 %v1186_v55 }
 0x1f0   : > { %v2883_v30 = vpack.c.bf16 %v2781_v3, %v2780_v2  ;;  %v994_v2 = vunpack.c.l.bf16 %v808_v56  ;;  %v993_v11 = vunpack.c.l.bf16 %v799_v61  ;;  %v1437_v15 = vadd.f32 %v3559_v42, %v1307_v63 }
 0x1f1   : > { %v2466_v31 = vpop.f32.mrf.mxu2  ;;  %v2635_v17 = vpop.f32.mrf.mxu3  ;;  %v1439_v21 = vadd.f32 %v3559_v42, %v1309_v4 }
 0x1f2   : > { %2947 = vst [vmem:[%s3687_s9 + $0xc8] sm:$0xff] %v2883_v30  ;;  %v2467_v16 = vadd.f32 %v2466_v31, %v3670_v9  ;;  %v2130_v18 = vpop.f32.mrf.mxu0  ;;  %v2299_v20 = vpop.f32.mrf.mxu1  ;;  %v1436_v31 = vadd.f32 %v3557_v41, %v1306_v60  ;;  %v1107_v23 = vmul.f32 %v3544_v10, %v993_v11  ;;  %v1108_v24 = vmul.f32 %v3546_v13, %v993_v11 }
 0x1f3   : > { %v2131_v28 = vadd.f32 %v2130_v18, %v3667_v62  ;;  %v1759_v36 = vmax.f32 %v1439_v21, 0.0  ;;  %v821_v43 = vpop.permute.xlu0 %820 }
 0x1f4   : > { %v2636_v22 = vadd.f32 %v2635_v17, %v2467_v16  ;;  %v1109_v16 = vmul.f32 %v3544_v10, %v994_v2  ;;  %v1438_v17 = vadd.f32 %v3557_v41, %v1308_v1  ;;  %v1756_v25 = vmax.f32 %v1436_v31, 0.0 }
 0x1f5   : > { %v2300_v44 = vadd.f32 %v2299_v20, %v2131_v28  ;;  %v1187_v38 = vpack.c.bf16 %v1108_v24, %v1107_v23  ;;  %v826_v52 = vperm.slane %v821_v43, %v3539_v6 }
 0x1f6   : > { %v2783_v27 = vmax.f32 %v2636_v22, 0.0  ;;  %v1110_v22 = vmul.f32 %v3546_v13, %v994_v2  ;;  %v1758_v29 = vmax.f32 %v1438_v17, 0.0 }
 0x1f7   : > { %v2784_v57 = vmax.f32 %v2300_v44, 0.0  ;;  %v996_v63 = vunpack.c.l.bf16 %v826_v52 }
 0x1f8   : > { %v2884_v35 = vpack.c.bf16 %v2783_v27, %v2782_v26  ;;  %v1757_v27 = vmax.f32 %v1437_v15, 0.0  ;;  %v1188_v37 = vpack.c.bf16 %v1110_v22, %v1109_v16 }
 0x1f9   : > { %v2468_v40 = vpop.f32.mrf.mxu2  ;;  %v2637_v46 = vpop.f32.mrf.mxu3  ;;  %v1114_v31 = vmul.f32 %v3546_v13, %v996_v63 }
 0x1fa   : > { %2948 = vst [vmem:[%s3687_s9 + $0xd0] sm:$0xff] %v2884_v35  ;;  %v2469_v45 = vadd.f32 %v2468_v40, %v3670_v9  ;;  %v2133_v47 = vpop.f32.mrf.mxu0  ;;  %v2302_v50 = vpop.f32.mrf.mxu1  ;;  %v1838_v40 = vpack.c.bf16 %v1758_v29, %v1756_v25 }
 0x1fb   : > { %v2134_v59 = vadd.f32 %v2133_v47, %v3667_v62  ;;  %v830_v29 = vpop.permute.xlu1 %829 }
 0x1fc   : > { %v2638_v53 = vadd.f32 %v2637_v46, %v2469_v45  ;;  %v1839_v45 = vpack.c.bf16 %v1759_v36, %v1757_v27  ;;  %v812_v46 = vpop.permute.xlu2 %811 }
 0x1fd   : > { %2172 = vmatmul.bf16.gmra.mxu0 %v1836_v51  ;;  %2341 = vmatmul.bf16.gmra.mxu1 %v1837_v54  ;;  %v2303_v5 = vadd.f32 %v2302_v50, %v2134_v59  ;;  %v1312_v50 = vunpack.c.l.bf16 %v1188_v37  ;;  %v817_v56 = vperm.slane %v812_v46, %v3539_v6 }
 0x1fe   : > { %v2785_v58 = vmax.f32 %v2638_v53, 0.0  ;;  %2510 = vmatmul.bf16.gmra.mxu2 %v1836_v51  ;;  %2679 = vmatmul.bf16.gmra.mxu3 %v1837_v54  ;;  %v1310_v51 = vunpack.c.l.bf16 %v1187_v38  ;;  %v1313_v53 = vunpack.c.h.bf16 %v1188_v37  ;;  %v1311_v54 = vunpack.c.h.bf16 %v1187_v38 }
 0x1ff   : > { %v2786_v18 = vmax.f32 %v2303_v5, 0.0  ;;  %v1442_v2 = vadd.f32 %v3557_v41, %v1312_v50 }
 0x200   : > { %v2885_v0 = vpack.c.bf16 %v2785_v58, %v2784_v57  ;;  %v1440_v1 = vadd.f32 %v3557_v41, %v1310_v51  ;;  %v1441_v4 = vadd.f32 %v3559_v42, %v1311_v54  ;;  %v1443_v5 = vadd.f32 %v3559_v42, %v1313_v53 }
 0x201   : > { %v2471_v3 = vpop.f32.mrf.mxu2  ;;  %v2640_v8 = vpop.f32.mrf.mxu3  ;;  %v1762_v15 = vmax.f32 %v1442_v2, 0.0 }
 0x202   : > { %2949 = vst [vmem:[%s3687_s9 + $0xd8] sm:$0xff] %v2885_v0  ;;  %v2472_v7 = vadd.f32 %v2471_v3, %v3670_v9  ;;  %v2135_v30 = vpop.f32.mrf.mxu0  ;;  %v2304_v12 = vpop.f32.mrf.mxu1  ;;  %v1761_v17 = vmax.f32 %v1441_v4, 0.0 }
 0x203   : > { %v2136_v20 = vadd.f32 %v2135_v30, %v3667_v62 }
 0x204   : > { %v2641_v14 = vadd.f32 %v2640_v8, %v2472_v7  ;;  %v995_v7 = vunpack.c.l.bf16 %v817_v56 }
 0x205   : > { %v2305_v32 = vadd.f32 %v2304_v12, %v2136_v20  ;;  %v1113_v12 = vmul.f32 %v3544_v10, %v996_v63 }
 0x206   : > { %v2787_v19 = vmax.f32 %v2641_v14, 0.0  ;;  %v1760_v14 = vmax.f32 %v1440_v1, 0.0  ;;  %v1112_v20 = vmul.f32 %v3546_v13, %v995_v7 }
 0x207   : > { %v2788_v47 = vmax.f32 %v2305_v32, 0.0 }
 0x208   : > { %v2886_v26 = vpack.c.bf16 %v2787_v19, %v2786_v18  ;;  %v1763_v18 = vmax.f32 %v1443_v5, 0.0  ;;  %v1111_v19 = vmul.f32 %v3544_v10, %v995_v7 }
 0x209   : > { %v2473_v28 = vpop.f32.mrf.mxu2  ;;  %v2642_v34 = vpop.f32.mrf.mxu3 }
 0x20a   : > { %2950 = vst [vmem:[%s3687_s9 + $0xe0] sm:$0xff] %v2886_v26  ;;  %v2474_v33 = vadd.f32 %v2473_v28, %v3670_v9  ;;  %v2138_v35 = vpop.f32.mrf.mxu0  ;;  %v2307_v39 = vpop.f32.mrf.mxu1  ;;  %v1190_v26 = vpack.c.bf16 %v1114_v31, %v1113_v12  ;;  %v1840_v28 = vpack.c.bf16 %v1762_v15, %v1760_v14 }
 0x20b   : > { %v2139_v49 = vadd.f32 %v2138_v35, %v3667_v62  ;;  %v839_v35 = vpop.permute.xlu2 %838 }
 0x20c   : > { %v2643_v44 = vadd.f32 %v2642_v34, %v2474_v33  ;;  %v1841_v33 = vpack.c.bf16 %v1763_v18, %v1761_v17  ;;  %v1189_v34 = vpack.c.bf16 %v1112_v20, %v1111_v19  ;;  %v1317_v43 = vunpack.c.h.bf16 %v1190_v26 }
 0x20d   : > { %2177 = vmatmul.bf16.gmra.mxu0 %v1838_v40  ;;  %2346 = vmatmul.bf16.gmra.mxu1 %v1839_v45  ;;  %v2308_v58 = vadd.f32 %v2307_v39, %v2139_v49  ;;  %v835_v39 = vperm.slane %v830_v29, %v3539_v6  ;;  %v844_v46 = vperm.slane %v839_v35, %v3539_v6 }
 0x20e   : > { %v2789_v48 = vmax.f32 %v2643_v44, 0.0  ;;  %2515 = vmatmul.bf16.gmra.mxu2 %v1838_v40  ;;  %2684 = vmatmul.bf16.gmra.mxu3 %v1839_v45  ;;  %v1316_v40 = vunpack.c.l.bf16 %v1190_v26  ;;  %v1314_v45 = vunpack.c.l.bf16 %v1189_v34 }
 0x20f   : > { %v2790_v8 = vmax.f32 %v2308_v58, 0.0  ;;  %v997_v53 = vunpack.c.l.bf16 %v835_v39  ;;  %v998_v58 = vunpack.c.l.bf16 %v844_v46 }
 0x210   : > { %v2887_v55 = vpack.c.bf16 %v2789_v48, %v2788_v47  ;;  %v1315_v48 = vunpack.c.h.bf16 %v1189_v34 }
 0x211   : > { %v2476_v57 = vpop.f32.mrf.mxu2  ;;  %v2645_v60 = vpop.f32.mrf.mxu3  ;;  %v1115_v1 = vmul.f32 %v3544_v10, %v997_v53  ;;  %v1116_v2 = vmul.f32 %v3546_v13, %v997_v53  ;;  %v1117_v7 = vmul.f32 %v3544_v10, %v998_v58 }
 0x212   : > { %2951 = vst [vmem:[%s3687_s9 + $0xe8] sm:$0xff] %v2887_v55  ;;  %v2477_v59 = vadd.f32 %v2476_v57, %v3670_v9  ;;  %v2140_v61 = vpop.f32.mrf.mxu0  ;;  %v2309_v0 = vpop.f32.mrf.mxu1  ;;  %v1446_v55 = vadd.f32 %v3557_v41, %v1316_v40  ;;  %v1447_v57 = vadd.f32 %v3559_v42, %v1317_v43 }
 0x213   : > { %v2141_v11 = vadd.f32 %v2140_v61, %v3667_v62  ;;  %v1191_v18 = vpack.c.bf16 %v1116_v2, %v1115_v1 }
 0x214   : > { %v2646_v3 = vadd.f32 %v2645_v60, %v2477_v59  ;;  %v1444_v59 = vadd.f32 %v3557_v41, %v1314_v45  ;;  %v1767_v5 = vmax.f32 %v1447_v57, 0.0 }
 0x215   : > { %v2310_v22 = vadd.f32 %v2309_v0, %v2141_v11  ;;  %v1445_v0 = vadd.f32 %v3559_v42, %v1315_v48  ;;  %v1318_v29 = vunpack.c.l.bf16 %v1191_v18 }
 0x216   : > { %v2791_v30 = vmax.f32 %v2646_v3, 0.0  ;;  %v1766_v3 = vmax.f32 %v1446_v55, 0.0  ;;  %v1764_v12 = vmax.f32 %v1444_v59, 0.0 }
 0x217   : > { %v2792_v36 = vmax.f32 %v2310_v22, 0.0  ;;  %v1765_v17 = vmax.f32 %v1445_v0, 0.0 }
 0x218   : > { %v2888_v16 = vpack.c.bf16 %v2791_v30, %v2790_v8  ;;  %v1118_v8 = vmul.f32 %v3546_v13, %v998_v58  ;;  %v857_v30 = vpop.permute.xlu1 %856  ;;  %v1842_v20 = vpack.c.bf16 %v1766_v3, %v1764_v12 }
 0x219   : > { %v2478_v21 = vpop.f32.mrf.mxu2  ;;  %v2647_v24 = vpop.f32.mrf.mxu3 }
 0x21a   : > { %2952 = vst [vmem:[%s3687_s9 + $0xf0] sm:$0xff] %v2888_v16  ;;  %v2479_v23 = vadd.f32 %v2478_v21, %v3670_v9  ;;  %v2143_v25 = vpop.f32.mrf.mxu0  ;;  %v2312_v27 = vpop.f32.mrf.mxu1 }
 0x21b   : > { %v2144_v38 = vadd.f32 %v2143_v25, %v3667_v62  ;;  %v848_v21 = vpop.permute.xlu0 %847  ;;  %v862_v25 = vperm.slane %v857_v30, %v3539_v6 }
 0x21c   : > { %v2648_v32 = vadd.f32 %v2647_v24, %v2479_v23  ;;  %v1843_v23 = vpack.c.bf16 %v1767_v5, %v1765_v17  ;;  %v1192_v24 = vpack.c.bf16 %v1118_v8, %v1117_v7 }
 0x21d   : > { %2182 = vmatmul.bf16.gmra.mxu0 %v1840_v28  ;;  %2351 = vmatmul.bf16.gmra.mxu1 %v1841_v33  ;;  %v2313_v49 = vadd.f32 %v2312_v27, %v2144_v38 }
 0x21e   : > { %v2793_v37 = vmax.f32 %v2648_v32, 0.0  ;;  %2520 = vmatmul.bf16.gmra.mxu2 %v1840_v28  ;;  %2689 = vmatmul.bf16.gmra.mxu3 %v1841_v33  ;;  %v853_v32 = vperm.slane %v848_v21, %v3539_v6  ;;  %v1319_v33 = vunpack.c.h.bf16 %v1191_v18  ;;  %v1320_v35 = vunpack.c.l.bf16 %v1192_v24 }
 0x21f   : > { %v2794_v60 = vmax.f32 %v2313_v49, 0.0  ;;  %v1321_v38 = vunpack.c.h.bf16 %v1192_v24 }
 0x220   : > { %v2889_v44 = vpack.c.bf16 %v2793_v37, %v2792_v36  ;;  %v1000_v36 = vunpack.c.l.bf16 %v862_v25  ;;  %v999_v45 = vunpack.c.l.bf16 %v853_v32  ;;  %v1449_v49 = vadd.f32 %v3559_v42, %v1319_v33 }
 0x221   : > { %v2481_v47 = vpop.f32.mrf.mxu2  ;;  %v2650_v51 = vpop.f32.mrf.mxu3  ;;  %v1451_v55 = vadd.f32 %v3559_v42, %v1321_v38 }
 0x222   : > { %2953 = vst [vmem:[%s3687_s9 + $0xf8] sm:$0xff] %v2889_v44  ;;  %v2482_v50 = vadd.f32 %v2481_v47, %v3670_v9  ;;  %v2145_v52 = vpop.f32.mrf.mxu0  ;;  %v2314_v54 = vpop.f32.mrf.mxu1  ;;  %v1448_v47 = vadd.f32 %v3557_v41, %v1318_v29  ;;  %v1119_v57 = vmul.f32 %v3544_v10, %v999_v45  ;;  %v1120_v58 = vmul.f32 %v3546_v13, %v999_v45 }
 0x223   : > { %v2146_v63 = vadd.f32 %v2145_v52, %v3667_v62  ;;  %v1771_v5 = vmax.f32 %v1451_v55, 0.0  ;;  %v875_v12 = vpop.permute.xlu0 %874 }
 0x224   : > { %v2651_v56 = vadd.f32 %v2650_v51, %v2482_v50  ;;  %v1121_v50 = vmul.f32 %v3544_v10, %v1000_v36  ;;  %v1450_v51 = vadd.f32 %v3557_v41, %v1320_v35  ;;  %v1768_v59 = vmax.f32 %v1448_v47, 0.0 }
 0x225   : > { %v2315_v31 = vadd.f32 %v2314_v54, %v2146_v63  ;;  %v1193_v8 = vpack.c.bf16 %v1120_v58, %v1119_v57  ;;  %v880_v21 = vperm.slane %v875_v12, %v3539_v6 }
 0x226   : > { %v2795_v61 = vmax.f32 %v2651_v56, 0.0  ;;  %v1122_v56 = vmul.f32 %v3546_v13, %v1000_v36  ;;  %v1770_v0 = vmax.f32 %v1450_v51, 0.0 }
 0x227   : > { %v2796_v26 = vmax.f32 %v2315_v31, 0.0  ;;  %v1002_v33 = vunpack.c.l.bf16 %v880_v21 }
 0x228   : > { %v2890_v4 = vpack.c.bf16 %v2795_v61, %v2794_v60  ;;  %v1769_v61 = vmax.f32 %v1449_v49, 0.0  ;;  %v1194_v7 = vpack.c.bf16 %v1122_v56, %v1121_v50 }
 0x229   : > { %v2483_v11 = vpop.f32.mrf.mxu2  ;;  %v2652_v15 = vpop.f32.mrf.mxu3  ;;  %v1126_v47 = vmul.f32 %v3546_v13, %v1002_v33 }
 0x22a   : > { %2954 = vst [vmem:[%s3687_s9 + $0x100] sm:$0xff] %v2890_v4  ;;  %v2484_v14 = vadd.f32 %v2483_v11, %v3670_v9  ;;  %v2148_v16 = vpop.f32.mrf.mxu0  ;;  %v2317_v19 = vpop.f32.mrf.mxu1  ;;  %v1844_v11 = vpack.c.bf16 %v1770_v0, %v1768_v59 }
 0x22b   : > { %v2149_v28 = vadd.f32 %v2148_v16, %v3667_v62  ;;  %v884_v0 = vpop.permute.xlu1 %883 }
 0x22c   : > { %v2653_v22 = vadd.f32 %v2652_v15, %v2484_v14  ;;  %v1845_v14 = vpack.c.bf16 %v1771_v5, %v1769_v61  ;;  %v866_v15 = vpop.permute.xlu2 %865 }
 0x22d   : > { %2187 = vmatmul.bf16.gmra.mxu0 %v1842_v20  ;;  %2356 = vmatmul.bf16.gmra.mxu1 %v1843_v23  ;;  %v2318_v39 = vadd.f32 %v2317_v19, %v2149_v28  ;;  %v1324_v19 = vunpack.c.l.bf16 %v1194_v7  ;;  %v871_v25 = vperm.slane %v866_v15, %v3539_v6 }
 0x22e   : > { %v2797_v27 = vmax.f32 %v2653_v22, 0.0  ;;  %2525 = vmatmul.bf16.gmra.mxu2 %v1842_v20  ;;  %2694 = vmatmul.bf16.gmra.mxu3 %v1843_v23  ;;  %v1322_v20 = vunpack.c.l.bf16 %v1193_v8  ;;  %v1325_v22 = vunpack.c.h.bf16 %v1194_v7  ;;  %v1323_v23 = vunpack.c.h.bf16 %v1193_v8 }
 0x22f   : > { %v2798_v52 = vmax.f32 %v2318_v39, 0.0  ;;  %v1454_v36 = vadd.f32 %v3557_v41, %v1324_v19 }
 0x230   : > { %v2891_v34 = vpack.c.bf16 %v2797_v27, %v2796_v26  ;;  %v1452_v35 = vadd.f32 %v3557_v41, %v1322_v20  ;;  %v1453_v38 = vadd.f32 %v3559_v42, %v1323_v23  ;;  %v1455_v39 = vadd.f32 %v3559_v42, %v1325_v22 }
 0x231   : > { %v2486_v37 = vpop.f32.mrf.mxu2  ;;  %v2655_v43 = vpop.f32.mrf.mxu3  ;;  %v1774_v49 = vmax.f32 %v1454_v36, 0.0 }
 0x232   : > { %2955 = vst [vmem:[%s3687_s9 + $0x108] sm:$0xff] %v2891_v34  ;;  %v2487_v40 = vadd.f32 %v2486_v37, %v3670_v9  ;;  %v2150_v44 = vpop.f32.mrf.mxu0  ;;  %v2319_v46 = vpop.f32.mrf.mxu1  ;;  %v1773_v51 = vmax.f32 %v1453_v38, 0.0 }
 0x233   : > { %v2151_v54 = vadd.f32 %v2150_v44, %v3667_v62 }
 0x234   : > { %v2656_v48 = vadd.f32 %v2655_v43, %v2487_v40  ;;  %v1001_v40 = vunpack.c.l.bf16 %v871_v25 }
 0x235   : > { %v2320_v1 = vadd.f32 %v2319_v46, %v2151_v54  ;;  %v1125_v46 = vmul.f32 %v3544_v10, %v1002_v33 }
 0x236   : > { %v2799_v53 = vmax.f32 %v2656_v48, 0.0  ;;  %v1772_v48 = vmax.f32 %v1452_v35, 0.0  ;;  %v1124_v54 = vmul.f32 %v3546_v13, %v1001_v40 }
 0x237   : > { %v2800_v16 = vmax.f32 %v2320_v1, 0.0 }
 0x238   : > { %v2892_v60 = vpack.c.bf16 %v2799_v53, %v2798_v52  ;;  %v1775_v52 = vmax.f32 %v1455_v39, 0.0  ;;  %v1123_v53 = vmul.f32 %v3544_v10, %v1001_v40 }
 0x239   : > { %v2488_v63 = vpop.f32.mrf.mxu2  ;;  %v2657_v3 = vpop.f32.mrf.mxu3 }
 0x23a   : > { %2956 = vst [vmem:[%s3687_s9 + $0x110] sm:$0xff] %v2892_v60  ;;  %v2489_v2 = vadd.f32 %v2488_v63, %v3670_v9  ;;  %v2153_v4 = vpop.f32.mrf.mxu0  ;;  %v2322_v30 = vpop.f32.mrf.mxu1  ;;  %v1196_v60 = vpack.c.bf16 %v1126_v47, %v1125_v46  ;;  %v1846_v63 = vpack.c.bf16 %v1774_v49, %v1772_v48 }
 0x23b   : > { %v2154_v18 = vadd.f32 %v2153_v4, %v3667_v62  ;;  %v893_v4 = vpop.permute.xlu2 %892 }
 0x23c   : > { %v2658_v31 = vadd.f32 %v2657_v3, %v2489_v2  ;;  %v1847_v2 = vpack.c.bf16 %v1775_v52, %v1773_v51  ;;  %v1195_v3 = vpack.c.bf16 %v1124_v54, %v1123_v53  ;;  %v1329_v12 = vunpack.c.h.bf16 %v1196_v60 }
 0x23d   : > { %2192 = vmatmul.bf16.gmra.mxu0 %v1844_v11  ;;  %2361 = vmatmul.bf16.gmra.mxu1 %v1845_v14  ;;  %v2323_v27 = vadd.f32 %v2322_v30, %v2154_v18  ;;  %v889_v30 = vperm.slane %v884_v0, %v3539_v6  ;;  %v898_v15 = vperm.slane %v893_v4, %v3539_v6 }
 0x23e   : > { %v2801_v17 = vmax.f32 %v2658_v31, 0.0  ;;  %2530 = vmatmul.bf16.gmra.mxu2 %v1844_v11  ;;  %2699 = vmatmul.bf16.gmra.mxu3 %v1845_v14  ;;  %v1328_v11 = vunpack.c.l.bf16 %v1196_v60  ;;  %v1326_v14 = vunpack.c.l.bf16 %v1195_v3 }
 0x23f   : > { %v2802_v43 = vmax.f32 %v2323_v27, 0.0  ;;  %v1003_v22 = vunpack.c.l.bf16 %v889_v30  ;;  %v1004_v27 = vunpack.c.l.bf16 %v898_v15 }
 0x240   : > { %v2893_v24 = vpack.c.bf16 %v2801_v17, %v2800_v16  ;;  %v1327_v17 = vunpack.c.h.bf16 %v1195_v3 }
 0x241   : > { %v2491_v26 = vpop.f32.mrf.mxu2  ;;  %v2660_v29 = vpop.f32.mrf.mxu3  ;;  %v1127_v35 = vmul.f32 %v3544_v10, %v1003_v22  ;;  %v1128_v36 = vmul.f32 %v3546_v13, %v1003_v22  ;;  %v1129_v40 = vmul.f32 %v3544_v10, %v1004_v27 }
 0x242   : > { %2957 = vst [vmem:[%s3687_s9 + $0x118] sm:$0xff] %v2893_v24  ;;  %v2492_v28 = vadd.f32 %v2491_v26, %v3670_v9  ;;  %v2155_v32 = vpop.f32.mrf.mxu0  ;;  %v2324_v34 = vpop.f32.mrf.mxu1  ;;  %v1458_v24 = vadd.f32 %v3557_v41, %v1328_v11  ;;  %v1459_v26 = vadd.f32 %v3559_v42, %v1329_v12 }
 0x243   : > { %v2156_v45 = vadd.f32 %v2155_v32, %v3667_v62  ;;  %v1197_v52 = vpack.c.bf16 %v1128_v36, %v1127_v35 }
 0x244   : > { %v2661_v37 = vadd.f32 %v2660_v29, %v2492_v28  ;;  %v1456_v28 = vadd.f32 %v3557_v41, %v1326_v14  ;;  %v1779_v39 = vmax.f32 %v1459_v26, 0.0 }
 0x245   : > { %v2325_v56 = vadd.f32 %v2324_v34, %v2156_v45  ;;  %v1457_v34 = vadd.f32 %v3559_v42, %v1327_v17  ;;  %v1330_v0 = vunpack.c.l.bf16 %v1197_v52 }
 0x246   : > { %v2803_v44 = vmax.f32 %v2661_v37, 0.0  ;;  %v1778_v37 = vmax.f32 %v1458_v24, 0.0  ;;  %v1776_v46 = vmax.f32 %v1456_v28, 0.0 }
 0x247   : > { %v2804_v5 = vmax.f32 %v2325_v56, 0.0  ;;  %v1777_v51 = vmax.f32 %v1457_v34, 0.0 }
 0x248   : > { %v2894_v50 = vpack.c.bf16 %v2803_v44, %v2802_v43  ;;  %v1130_v43 = vmul.f32 %v3546_v13, %v1004_v27  ;;  %v911_v44 = vpop.permute.xlu1 %910  ;;  %v1848_v54 = vpack.c.bf16 %v1778_v37, %v1776_v46 }
 0x249   : > { %v2493_v55 = vpop.f32.mrf.mxu2  ;;  %v2662_v58 = vpop.f32.mrf.mxu3 }
 0x24a   : > { %2958 = vst [vmem:[%s3687_s9 + $0x120] sm:$0xff] %v2894_v50  ;;  %v2494_v57 = vadd.f32 %v2493_v55, %v3670_v9  ;;  %v2158_v59 = vpop.f32.mrf.mxu0  ;;  %v2327_v61 = vpop.f32.mrf.mxu1 }
 0x24b   : > { %v2159_v8 = vadd.f32 %v2158_v59, %v3667_v62  ;;  %v902_v55 = vpop.permute.xlu0 %901  ;;  %v916_v59 = vperm.slane %v911_v44, %v3539_v6 }
 0x24c   : > { %v2663_v1 = vadd.f32 %v2662_v58, %v2494_v57  ;;  %v1849_v57 = vpack.c.bf16 %v1779_v39, %v1777_v51  ;;  %v1198_v58 = vpack.c.bf16 %v1130_v43, %v1129_v40 }
 0x24d   : > { %2197 = vmatmul.bf16.gmra.mxu0 %v1846_v63  ;;  %2366 = vmatmul.bf16.gmra.mxu1 %v1847_v2  ;;  %v2328_v18 = vadd.f32 %v2327_v61, %v2159_v8 }
 0x24e   : > { %v2805_v7 = vmax.f32 %v2663_v1, 0.0  ;;  %2535 = vmatmul.bf16.gmra.mxu2 %v1846_v63  ;;  %2704 = vmatmul.bf16.gmra.mxu3 %v1847_v2  ;;  %v907_v1 = vperm.slane %v902_v55, %v3539_v6  ;;  %v1331_v2 = vunpack.c.h.bf16 %v1197_v52  ;;  %v1332_v4 = vunpack.c.l.bf16 %v1198_v58 }
 0x24f   : > { %v2806_v29 = vmax.f32 %v2328_v18, 0.0  ;;  %v1333_v8 = vunpack.c.h.bf16 %v1198_v58 }
 0x250   : > { %v2895_v31 = vpack.c.bf16 %v2805_v7, %v2804_v5  ;;  %v1006_v5 = vunpack.c.l.bf16 %v916_v59  ;;  %v1005_v14 = vunpack.c.l.bf16 %v907_v1  ;;  %v1461_v18 = vadd.f32 %v3559_v42, %v1331_v2 }
 0x251   : > { %v2496_v16 = vpop.f32.mrf.mxu2  ;;  %v2665_v20 = vpop.f32.mrf.mxu3  ;;  %v1463_v24 = vadd.f32 %v3559_v42, %v1333_v8 }
 0x252   : > { %2959 = vst [vmem:[%s3687_s9 + $0x128] sm:$0xff] %v2895_v31  ;;  %v2497_v19 = vadd.f32 %v2496_v16, %v3670_v9  ;;  %v2160_v21 = vpop.f32.mrf.mxu0  ;;  %v2329_v23 = vpop.f32.mrf.mxu1  ;;  %v1460_v16 = vadd.f32 %v3557_v41, %v1330_v0  ;;  %v1131_v26 = vmul.f32 %v3544_v10, %v1005_v14  ;;  %v1132_v27 = vmul.f32 %v3546_v13, %v1005_v14 }
 0x253   : > { %v2161_v33 = vadd.f32 %v2160_v21, %v3667_v62  ;;  %v1783_v39 = vmax.f32 %v1463_v24, 0.0  ;;  %v929_v46 = vpop.permute.xlu0 %928 }
 0x254   : > { %v2666_v25 = vadd.f32 %v2665_v20, %v2497_v19  ;;  %v1133_v19 = vmul.f32 %v3544_v10, %v1006_v5  ;;  %v1462_v20 = vadd.f32 %v3557_v41, %v1332_v4  ;;  %v1780_v28 = vmax.f32 %v1460_v16, 0.0 }
 0x255   : > { %v2330_v47 = vadd.f32 %v2329_v23, %v2161_v33  ;;  %v1199_v43 = vpack.c.bf16 %v1132_v27, %v1131_v26  ;;  %v934_v55 = vperm.slane %v929_v46, %v3539_v6 }
 0x256   : > { %v2807_v32 = vmax.f32 %v2666_v25, 0.0  ;;  %v1134_v25 = vmul.f32 %v3546_v13, %v1006_v5  ;;  %v1782_v34 = vmax.f32 %v1462_v20, 0.0 }
 0x257   : > { %v2808_v60 = vmax.f32 %v2330_v47, 0.0  ;;  %v1008_v2 = vunpack.c.l.bf16 %v934_v55 }
 0x258   : > { %v2896_v38 = vpack.c.bf16 %v2807_v32, %v2806_v29  ;;  %v1781_v32 = vmax.f32 %v1461_v18, 0.0  ;;  %v1200_v40 = vpack.c.bf16 %v1134_v25, %v1133_v19 }
 0x259   : > { %v2498_v45 = vpop.f32.mrf.mxu2  ;;  %v2667_v49 = vpop.f32.mrf.mxu3  ;;  %v1137_v14 = vmul.f32 %v3544_v10, %v1008_v2 }
 0x25a   : > { %2960 = vst [vmem:[%s3687_s9 + $0x130] sm:$0xff] %v2896_v38  ;;  %v2499_v48 = vadd.f32 %v2498_v45, %v3670_v9  ;;  %v2163_v50 = vpop.f32.mrf.mxu0  ;;  %v2332_v53 = vpop.f32.mrf.mxu1  ;;  %v1850_v45 = vpack.c.bf16 %v1782_v34, %v1780_v28 }
 0x25b   : > { %v2164_v63 = vadd.f32 %v2163_v50, %v3667_v62 }
 0x25c   : > { %v2668_v56 = vadd.f32 %v2667_v49, %v2499_v48  ;;  %v1851_v48 = vpack.c.bf16 %v1783_v39, %v1781_v32  ;;  %v920_v49 = vpop.permute.xlu2 %919 }
 0x25d   : > { %2202 = vmatmul.bf16.gmra.mxu0 %v1848_v54  ;;  %2371 = vmatmul.bf16.gmra.mxu1 %v1849_v57  ;;  %v2333_v30 = vadd.f32 %v2332_v53, %v2164_v63  ;;  %v1336_v53 = vunpack.c.l.bf16 %v1200_v40  ;;  %v925_v59 = vperm.slane %v920_v49, %v3539_v6 }
 0x25e   : > { %v2809_v61 = vmax.f32 %v2668_v56, 0.0  ;;  %2540 = vmatmul.bf16.gmra.mxu2 %v1848_v54  ;;  %2709 = vmatmul.bf16.gmra.mxu3 %v1849_v57  ;;  %v1334_v54 = vunpack.c.l.bf16 %v1199_v43  ;;  %v1337_v56 = vunpack.c.h.bf16 %v1200_v40  ;;  %v1335_v57 = vunpack.c.h.bf16 %v1199_v43 }
 0x25f   : > { %v2810_v21 = vmax.f32 %v2333_v30, 0.0  ;;  %v1466_v5 = vadd.f32 %v3557_v41, %v1336_v53  ;;  %v1007_v6 = vunpack.c.l.bf16 %v925_v59 }
 0x260   : > { %v2897_v3 = vpack.c.bf16 %v2809_v61, %v2808_v60  ;;  %v1464_v4 = vadd.f32 %v3557_v41, %v1334_v54  ;;  %v1465_v8 = vadd.f32 %v3559_v42, %v1335_v57  ;;  %v1467_v30 = vadd.f32 %v3559_v42, %v1337_v56 }
 0x261   : > { %v2501_v7 = vpop.f32.mrf.mxu2  ;;  %v2670_v12 = vpop.f32.mrf.mxu3 }
 0x262   : > { %2961 = vst [vmem:[%s3687_s9 + $0x138] sm:$0xff] %v2897_v3  ;;  %v2502_v11 = vadd.f32 %v2501_v7, %v3670_v9  ;;  %v2165_v31 = vpop.f32.mrf.mxu0  ;;  %v2334_v15 = vpop.f32.mrf.mxu1  ;;  %v1784_v16 = vmax.f32 %v1464_v4, 0.0  ;;  %v1785_v19 = vmax.f32 %v1465_v8, 0.0  ;;  %v1787_v20 = vmax.f32 %v1467_v30, 0.0 }
 0x263   : > { %v2166_v23 = vadd.f32 %v2165_v31, %v3667_v62 }
 0x264   : > { %v2671_v17 = vadd.f32 %v2670_v12, %v2502_v11  ;;  %v1853_v34 = vpack.c.bf16 %v1787_v20, %v1785_v19 }
 0x265   : > { %v2335_v35 = vadd.f32 %v2334_v15, %v2166_v23  ;;  %v1138_v15 = vmul.f32 %v3546_v13, %v1008_v2 }
 0x266   : > { %v2811_v22 = vmax.f32 %v2671_v17, 0.0  ;;  %v1786_v17 = vmax.f32 %v1466_v5, 0.0 }
 0x267   : > { %v2812_v50 = vmax.f32 %v2335_v35, 0.0  ;;  %v1202_v28 = vpack.c.bf16 %v1138_v15, %v1137_v14 }
 0x268   : > { %v2898_v29 = vpack.c.bf16 %v2811_v22, %v2810_v21  ;;  %v1135_v21 = vmul.f32 %v3544_v10, %v1007_v6  ;;  %v1136_v22 = vmul.f32 %v3546_v13, %v1007_v6  ;;  %v1852_v32 = vpack.c.bf16 %v1786_v17, %v1784_v16 }
 0x269   : > { %v2503_v33 = vpop.f32.mrf.mxu2  ;;  %v2672_v37 = vpop.f32.mrf.mxu3  ;;  %v1340_v13 = vunpack.c.l.bf16 %v1202_v28 }
 0x26a   : > { %2962 = vst [vmem:[%s3687_s9 + $0x140] sm:$0xff] %v2898_v29  ;;  %v2504_v36 = vadd.f32 %v2503_v33, %v3670_v9  ;;  %v2168_v38 = vpop.f32.mrf.mxu0  ;;  %v2337_v44 = vpop.f32.mrf.mxu1  ;;  %v1201_v35 = vpack.c.bf16 %v1136_v22, %v1135_v21 }
 0x26b   : > { %v2169_v52 = vadd.f32 %v2168_v38, %v3667_v62  ;;  %v1341_v38 = vunpack.c.h.bf16 %v1202_v28 }
 0x26c   : > { %v2673_v47 = vadd.f32 %v2672_v37, %v2504_v36  ;;  %v1338_v40 = vunpack.c.l.bf16 %v1201_v35 }
 0x26d   : > { %2207 = vmatmul.bf16.gmra.mxu0 %v1850_v45  ;;  %2376 = vmatmul.bf16.gmra.mxu1 %v1851_v48  ;;  %v2338_v61 = vadd.f32 %v2337_v44, %v2169_v52  ;;  %v1339_v44 = vunpack.c.h.bf16 %v1201_v35  ;;  %v1471_v52 = vadd.f32 %v3559_v42, %v1341_v38 }
 0x26e   : > { %v2813_v51 = vmax.f32 %v2673_v47, 0.0  ;;  %2545 = vmatmul.bf16.gmra.mxu2 %v1850_v45  ;;  %2714 = vmatmul.bf16.gmra.mxu3 %v1851_v48  ;;  %v1468_v53 = vadd.f32 %v3557_v41, %v1338_v40 }
 0x26f   : > { %v2814_v11 = vmax.f32 %v2338_v61, 0.0  ;;  %v1469_v57 = vadd.f32 %v3559_v42, %v1339_v44 }
 0x270   : > { %v2899_v58 = vpack.c.bf16 %v2813_v51, %v2812_v50  ;;  %v1470_v50 = vadd.f32 %v3557_v41, %v1340_v13 }
 0x271   : > { %v2506_v60 = vpop.f32.mrf.mxu2  ;;  %v2675_v0 = vpop.f32.mrf.mxu3  ;;  %v1789_v4 = vmax.f32 %v1469_v57, 0.0 }
 0x272   : > { %2963 = vst [vmem:[%s3687_s9 + $0x148] sm:$0xff] %v2899_v58  ;;  %v2507_v63 = vadd.f32 %v2506_v60, %v3670_v9  ;;  %v2170_v1 = vpop.f32.mrf.mxu0  ;;  %v2339_v3 = vpop.f32.mrf.mxu1  ;;  %v1790_v58 = vmax.f32 %v1470_v50, 0.0  ;;  %v1791_v60 = vmax.f32 %v1471_v52, 0.0 }
 0x273   : > { %v2171_v31 = vadd.f32 %v2170_v1, %v3667_v62 }
 0x274   : > { %v2676_v7 = vadd.f32 %v2675_v0, %v2507_v63  ;;  %v1788_v63 = vmax.f32 %v1468_v53, 0.0  ;;  %v1855_v8 = vpack.c.bf16 %v1791_v60, %v1789_v4 }
 0x275   : > { %v2340_v24 = vadd.f32 %v2339_v3, %v2171_v31 }
 0x276   : > { %v2815_v12 = vmax.f32 %v2676_v7, 0.0  ;;  %v1854_v5 = vpack.c.bf16 %v1790_v58, %v1788_v63 }
 0x277   : > { %v2816_v36 = vmax.f32 %v2340_v24, 0.0 }
 0x278   : > { %v2900_v18 = vpack.c.bf16 %v2815_v12, %v2814_v11 }
 0x279   : > { %v2508_v23 = vpop.f32.mrf.mxu2  ;;  %v2677_v26 = vpop.f32.mrf.mxu3 }
 0x27a   : > { %2964 = vst [vmem:[%s3687_s9 + $0x150] sm:$0xff] %v2900_v18  ;;  %v2509_v25 = vadd.f32 %v2508_v23, %v3670_v9  ;;  %v2173_v27 = vpop.f32.mrf.mxu0  ;;  %v2342_v29 = vpop.f32.mrf.mxu1 }
 0x27b   : > { %v2174_v10 = vadd.f32 %v2173_v27, %v3667_v62 }
 0x27c   : > { %v2678_v33 = vadd.f32 %v2677_v26, %v2509_v25 }
 0x27d   : > { %2212 = vmatmul.bf16.gmra.mxu0 %v1852_v32  ;;  %2381 = vmatmul.bf16.gmra.mxu1 %v1853_v34  ;;  %v2343_v45 = vadd.f32 %v2342_v29, %v2174_v10 }
 0x27e   : > { %v2817_v37 = vmax.f32 %v2678_v33, 0.0  ;;  %2550 = vmatmul.bf16.gmra.mxu2 %v1852_v32  ;;  %2719 = vmatmul.bf16.gmra.mxu3 %v1853_v34 }
 0x27f   : > { %v2818_v54 = vmax.f32 %v2343_v45, 0.0 }
 0x280   : > { %v2901_v39 = vpack.c.bf16 %v2817_v37, %v2816_v36 }
 0x281   : > { %v2511_v43 = vpop.f32.mrf.mxu2  ;;  %v2680_v47 = vpop.f32.mrf.mxu3 }
 0x282   : > { %2965 = vst [vmem:[%s3687_s9 + $0x158] sm:$0xff] %v2901_v39  ;;  %v2512_v46 = vadd.f32 %v2511_v43, %v3670_v9  ;;  %v2175_v48 = vpop.f32.mrf.mxu0  ;;  %v2344_v49 = vpop.f32.mrf.mxu1 }
 0x283   : > { %v2176_v56 = vadd.f32 %v2175_v48, %v3667_v62 }
 0x284   : > { %v2681_v51 = vadd.f32 %v2680_v47, %v2512_v46 }
 0x285   : > { %v2345_v0 = vadd.f32 %v2344_v49, %v2176_v56 }
 0x286   : > { %v2819_v55 = vmax.f32 %v2681_v51, 0.0 }
 0x287   : > { %v2820_v30 = vmax.f32 %v2345_v0, 0.0 }
 0x288   : > { %v2902_v59 = vpack.c.bf16 %v2819_v55, %v2818_v54 }
 0x289   : > { %v2513_v61 = vpop.f32.mrf.mxu2  ;;  %v2682_v2 = vpop.f32.mrf.mxu3 }
 0x28a   : > { %2966 = vst [vmem:[%s3687_s9 + $0x160] sm:$0xff] %v2902_v59  ;;  %v2514_v1 = vadd.f32 %v2513_v61, %v3670_v9  ;;  %v2178_v3 = vpop.f32.mrf.mxu0  ;;  %v2347_v41 = vpop.f32.mrf.mxu1 }
 0x28b   : > { %v2179_v6 = vadd.f32 %v2178_v3, %v3667_v62 }
 0x28c   : > { %v2683_v7 = vadd.f32 %v2682_v2, %v2514_v1 }
 0x28d   : > { %2217 = vmatmul.bf16.gmra.mxu0 %v1854_v5  ;;  %2386 = vmatmul.bf16.gmra.mxu1 %v1855_v8  ;;  %v2348_v31 = vadd.f32 %v2347_v41, %v2179_v6 }
 0x28e   : > { %v2821_v42 = vmax.f32 %v2683_v7, 0.0  ;;  %2555 = vmatmul.bf16.gmra.mxu2 %v1854_v5  ;;  %2724 = vmatmul.bf16.gmra.mxu3 %v1855_v8 }
 0x28f   : > { %v2822_v19 = vmax.f32 %v2348_v31, 0.0 }
 0x290   : > { %v2903_v11 = vpack.c.bf16 %v2821_v42, %v2820_v30 }
 0x291   : > { %v2516_v12 = vpop.f32.mrf.mxu2  ;;  %v2685_v15 = vpop.f32.mrf.mxu3 }
 0x292   : > { %2967 = vst [vmem:[%s3687_s9 + $0x168] sm:$0xff] %v2903_v11  ;;  %v2517_v14 = vadd.f32 %v2516_v12, %v3670_v9  ;;  %v2180_v16 = vpop.f32.mrf.mxu0  ;;  %v2349_v17 = vpop.f32.mrf.mxu1 }
 0x293   : > { %v2181_v21 = vadd.f32 %v2180_v16, %v3667_v62 }
 0x294   : > { %v2686_v18 = vadd.f32 %v2685_v15, %v2517_v14 }
 0x295   : > { %v2350_v24 = vadd.f32 %v2349_v17, %v2181_v21 }
 0x296   : > { %v2823_v20 = vmax.f32 %v2686_v18, 0.0 }
 0x297   : > { %v2824_v32 = vmax.f32 %v2350_v24, 0.0 }
 0x298   : > { %v2904_v22 = vpack.c.bf16 %v2823_v20, %v2822_v19 }
 0x299   : > { %v2518_v23 = vpop.f32.mrf.mxu2  ;;  %v2687_v26 = vpop.f32.mrf.mxu3 }
 0x29a   : > { %2968 = vst [vmem:[%s3687_s9 + $0x170] sm:$0xff] %v2904_v22  ;;  %v2519_v25 = vadd.f32 %v2518_v23, %v3670_v9  ;;  %v2183_v27 = vpop.f32.mrf.mxu0  ;;  %v2352_v28 = vpop.f32.mrf.mxu1 }
 0x29b   : > { %v2184_v34 = vadd.f32 %v2183_v27, %v3667_v62 }
 0x29c   : > { %v2688_v29 = vadd.f32 %v2687_v26, %v2519_v25 }
 0x29d   : > { %v2353_v37 = vadd.f32 %v2352_v28, %v2184_v34 }
 0x29e   : > { %v2825_v33 = vmax.f32 %v2688_v29, 0.0 }
 0x29f   : > { %v2826_v43 = vmax.f32 %v2353_v37, 0.0 }
 0x2a0   : > { %v2905_v35 = vpack.c.bf16 %v2825_v33, %v2824_v32 }
 0x2a1   : > { %v2521_v36 = vpop.f32.mrf.mxu2  ;;  %v2690_v13 = vpop.f32.mrf.mxu3 }
 0x2a2   : > { %2969 = vst [vmem:[%s3687_s9 + $0x178] sm:$0xff] %v2905_v35  ;;  %v2522_v10 = vadd.f32 %v2521_v36, %v3670_v9  ;;  %v2185_v38 = vpop.f32.mrf.mxu0  ;;  %v2354_v39 = vpop.f32.mrf.mxu1 }
 0x2a3   : > { %v2186_v45 = vadd.f32 %v2185_v38, %v3667_v62 }
 0x2a4   : > { %v2691_v40 = vadd.f32 %v2690_v13, %v2522_v10 }
 0x2a5   : > { %v2355_v48 = vadd.f32 %v2354_v39, %v2186_v45 }
 0x2a6   : > { %v2827_v44 = vmax.f32 %v2691_v40, 0.0 }
 0x2a7   : > { %v2828_v54 = vmax.f32 %v2355_v48, 0.0 }
 0x2a8   : > { %v2906_v46 = vpack.c.bf16 %v2827_v44, %v2826_v43 }
 0x2a9   : > { %v2523_v47 = vpop.f32.mrf.mxu2  ;;  %v2692_v50 = vpop.f32.mrf.mxu3 }
 0x2aa   : > { %2970 = vst [vmem:[%s3687_s9 + $0x180] sm:$0xff] %v2906_v46  ;;  %v2524_v49 = vadd.f32 %v2523_v47, %v3670_v9  ;;  %v2188_v51 = vpop.f32.mrf.mxu0  ;;  %v2357_v52 = vpop.f32.mrf.mxu1 }
 0x2ab   : > { %v2189_v56 = vadd.f32 %v2188_v51, %v3667_v62 }
 0x2ac   : > { %v2693_v53 = vadd.f32 %v2692_v50, %v2524_v49 }
 0x2ad   : > { %v2358_v59 = vadd.f32 %v2357_v52, %v2189_v56 }
 0x2ae   : > { %v2829_v55 = vmax.f32 %v2693_v53, 0.0 }
 0x2af   : > { %v2830_v2 = vmax.f32 %v2358_v59, 0.0 }
 0x2b0   : > { %v2907_v57 = vpack.c.bf16 %v2829_v55, %v2828_v54 }
 0x2b1   : > { %v2526_v58 = vpop.f32.mrf.mxu2  ;;  %v2695_v61 = vpop.f32.mrf.mxu3 }
 0x2b2   : > { %2971 = vst [vmem:[%s3687_s9 + $0x188] sm:$0xff] %v2907_v57  ;;  %v2527_v60 = vadd.f32 %v2526_v58, %v3670_v9  ;;  %v2190_v63 = vpop.f32.mrf.mxu0  ;;  %v2359_v0 = vpop.f32.mrf.mxu1 }
 0x2b3   : > { %v2191_v4 = vadd.f32 %v2190_v63, %v3667_v62 }
 0x2b4   : > { %v2696_v1 = vadd.f32 %v2695_v61, %v2527_v60 }
 0x2b5   : > { %v2360_v7 = vadd.f32 %v2359_v0, %v2191_v4 }
 0x2b6   : > { %v2831_v3 = vmax.f32 %v2696_v1, 0.0 }
 0x2b7   : > { %v2832_v12 = vmax.f32 %v2360_v7, 0.0 }
 0x2b8   : > { %v2908_v41 = vpack.c.bf16 %v2831_v3, %v2830_v2 }
 0x2b9   : > { %v2528_v5 = vpop.f32.mrf.mxu2  ;;  %v2697_v30 = vpop.f32.mrf.mxu3 }
 0x2ba   : > { %2972 = vst [vmem:[%s3687_s9 + $0x190] sm:$0xff] %v2908_v41  ;;  %v2529_v8 = vadd.f32 %v2528_v5, %v3670_v9  ;;  %v2193_v42 = vpop.f32.mrf.mxu0  ;;  %v2362_v6 = vpop.f32.mrf.mxu1 }
 0x2bb   : > { %v2194_v14 = vadd.f32 %v2193_v42, %v3667_v62 }
 0x2bc   : > { %v2698_v11 = vadd.f32 %v2697_v30, %v2529_v8 }
 0x2bd   : > { %v2363_v17 = vadd.f32 %v2362_v6, %v2194_v14 }
 0x2be   : > { %v2833_v31 = vmax.f32 %v2698_v11, 0.0 }
 0x2bf   : > { %v2834_v23 = vmax.f32 %v2363_v17, 0.0 }
 0x2c0   : > { %v2909_v15 = vpack.c.bf16 %v2833_v31, %v2832_v12 }
 0x2c1   : > { %v2531_v16 = vpop.f32.mrf.mxu2  ;;  %v2700_v19 = vpop.f32.mrf.mxu3 }
 0x2c2   : > { %2973 = vst [vmem:[%s3687_s9 + $0x198] sm:$0xff] %v2909_v15  ;;  %v2532_v18 = vadd.f32 %v2531_v16, %v3670_v9  ;;  %v2195_v20 = vpop.f32.mrf.mxu0  ;;  %v2364_v21 = vpop.f32.mrf.mxu1 }
 0x2c3   : > { %v2196_v25 = vadd.f32 %v2195_v20, %v3667_v62 }
 0x2c4   : > { %v2701_v22 = vadd.f32 %v2700_v19, %v2532_v18 }
 0x2c5   : > { %v2365_v28 = vadd.f32 %v2364_v21, %v2196_v25 }
 0x2c6   : > { %v2835_v24 = vmax.f32 %v2701_v22, 0.0 }
 0x2c7   : > { %v2836_v36 = vmax.f32 %v2365_v28, 0.0 }
 0x2c8   : > { %v2910_v26 = vpack.c.bf16 %v2835_v24, %v2834_v23 }
 0x2c9   : > { %v2533_v27 = vpop.f32.mrf.mxu2  ;;  %v2702_v32 = vpop.f32.mrf.mxu3 }
 0x2ca   : > { %2974 = vst [vmem:[%s3687_s9 + $0x1a0] sm:$0xff] %v2910_v26  ;;  %v2534_v29 = vadd.f32 %v2533_v27, %v3670_v9  ;;  %v2198_v33 = vpop.f32.mrf.mxu0  ;;  %v2367_v34 = vpop.f32.mrf.mxu1 }
 0x2cb   : > { %v2199_v10 = vadd.f32 %v2198_v33, %v3667_v62 }
 0x2cc   : > { %v2703_v35 = vadd.f32 %v2702_v32, %v2534_v29 }
 0x2cd   : > { %v2368_v39 = vadd.f32 %v2367_v34, %v2199_v10 }
 0x2ce   : > { %v2837_v37 = vmax.f32 %v2703_v35, 0.0 }
 0x2cf   : > { %v2838_v47 = vmax.f32 %v2368_v39, 0.0 }
 0x2d0   : > { %v2911_v13 = vpack.c.bf16 %v2837_v37, %v2836_v36 }
 0x2d1   : > { %v2536_v38 = vpop.f32.mrf.mxu2  ;;  %v2705_v43 = vpop.f32.mrf.mxu3 }
 0x2d2   : > { %2975 = vst [vmem:[%s3687_s9 + $0x1a8] sm:$0xff] %v2911_v13  ;;  %v2537_v40 = vadd.f32 %v2536_v38, %v3670_v9  ;;  %v2200_v44 = vpop.f32.mrf.mxu0  ;;  %v2369_v45 = vpop.f32.mrf.mxu1 }
 0x2d3   : > { %v2201_v49 = vadd.f32 %v2200_v44, %v3667_v62 }
 0x2d4   : > { %v2706_v46 = vadd.f32 %v2705_v43, %v2537_v40 }
 0x2d5   : > { %v2370_v52 = vadd.f32 %v2369_v45, %v2201_v49 }
 0x2d6   : > { %v2839_v48 = vmax.f32 %v2706_v46, 0.0 }
 0x2d7   : > { %v2840_v58 = vmax.f32 %v2370_v52, 0.0 }
 0x2d8   : > { %v2912_v50 = vpack.c.bf16 %v2839_v48, %v2838_v47 }
 0x2d9   : > { %v2538_v51 = vpop.f32.mrf.mxu2  ;;  %v2707_v54 = vpop.f32.mrf.mxu3 }
 0x2da   : > { %2976 = vst [vmem:[%s3687_s9 + $0x1b0] sm:$0xff] %v2912_v50  ;;  %v2539_v53 = vadd.f32 %v2538_v51, %v3670_v9  ;;  %v2203_v55 = vpop.f32.mrf.mxu0  ;;  %v2372_v56 = vpop.f32.mrf.mxu1 }
 0x2db   : > { %v2204_v60 = vadd.f32 %v2203_v55, %v3667_v62 }
 0x2dc   : > { %v2708_v57 = vadd.f32 %v2707_v54, %v2539_v53 }
 0x2dd   : > { %v2373_v0 = vadd.f32 %v2372_v56, %v2204_v60 }
 0x2de   : > { %v2841_v59 = vmax.f32 %v2708_v57, 0.0 }
 0x2df   : > { %v2842_v5 = vmax.f32 %v2373_v0, 0.0 }
 0x2e0   : > { %v2913_v61 = vpack.c.bf16 %v2841_v59, %v2840_v58 }
 0x2e1   : > { %v2541_v63 = vpop.f32.mrf.mxu2  ;;  %v2710_v2 = vpop.f32.mrf.mxu3 }
 0x2e2   : > { %2977 = vst [vmem:[%s3687_s9 + $0x1b8] sm:$0xff] %v2913_v61  ;;  %v2542_v1 = vadd.f32 %v2541_v63, %v3670_v9  ;;  %v2205_v3 = vpop.f32.mrf.mxu0  ;;  %v2374_v4 = vpop.f32.mrf.mxu1 }
 0x2e3   : > { %v2206_v8 = vadd.f32 %v2205_v3, %v3667_v62 }
 0x2e4   : > { %v2711_v41 = vadd.f32 %v2710_v2, %v2542_v1 }
 0x2e5   : > { %v2375_v6 = vadd.f32 %v2374_v4, %v2206_v8 }
 0x2e6   : > { %v2843_v7 = vmax.f32 %v2711_v41, 0.0 }
 0x2e7   : > { %v2844_v16 = vmax.f32 %v2375_v6, 0.0 }
 0x2e8   : > { %v2914_v30 = vpack.c.bf16 %v2843_v7, %v2842_v5 }
 0x2e9   : > { %v2543_v42 = vpop.f32.mrf.mxu2  ;;  %v2712_v12 = vpop.f32.mrf.mxu3 }
 0x2ea   : > { %2978 = vst [vmem:[%s3687_s9 + $0x1c0] sm:$0xff] %v2914_v30  ;;  %v2544_v11 = vadd.f32 %v2543_v42, %v3670_v9  ;;  %v2208_v31 = vpop.f32.mrf.mxu0  ;;  %v2377_v14 = vpop.f32.mrf.mxu1 }
 0x2eb   : > { %v2209_v18 = vadd.f32 %v2208_v31, %v3667_v62 }
 0x2ec   : > { %v2713_v15 = vadd.f32 %v2712_v12, %v2544_v11 }
 0x2ed   : > { %v2378_v21 = vadd.f32 %v2377_v14, %v2209_v18 }
 0x2ee   : > { %v2845_v17 = vmax.f32 %v2713_v15, 0.0 }
 0x2ef   : > { %v2846_v27 = vmax.f32 %v2378_v21, 0.0 }
 0x2f0   : > { %v2915_v19 = vpack.c.bf16 %v2845_v17, %v2844_v16 }
 0x2f1   : > { %v2546_v20 = vpop.f32.mrf.mxu2  ;;  %v2715_v23 = vpop.f32.mrf.mxu3 }
 0x2f2   : > { %2979 = vst [vmem:[%s3687_s9 + $0x1c8] sm:$0xff] %v2915_v19  ;;  %v2547_v22 = vadd.f32 %v2546_v20, %v3670_v9  ;;  %v2210_v24 = vpop.f32.mrf.mxu0  ;;  %v2379_v25 = vpop.f32.mrf.mxu1 }
 0x2f3   : > { %v2211_v29 = vadd.f32 %v2210_v24, %v3667_v62 }
 0x2f4   : > { %v2716_v26 = vadd.f32 %v2715_v23, %v2547_v22 }
 0x2f5   : > { %v2380_v34 = vadd.f32 %v2379_v25, %v2211_v29 }
 0x2f6   : > { %v2847_v28 = vmax.f32 %v2716_v26, 0.0 }
 0x2f7   : > { %v2848_v38 = vmax.f32 %v2380_v34, 0.0 }
 0x2f8   : > { %v2916_v32 = vpack.c.bf16 %v2847_v28, %v2846_v27 }
 0x2f9   : > { %v2548_v33 = vpop.f32.mrf.mxu2  ;;  %v2717_v36 = vpop.f32.mrf.mxu3 }
 0x2fa   : > { %2980 = vst [vmem:[%s3687_s9 + $0x1d0] sm:$0xff] %v2916_v32  ;;  %v2549_v35 = vadd.f32 %v2548_v33, %v3670_v9  ;;  %v2213_v37 = vpop.f32.mrf.mxu0  ;;  %v2382_v10 = vpop.f32.mrf.mxu1 }
 0x2fb   : > { %v2214_v40 = vadd.f32 %v2213_v37, %v3667_v62 }
 0x2fc   : > { %v2718_v13 = vadd.f32 %v2717_v36, %v2549_v35 }
 0x2fd   : > { %v2383_v45 = vadd.f32 %v2382_v10, %v2214_v40 }
 0x2fe   : > { %v2849_v39 = vmax.f32 %v2718_v13, 0.0 }
 0x2ff   : > { %v2850_v51 = vmax.f32 %v2383_v45, 0.0 }
 0x300   : > { %v2917_v43 = vpack.c.bf16 %v2849_v39, %v2848_v38 }
 0x301   : > { %v2551_v44 = vpop.f32.mrf.mxu2  ;;  %v2720_v47 = vpop.f32.mrf.mxu3 }
 0x302   : > { %2981 = vst [vmem:[%s3687_s9 + $0x1d8] sm:$0xff] %v2917_v43  ;;  %v2552_v46 = vadd.f32 %v2551_v44, %v3670_v9  ;;  %v2215_v48 = vpop.f32.mrf.mxu0  ;;  %v2384_v50 = vpop.f32.mrf.mxu1 }
 0x303   : > { %v2216_v53 = vadd.f32 %v2215_v48, %v3667_v62 }
 0x304   : > { %v2721_v49 = vadd.f32 %v2720_v47, %v2552_v46 }
 0x305   : > { %v2385_v56 = vadd.f32 %v2384_v50, %v2216_v53 }
 0x306   : > { %v2851_v52 = vmax.f32 %v2721_v49, 0.0 }
 0x307   : > { %v2852_v61 = vmax.f32 %v2385_v56, 0.0 }
 0x308   : > { %v2918_v54 = vpack.c.bf16 %v2851_v52, %v2850_v51 }
 0x309   : > { %v2553_v55 = vpop.f32.mrf.mxu2  ;;  %v2722_v58 = vpop.f32.mrf.mxu3 }
 0x30a   : > { %2982 = vst [vmem:[%s3687_s9 + $0x1e0] sm:$0xff] %v2918_v54  ;;  %v2554_v57 = vadd.f32 %v2553_v55, %v3670_v9  ;;  %v2218_v59 = vpop.f32.mrf.mxu0  ;;  %v2387_v1 = vpop.f32.mrf.mxu1 }
 0x30b   : > { %v2219_v0 = vadd.f32 %v2218_v59, %v3667_v62 }
 0x30c   : > { %v2723_v60 = vadd.f32 %v2722_v58, %v2554_v57 }
 0x30d   : > { %v2388_v4 = vadd.f32 %v2387_v1, %v2219_v0 }
 0x30e   : > { %v2853_v63 = vmax.f32 %v2723_v60, 0.0 }
 0x30f   : > { %v2854_v30 = vmax.f32 %v2388_v4, 0.0 }
 0x310   : > { %v2919_v2 = vpack.c.bf16 %v2853_v63, %v2852_v61 }
 0x311   : > { %v2556_v3 = vpop.f32.mrf.mxu2  ;;  %v2725_v5 = vpop.f32.mrf.mxu3 }
 0x312   : > { %2983 = vst [vmem:[%s3687_s9 + $0x1e8] sm:$0xff] %v2919_v2  ;;  %v2557_v41 = vadd.f32 %v2556_v3, %v3670_v9  ;;  %v2220_v7 = vpop.f32.mrf.mxu0  ;;  %v2389_v12 = vpop.f32.mrf.mxu1 }
 0x313   : > { %v2221_v6 = vadd.f32 %v2220_v7, %v3667_v62 }
 0x314   : > { %v2726_v8 = vadd.f32 %v2725_v5, %v2557_v41 }
 0x315   : > { %v2390_v14 = vadd.f32 %v2389_v12, %v2221_v6 }
 0x316   : > { %v2855_v42 = vmax.f32 %v2726_v8, 0.0 }
 0x317   : > { %v2856_v18 = vmax.f32 %v2390_v14, 0.0 }
 0x318   : > { %v2920_v11 = vpack.c.bf16 %v2855_v42, %v2854_v30 }
 0x319   : > { %v2558_v31 = vpop.f32.mrf.mxu2  ;;  %v2727_v16 = vpop.f32.mrf.mxu3 }
 0x31a   : > { %2984 = vst [vmem:[%s3687_s9 + $0x1f0] sm:$0xff] %v2920_v11  ;;  %v2559_v15 = vadd.f32 %v2558_v31, %v3670_v9 }
 0x31c   : > { %v2728_v17 = vadd.f32 %v2727_v16, %v2559_v15 }
 0x31e   : > { %v2857_v19 = vmax.f32 %v2728_v17, 0.0 }
 0x320   : > { %v2921_v20 = vpack.c.bf16 %v2857_v19, %v2856_v18 }
 0x322   : > { %2985 = vst [vmem:[%s3687_s9 + $0x1f8] sm:$0xff] %v2921_v20 }
 0x323 PF: > { %s15_s18 = sadd.s32 1, %s3236_s18  }
 0x324   : > { %p12_p4 = scmp.ge.s32.totalorder %s15_s18, 4  }
 0x326   :  { %14 = sbr.rel (!%p12_p4) target bundleno = 1 (0x1), region = 70 }

</bundles_post_ra>
